<compile_context>
chip_gen: v6e
topology: v6e:2x2x1
jax: 0.10.0
libtpu: 0.0.40
codegen_flags: <defaults>
</compile_context>

<pallas_src>
import jax
import jax.numpy as jnp
from jax.experimental import pallas as pl
from jax.experimental.pallas import tpu as pltpu

ENCODER_DIM = 512   # resnet18 head dim in the reference module
PROJ_DIM = 128
PRED_DIM = 64
CONV_OUT = 128      # stand-in stem width (lane-dense)
BN_EPS = 1e-5
K = 3               # conv kernel size
PAD = 1             # 'same' padding for the 3x3 stem


# ----------------------------------------------------------------------------
# In-kernel building blocks (pure array -> array functions)
# ----------------------------------------------------------------------------
def _batchnorm(z, gamma, beta, avg_mat, sel_mat):
    """Train-mode BatchNorm1d with per-view batch statistics.

    avg_mat: (V, V*N) constant, 1/N on each view's own rows.
    sel_mat: (V*N, V) constant one-hot (broadcasts per-view stats back to rows).
    Two-pass centered variance (biased), matching PyTorch's normalization.
    """
    mean = jnp.dot(sel_mat,
                   jnp.dot(avg_mat, z, preferred_element_type=jnp.float32),
                   preferred_element_type=jnp.float32)            # (V*N, D)
    cen = z - mean
    var = jnp.dot(sel_mat,
                  jnp.dot(avg_mat, cen * cen, preferred_element_type=jnp.float32),
                  preferred_element_type=jnp.float32)             # (V*N, D)
    return cen * jax.lax.rsqrt(var + BN_EPS) * gamma + beta


def _stem(patches, pool_mat, wc, wfc):
    """Stand-in encoder: conv(3x3, as one im2col matmul) -> ReLU -> GAP -> FC."""
    conv = jnp.maximum(
        jnp.dot(patches, wc, preferred_element_type=jnp.float32), 0.0)   # (M, 128)
    pooled = jnp.dot(pool_mat, conv, preferred_element_type=jnp.float32)  # (imgs, 128)
    return jnp.dot(pooled, wfc, preferred_element_type=jnp.float32)       # (imgs, 512)


# ----------------------------------------------------------------------------
# Kernels (single grid step; everything VMEM resident)
# ----------------------------------------------------------------------------
def stem_kernel(patches_ref, pool_ref, wc_ref, wfc_ref, h_ref):
    h_ref[...] = _stem(patches_ref[...], pool_ref[...], wc_ref[...], wfc_ref[...])


def fused_kernel(patches_ref, pool_ref, avg_ref, sel_ref, wc_ref, wfc_ref,
                 w1_ref, g1_ref, b1_ref,
                 w2_ref, g2_ref, b2_ref,
                 wp1_ref, gp1_ref, bp1_ref,
                 wp2_ref, bp2_ref,
                 h_ref, pro_ref, pre_ref):
    avg = avg_ref[...]
    sel = sel_ref[...]

    # ---- stand-in encoder for all views at once (M = V*N rows) ----
    h = _stem(patches_ref[...], pool_ref[...], wc_ref[...], wfc_ref[...])  # (V*N, 512)
    h_ref[...] = h

    # ---- projection: fc1(no bias) -> bn1 -> relu -> fc2(no bias) -> bn2(no bias) ----
    z1 = jnp.dot(h, w1_ref[...], preferred_element_type=jnp.float32)       # (V*N, 512)
    a1 = jnp.maximum(_batchnorm(z1, g1_ref[...], b1_ref[...], avg, sel), 0.0)
    z2 = jnp.dot(a1, w2_ref[...], preferred_element_type=jnp.float32)      # (V*N, 128)
    pro = _batchnorm(z2, g2_ref[...], b2_ref[...], avg, sel)               # bn2 bias == 0
    pro_ref[...] = pro

    # ---- predictor: fc(no bias) -> bn -> relu -> fc(+bias) ----
    q1 = jnp.dot(pro, wp1_ref[...], preferred_element_type=jnp.float32)    # (V*N, 64)
    a2 = jnp.maximum(_batchnorm(q1, gp1_ref[...], bp1_ref[...], avg, sel), 0.0)
    pre_ref[...] = (jnp.dot(a2, wp2_ref[...], preferred_element_type=jnp.float32)
                    + bp2_ref[...])                                        # (V*N, 128)


# ----------------------------------------------------------------------------
# pallas_call wrappers
# ----------------------------------------------------------------------------
_VMEM = pl.BlockSpec(memory_space=pltpu.MemorySpace.VMEM)


def run_stem(patches, pool_mat, params, num_imgs):
    return pl.pallas_call(
        stem_kernel,
        out_shape=jax.ShapeDtypeStruct((num_imgs, ENCODER_DIM), jnp.float32),
        in_specs=[_VMEM] * 4,
        out_specs=_VMEM,
    )(patches, pool_mat, params["wc"], params["wfc"])


def run_fused(patches, pool_mat, avg_mat, sel_mat, params, num_views, batch):
    vn = num_views * batch
    weights = (params["wc"], params["wfc"],
               params["w1"], params["g1"], params["b1"],
               params["w2"], params["g2"], params["b2"],
               params["wp1"], params["gp1"], params["bp1"],
               params["wp2"], params["bp2"])
    return pl.pallas_call(
        fused_kernel,
        out_shape=(jax.ShapeDtypeStruct((vn, ENCODER_DIM), jnp.float32),
                   jax.ShapeDtypeStruct((vn, PROJ_DIM), jnp.float32),
                   jax.ShapeDtypeStruct((vn, PROJ_DIM), jnp.float32)),
        in_specs=[_VMEM] * (4 + len(weights)),
        out_specs=(_VMEM, _VMEM, _VMEM),
    )(patches, pool_mat, avg_mat, sel_mat, *weights)


# ----------------------------------------------------------------------------
# Host-side glue: im2col layout, constant matrices, params, full forward
# ----------------------------------------------------------------------------
def to_patches(x):
    """NCHW f32 -> im2col patch matrix (N*H*W, K*K*C) for the 3x3 'same' conv."""
    xt = jnp.transpose(x, (0, 2, 3, 1)).astype(jnp.float32)          # NHWC
    xp = jnp.pad(xt, ((0, 0), (PAD, PAD), (PAD, PAD), (0, 0)))
    n, hp, wp, c = xp.shape
    h, w = hp - 2 * PAD, wp - 2 * PAD
    taps = [xp[:, di:di + h, dj:dj + w, :] for di in range(K) for dj in range(K)]
    patches = jnp.concatenate(taps, axis=-1)                         # (N,H,W,K*K*C)
    return patches.reshape(n * h * w, K * K * c)


def make_pool_mat(num_imgs, hw):
    """(num_imgs, num_imgs*hw) averaging matrix: GAP as an MXU matmul."""
    ids = jnp.arange(num_imgs * hw, dtype=jnp.int32) // hw
    onehot = (jnp.arange(num_imgs, dtype=jnp.int32)[:, None] == ids[None, :])
    return onehot.astype(jnp.float32) / jnp.float32(hw)


def make_bn_mats(num_views, batch):
    """Constant per-view averaging (V, V*N) and selection (V*N, V) matrices."""
    ids = jnp.arange(num_views * batch, dtype=jnp.int32) // batch
    sel = (ids[:, None] == jnp.arange(num_views, dtype=jnp.int32)[None, :])
    sel = sel.astype(jnp.float32)
    avg = sel.T / jnp.float32(batch)
    return avg, sel


def init_params(key, c_in=4):
    ks = jax.random.split(key, 7)
    scale = lambda fan_in: 1.0 / jnp.sqrt(jnp.float32(fan_in))
    return {
        # stand-in conv stem, weights stored as the flattened im2col matrix
        "wc": jax.random.normal(ks[0], (K * K * c_in, CONV_OUT), jnp.float32)
              * scale(K * K * c_in),
        "wfc": jax.random.normal(ks[1], (CONV_OUT, ENCODER_DIM), jnp.float32)
               * scale(CONV_OUT),
        # projection head (matmul weights stored (in, out) == PyTorch weight.T)
        "w1": jax.random.normal(ks[2], (ENCODER_DIM, ENCODER_DIM), jnp.float32)
              * scale(ENCODER_DIM),
        "g1": jnp.ones((1, ENCODER_DIM), jnp.float32),
        "b1": jnp.zeros((1, ENCODER_DIM), jnp.float32),
        "w2": jax.random.normal(ks[3], (ENCODER_DIM, PROJ_DIM), jnp.float32)
              * scale(ENCODER_DIM),
        "g2": jnp.ones((1, PROJ_DIM), jnp.float32),
        "b2": jnp.zeros((1, PROJ_DIM), jnp.float32),   # BatchNorm1dNoBias: bias frozen at 0
        # predictor head
        "wp1": jax.random.normal(ks[4], (PROJ_DIM, PRED_DIM), jnp.float32)
               * scale(PROJ_DIM),
        "gp1": jnp.ones((1, PRED_DIM), jnp.float32),
        "bp1": jnp.zeros((1, PRED_DIM), jnp.float32),
        "wp2": jax.random.normal(ks[5], (PRED_DIM, PROJ_DIM), jnp.float32)
               * scale(PRED_DIM),
        "bp2": jax.random.normal(ks[6], (1, PROJ_DIM), jnp.float32) * scale(PRED_DIM),
    }


def encode_project_forward(params, x, y=None, k=None, t=None, out="z"):
    n, _, hh, ww = x.shape
    hw = hh * ww

    if out == "h":
        # Reference computes only convnet(x) in this case -> trimmed stem kernel.
        patches = to_patches(x)
        pool = make_pool_mat(n, hw)
        return run_stem(patches, pool, params, n)

    views = [("x", x)] + [(nm, v) for nm, v in (("y", y), ("k", k), ("t", t))
                          if v is not None]
    v = len(views)
    patches = jnp.concatenate([to_patches(img) for _, img in views], axis=0)
    pool = make_pool_mat(v * n, hw)
    avg, sel = make_bn_mats(v, n)

    _, pro_all, pre_all = run_fused(patches, pool, avg, sel, params, v, n)

    res = {nm: (pre_all[i * n:(i + 1) * n], pro_all[i * n:(i + 1) * n])
           for i, (nm, _) in enumerate(views)}
    pre, pro = res["x"]
    y_pre, y_pro = res.get("y", (None, None))
    k_pre, k_pro = res.get("k", (None, None))
    t_pre, t_pro = res.get("t", (None, None))
    # projection(h) is called twice in the reference; identical values under
    # train-mode batch statistics, so `pro` is returned for both slots.
    return (pre, pro, y_pre, y_pro, k_pre, k_pro, t_pre, t_pro)


if __name__ == "__main__":
    key = jax.random.PRNGKey(0)
    pkey, xkey, ykey = jax.random.split(key, 3)
    params = init_params(pkey, c_in=4)

    # small NCHW inputs: batch=2, channels=4, spatial=16x16; two views (x, y)
    x = jax.random.normal(xkey, (2, 4, 16, 16), jnp.float32)
    y = jax.random.normal(ykey, (2, 4, 16, 16), jnp.float32)

    outputs = encode_project_forward(params, x, y=y)
    pre, pro, y_pre, y_pro = outputs[0], outputs[1], outputs[2], outputs[3]
    jax.block_until_ready((pre, pro, y_pre, y_pro))
    assert pre.shape == (2, PROJ_DIM) and pro.shape == (2, PROJ_DIM)
    assert y_pre.shape == (2, PROJ_DIM) and y_pro.shape == (2, PROJ_DIM)
    assert all(o is None for o in outputs[4:])
    assert bool(jnp.all(jnp.isfinite(pre))) and bool(jnp.all(jnp.isfinite(pro)))

    h_only = encode_project_forward(params, x, out="h")
    jax.block_until_ready(h_only)
    assert h_only.shape == (2, ENCODER_DIM)
    assert bool(jnp.all(jnp.isfinite(h_only)))
    print("KERNEL_OK")
</pallas_src>

<mosaic_0001>
module attributes {stable_mosaic.version = 11 : i64} {
  func.func @fused_kernel(%arg0: memref<1024x36xf32, #tpu.memory_space<vmem>>, %arg1: memref<4x1024xf32, #tpu.memory_space<vmem>>, %arg2: memref<2x4xf32, #tpu.memory_space<vmem>>, %arg3: memref<4x2xf32, #tpu.memory_space<vmem>>, %arg4: memref<36x128xf32, #tpu.memory_space<vmem>>, %arg5: memref<128x512xf32, #tpu.memory_space<vmem>>, %arg6: memref<512x512xf32, #tpu.memory_space<vmem>>, %arg7: memref<1x512xf32, #tpu.memory_space<vmem>>, %arg8: memref<1x512xf32, #tpu.memory_space<vmem>>, %arg9: memref<512x128xf32, #tpu.memory_space<vmem>>, %arg10: memref<1x128xf32, #tpu.memory_space<vmem>>, %arg11: memref<1x128xf32, #tpu.memory_space<vmem>>, %arg12: memref<128x64xf32, #tpu.memory_space<vmem>>, %arg13: memref<1x64xf32, #tpu.memory_space<vmem>>, %arg14: memref<1x64xf32, #tpu.memory_space<vmem>>, %arg15: memref<64x128xf32, #tpu.memory_space<vmem>>, %arg16: memref<1x128xf32, #tpu.memory_space<vmem>>, %arg17: memref<4x512xf32, #tpu.memory_space<vmem>>, %arg18: memref<4x128xf32, #tpu.memory_space<vmem>>, %arg19: memref<4x128xf32, #tpu.memory_space<vmem>>) attributes {dimension_semantics = [], scalar_prefetch = 0 : i64, scratch_operands = 0 : i64, tpu.core_type = #tpu.core_type<tc>} {
    %c0 = arith.constant 0 : index
    %c0_0 = arith.constant 0 : index
    %0 = vector.load %arg2[%c0, %c0_0] : memref<2x4xf32, #tpu.memory_space<vmem>>, vector<2x4xf32>
    %c0_1 = arith.constant 0 : index
    %c0_2 = arith.constant 0 : index
    %1 = vector.load %arg3[%c0_1, %c0_2] : memref<4x2xf32, #tpu.memory_space<vmem>>, vector<4x2xf32>
    %c0_3 = arith.constant 0 : index
    %c0_4 = arith.constant 0 : index
    %2 = vector.load %arg0[%c0_3, %c0_4] : memref<1024x36xf32, #tpu.memory_space<vmem>>, vector<1024x36xf32>
    %c0_5 = arith.constant 0 : index
    %c0_6 = arith.constant 0 : index
    %3 = vector.load %arg1[%c0_5, %c0_6] : memref<4x1024xf32, #tpu.memory_space<vmem>>, vector<4x1024xf32>
    %c0_7 = arith.constant 0 : index
    %c0_8 = arith.constant 0 : index
    %4 = vector.load %arg4[%c0_7, %c0_8] : memref<36x128xf32, #tpu.memory_space<vmem>>, vector<36x128xf32>
    %c0_9 = arith.constant 0 : index
    %c0_10 = arith.constant 0 : index
    %5 = vector.load %arg5[%c0_9, %c0_10] : memref<128x512xf32, #tpu.memory_space<vmem>>, vector<128x512xf32>
    %cst = arith.constant dense<0.000000e+00> : vector<1024x128xf32>
    %6 = tpu.matmul %2, %4, %cst {dimension_numbers = #tpu.dot_dimension_numbers<[1], [0], [0], [1], [0, 0, 1, 1], [], []>} : vector<1024x36xf32>, vector<36x128xf32>, vector<1024x128xf32> -> vector<1024x128xf32>
    %cst_11 = arith.constant 0.000000e+00 : f32
    %7 = vector.broadcast %cst_11 : f32 to vector<1024x128xf32>
    %8 = arith.maximumf %6, %7 : vector<1024x128xf32>
    %cst_12 = arith.constant dense<0.000000e+00> : vector<4x128xf32>
    %9 = tpu.matmul %3, %8, %cst_12 {dimension_numbers = #tpu.dot_dimension_numbers<[1], [0], [0], [1], [0, 0, 1, 1], [], []>} : vector<4x1024xf32>, vector<1024x128xf32>, vector<4x128xf32> -> vector<4x128xf32>
    %cst_13 = arith.constant dense<0.000000e+00> : vector<4x512xf32>
    %10 = tpu.matmul %9, %5, %cst_13 {dimension_numbers = #tpu.dot_dimension_numbers<[1], [0], [0], [1], [0, 0, 1, 1], [], []>} : vector<4x128xf32>, vector<128x512xf32>, vector<4x512xf32> -> vector<4x512xf32>
    %c0_14 = arith.constant 0 : index
    %c0_15 = arith.constant 0 : index
    %11 = vector.load %arg17[%c0_14, %c0_15] : memref<4x512xf32, #tpu.memory_space<vmem>>, vector<4x512xf32>
    tpu.vector_store %arg17[%c0_14, %c0_15], %10 {strides = array<i32>} : memref<4x512xf32, #tpu.memory_space<vmem>>, vector<4x512xf32>,
    %c0_16 = arith.constant 0 : index
    %c0_17 = arith.constant 0 : index
    %12 = vector.load %arg6[%c0_16, %c0_17] : memref<512x512xf32, #tpu.memory_space<vmem>>, vector<512x512xf32>
    %cst_18 = arith.constant dense<0.000000e+00> : vector<4x512xf32>
    %13 = tpu.matmul %10, %12, %cst_18 {dimension_numbers = #tpu.dot_dimension_numbers<[1], [0], [0], [1], [0, 0, 1, 1], [], []>} : vector<4x512xf32>, vector<512x512xf32>, vector<4x512xf32> -> vector<4x512xf32>
    %c0_19 = arith.constant 0 : index
    %c0_20 = arith.constant 0 : index
    %14 = vector.load %arg7[%c0_19, %c0_20] : memref<1x512xf32, #tpu.memory_space<vmem>>, vector<1x512xf32>
    %c0_21 = arith.constant 0 : index
    %c0_22 = arith.constant 0 : index
    %15 = vector.load %arg8[%c0_21, %c0_22] : memref<1x512xf32, #tpu.memory_space<vmem>>, vector<1x512xf32>
    %cst_23 = arith.constant dense<0.000000e+00> : vector<2x512xf32>
    %16 = tpu.matmul %0, %13, %cst_23 {dimension_numbers = #tpu.dot_dimension_numbers<[1], [0], [0], [1], [0, 0, 1, 1], [], []>} : vector<2x4xf32>, vector<4x512xf32>, vector<2x512xf32> -> vector<2x512xf32>
    %cst_24 = arith.constant dense<0.000000e+00> : vector<4x512xf32>
    %17 = tpu.matmul %1, %16, %cst_24 {dimension_numbers = #tpu.dot_dimension_numbers<[1], [0], [0], [1], [0, 0, 1, 1], [], []>} : vector<4x2xf32>, vector<2x512xf32>, vector<4x512xf32> -> vector<4x512xf32>
    %18 = arith.subf %13, %17 : vector<4x512xf32>
    %19 = arith.mulf %18, %18 : vector<4x512xf32>
    %cst_25 = arith.constant dense<0.000000e+00> : vector<2x512xf32>
    %20 = tpu.matmul %0, %19, %cst_25 {dimension_numbers = #tpu.dot_dimension_numbers<[1], [0], [0], [1], [0, 0, 1, 1], [], []>} : vector<2x4xf32>, vector<4x512xf32>, vector<2x512xf32> -> vector<2x512xf32>
    %cst_26 = arith.constant dense<0.000000e+00> : vector<4x512xf32>
    %21 = tpu.matmul %1, %20, %cst_26 {dimension_numbers = #tpu.dot_dimension_numbers<[1], [0], [0], [1], [0, 0, 1, 1], [], []>} : vector<4x2xf32>, vector<2x512xf32>, vector<4x512xf32> -> vector<4x512xf32>
    %cst_27 = arith.constant 9.99999974E-6 : f32
    %22 = vector.broadcast %cst_27 : f32 to vector<4x512xf32>
    %23 = arith.addf %21, %22 : vector<4x512xf32>
    %24 = math.rsqrt %23 : vector<4x512xf32>
    %25 = arith.mulf %18, %24 : vector<4x512xf32>
    %26 = vector.broadcast %14 : vector<1x512xf32> to vector<4x512xf32>
    %27 = arith.mulf %25, %26 : vector<4x512xf32>
    %28 = vector.broadcast %15 : vector<1x512xf32> to vector<4x512xf32>
    %29 = arith.addf %27, %28 : vector<4x512xf32>
    %cst_28 = arith.constant 0.000000e+00 : f32
    %30 = vector.broadcast %cst_28 : f32 to vector<4x512xf32>
    %31 = arith.maximumf %29, %30 : vector<4x512xf32>
    %c0_29 = arith.constant 0 : index
    %c0_30 = arith.constant 0 : index
    %32 = vector.load %arg9[%c0_29, %c0_30] : memref<512x128xf32, #tpu.memory_space<vmem>>, vector<512x128xf32>
    %cst_31 = arith.constant dense<0.000000e+00> : vector<4x128xf32>
    %33 = tpu.matmul %31, %32, %cst_31 {dimension_numbers = #tpu.dot_dimension_numbers<[1], [0], [0], [1], [0, 0, 1, 1], [], []>} : vector<4x512xf32>, vector<512x128xf32>, vector<4x128xf32> -> vector<4x128xf32>
    %c0_32 = arith.constant 0 : index
    %c0_33 = arith.constant 0 : index
    %34 = vector.load %arg10[%c0_32, %c0_33] : memref<1x128xf32, #tpu.memory_space<vmem>>, vector<1x128xf32>
    %c0_34 = arith.constant 0 : index
    %c0_35 = arith.constant 0 : index
    %35 = vector.load %arg11[%c0_34, %c0_35] : memref<1x128xf32, #tpu.memory_space<vmem>>, vector<1x128xf32>
    %cst_36 = arith.constant dense<0.000000e+00> : vector<2x128xf32>
    %36 = tpu.matmul %0, %33, %cst_36 {dimension_numbers = #tpu.dot_dimension_numbers<[1], [0], [0], [1], [0, 0, 1, 1], [], []>} : vector<2x4xf32>, vector<4x128xf32>, vector<2x128xf32> -> vector<2x128xf32>
    %cst_37 = arith.constant dense<0.000000e+00> : vector<4x128xf32>
    %37 = tpu.matmul %1, %36, %cst_37 {dimension_numbers = #tpu.dot_dimension_numbers<[1], [0], [0], [1], [0, 0, 1, 1], [], []>} : vector<4x2xf32>, vector<2x128xf32>, vector<4x128xf32> -> vector<4x128xf32>
    %38 = arith.subf %33, %37 : vector<4x128xf32>
    %39 = arith.mulf %38, %38 : vector<4x128xf32>
    %cst_38 = arith.constant dense<0.000000e+00> : vector<2x128xf32>
    %40 = tpu.matmul %0, %39, %cst_38 {dimension_numbers = #tpu.dot_dimension_numbers<[1], [0], [0], [1], [0, 0, 1, 1], [], []>} : vector<2x4xf32>, vector<4x128xf32>, vector<2x128xf32> -> vector<2x128xf32>
    %cst_39 = arith.constant dense<0.000000e+00> : vector<4x128xf32>
    %41 = tpu.matmul %1, %40, %cst_39 {dimension_numbers = #tpu.dot_dimension_numbers<[1], [0], [0], [1], [0, 0, 1, 1], [], []>} : vector<4x2xf32>, vector<2x128xf32>, vector<4x128xf32> -> vector<4x128xf32>
    %cst_40 = arith.constant 9.99999974E-6 : f32
    %42 = vector.broadcast %cst_40 : f32 to vector<4x128xf32>
    %43 = arith.addf %41, %42 : vector<4x128xf32>
    %44 = math.rsqrt %43 : vector<4x128xf32>
    %45 = arith.mulf %38, %44 : vector<4x128xf32>
    %46 = vector.broadcast %34 : vector<1x128xf32> to vector<4x128xf32>
    %47 = arith.mulf %45, %46 : vector<4x128xf32>
    %48 = vector.broadcast %35 : vector<1x128xf32> to vector<4x128xf32>
    %49 = arith.addf %47, %48 : vector<4x128xf32>
    %c0_41 = arith.constant 0 : index
    %c0_42 = arith.constant 0 : index
    %50 = vector.load %arg18[%c0_41, %c0_42] : memref<4x128xf32, #tpu.memory_space<vmem>>, vector<4x128xf32>
    tpu.vector_store %arg18[%c0_41, %c0_42], %49 {strides = array<i32>} : memref<4x128xf32, #tpu.memory_space<vmem>>, vector<4x128xf32>,
    %c0_43 = arith.constant 0 : index
    %c0_44 = arith.constant 0 : index
    %51 = vector.load %arg12[%c0_43, %c0_44] : memref<128x64xf32, #tpu.memory_space<vmem>>, vector<128x64xf32>
    %cst_45 = arith.constant dense<0.000000e+00> : vector<4x64xf32>
    %52 = tpu.matmul %49, %51, %cst_45 {dimension_numbers = #tpu.dot_dimension_numbers<[1], [0], [0], [1], [0, 0, 1, 1], [], []>} : vector<4x128xf32>, vector<128x64xf32>, vector<4x64xf32> -> vector<4x64xf32>
    %c0_46 = arith.constant 0 : index
    %c0_47 = arith.constant 0 : index
    %53 = vector.load %arg13[%c0_46, %c0_47] : memref<1x64xf32, #tpu.memory_space<vmem>>, vector<1x64xf32>
    %c0_48 = arith.constant 0 : index
    %c0_49 = arith.constant 0 : index
    %54 = vector.load %arg14[%c0_48, %c0_49] : memref<1x64xf32, #tpu.memory_space<vmem>>, vector<1x64xf32>
    %cst_50 = arith.constant dense<0.000000e+00> : vector<2x64xf32>
    %55 = tpu.matmul %0, %52, %cst_50 {dimension_numbers = #tpu.dot_dimension_numbers<[1], [0], [0], [1], [0, 0, 1, 1], [], []>} : vector<2x4xf32>, vector<4x64xf32>, vector<2x64xf32> -> vector<2x64xf32>
    %cst_51 = arith.constant dense<0.000000e+00> : vector<4x64xf32>
    %56 = tpu.matmul %1, %55, %cst_51 {dimension_numbers = #tpu.dot_dimension_numbers<[1], [0], [0], [1], [0, 0, 1, 1], [], []>} : vector<4x2xf32>, vector<2x64xf32>, vector<4x64xf32> -> vector<4x64xf32>
    %57 = arith.subf %52, %56 : vector<4x64xf32>
    %58 = arith.mulf %57, %57 : vector<4x64xf32>
    %cst_52 = arith.constant dense<0.000000e+00> : vector<2x64xf32>
    %59 = tpu.matmul %0, %58, %cst_52 {dimension_numbers = #tpu.dot_dimension_numbers<[1], [0], [0], [1], [0, 0, 1, 1], [], []>} : vector<2x4xf32>, vector<4x64xf32>, vector<2x64xf32> -> vector<2x64xf32>
    %cst_53 = arith.constant dense<0.000000e+00> : vector<4x64xf32>
    %60 = tpu.matmul %1, %59, %cst_53 {dimension_numbers = #tpu.dot_dimension_numbers<[1], [0], [0], [1], [0, 0, 1, 1], [], []>} : vector<4x2xf32>, vector<2x64xf32>, vector<4x64xf32> -> vector<4x64xf32>
    %cst_54 = arith.constant 9.99999974E-6 : f32
    %61 = vector.broadcast %cst_54 : f32 to vector<4x64xf32>
    %62 = arith.addf %60, %61 : vector<4x64xf32>
    %63 = math.rsqrt %62 : vector<4x64xf32>
    %64 = arith.mulf %57, %63 : vector<4x64xf32>
    %65 = vector.broadcast %53 : vector<1x64xf32> to vector<4x64xf32>
    %66 = arith.mulf %64, %65 : vector<4x64xf32>
    %67 = vector.broadcast %54 : vector<1x64xf32> to vector<4x64xf32>
    %68 = arith.addf %66, %67 : vector<4x64xf32>
    %cst_55 = arith.constant 0.000000e+00 : f32
    %69 = vector.broadcast %cst_55 : f32 to vector<4x64xf32>
    %70 = arith.maximumf %68, %69 : vector<4x64xf32>
    %c0_56 = arith.constant 0 : index
    %c0_57 = arith.constant 0 : index
    %71 = vector.load %arg15[%c0_56, %c0_57] : memref<64x128xf32, #tpu.memory_space<vmem>>, vector<64x128xf32>
    %cst_58 = arith.constant dense<0.000000e+00> : vector<4x128xf32>
    %72 = tpu.matmul %70, %71, %cst_58 {dimension_numbers = #tpu.dot_dimension_numbers<[1], [0], [0], [1], [0, 0, 1, 1], [], []>} : vector<4x64xf32>, vector<64x128xf32>, vector<4x128xf32> -> vector<4x128xf32>
    %c0_59 = arith.constant 0 : index
    %c0_60 = arith.constant 0 : index
    %73 = vector.load %arg16[%c0_59, %c0_60] : memref<1x128xf32, #tpu.memory_space<vmem>>, vector<1x128xf32>
    %74 = vector.broadcast %73 : vector<1x128xf32> to vector<4x128xf32>
    %75 = arith.addf %72, %74 : vector<4x128xf32>
    %c0_61 = arith.constant 0 : index
    %c0_62 = arith.constant 0 : index
    %76 = vector.load %arg19[%c0_61, %c0_62] : memref<4x128xf32, #tpu.memory_space<vmem>>, vector<4x128xf32>
    tpu.vector_store %arg19[%c0_61, %c0_62], %75 {strides = array<i32>} : memref<4x128xf32, #tpu.memory_space<vmem>>, vector<4x128xf32>,
    return
  }
}

</mosaic_0001>

<bundles_post_ra>
// kernel: tpu_custom_call.1
= control target key start
LH: loop header
LB: loop body
LE: loop exit
PB: predicated region body
PF: predicated region fallthrough
CT: control target
= control target key end

     0   :  { %s6742_s0 = inlined_call_operand.vmem [shape: f32[1024,36], index: 0, kind: input, shape index: {}]   ;;  %s6743_s1 = inlined_call_operand.vmem [shape: f32[4,1024], index: 1, kind: input, shape index: {}]   ;;  %s6744_s2 = inlined_call_operand.vmem [shape: f32[2,4], index: 2, kind: input, shape index: {}]   ;;  %s6745_s3 = inlined_call_operand.vmem [shape: f32[4,2], index: 3, kind: input, shape index: {}]   ;;  %s6746_s4 = inlined_call_operand.vmem [shape: f32[36,128], index: 4, kind: input, shape index: {}]   ;;  %s6747_s5 = inlined_call_operand.vmem [shape: f32[128,512], index: 5, kind: input, shape index: {}]   ;;  %s6748_s6 = inlined_call_operand.hbm [shape: f32[512,512], index: 6, kind: input, shape index: {}]   ;;  %s6749_s7 = inlined_call_operand.vmem [shape: f32[1,512], index: 7, kind: input, shape index: {}]   ;;  %s6750_s8 = inlined_call_operand.vmem [shape: f32[1,512], index: 8, kind: input, shape index: {}]   ;;  %s6751_s9 = inlined_call_operand.vmem [shape: f32[512,128], index: 9, kind: input, shape index: {}]   ;;  %s6752_s10 = inlined_call_operand.vmem [shape: f32[1,128], index: 10, kind: input, shape index: {}]   ;;  %s6753_s11 = inlined_call_operand.vmem [shape: f32[1,128], index: 11, kind: input, shape index: {}]   ;;  %s6754_s12 = inlined_call_operand.vmem [shape: f32[128,64], index: 12, kind: input, shape index: {}]   ;;  %s6755_s13 = inlined_call_operand.vmem [shape: f32[1,64], index: 13, kind: input, shape index: {}]   ;;  %s6756_s14 = inlined_call_operand.vmem [shape: f32[1,64], index: 14, kind: input, shape index: {}]   ;;  %s6757_s15 = inlined_call_operand.vmem [shape: f32[64,128], index: 15, kind: input, shape index: {}]   ;;  %s6758_s16 = inlined_call_operand.vmem [shape: f32[1,128], index: 16, kind: input, shape index: {}]   ;;  %s6759_s17 = inlined_call_operand.hbm [shape: f32[4,512], index: 17, kind: output, shape index: {0}]   ;;  %s6760_s18 = inlined_call_operand.hbm [shape: f32[4,128], index: 18, kind: output, shape index: {1}]   ;;  %s6761_s19 = inlined_call_operand.hbm [shape: f32[4,128], index: 19, kind: output, shape index: {2}]  }
   0x1   :  { %6764 = sst [smem:[#allocation12_spill]] %s6742_s0 }
   0x2   :  { %6765 = sst [smem:[#allocation13_spill]] %s6743_s1 }
   0x3   :  { %6766 = sst [smem:[#allocation14_spill]] %s6744_s2 }
   0x4   :  { %6767 = sst [smem:[#allocation15_spill]] %s6745_s3 }
   0x5   :  { %25 = vsyncpa [#allocation3], 0 }
   0x6   :  { %26 = vsyncpa [#allocation4], 0 }
   0x7   :  { %27 = vsyncpa [#allocation7], 0  ;;  %s5195_s0 = smov [#allocation2]  }
   0x8   :  { %s45_s30 = sshll.u32 %s5195_s0, 4  ;;  %s46_s30 = int_to_ptr.vmem [resolvable:$true] %s45_s30 }
   0x9   :  { %s5117_s20 = scalar_lea.vmem %s46_s30, 32768  ;;  %p5122_p1 = scmp.lt.s32.totalorder %s46_s30, %s46_s30 }
   0xa   :  { %p5118_p0 = scmp.ne.s32.totalorder %s46_s30, %s5117_s20  ;;  %p5123_p2 = scmp.lt.s32.totalorder %s5117_s20, %s5117_s20 }
   0xc   :  { %p5124_p3 = por %p5123_p2, %p5122_p1 }
   0xe   :  { %p5125_p4 = pnand %p5124_p3, %p5118_p0 }
  0x10   :  { %5128 = shalt.err (!%p5125_p4)
}
  0x11   :  { %s5196_s21 = smov 512   ;;  %s5197_s1 = smov 32  }
  0x12   :  { %51 = dma.hbm_to_vmem [thread:$0]  %s6748_s6, 32768, %s46_s30, [#allocation3], %s5196_s21, %s5196_s21, %s5197_s1  }
  0x13   :  { %5189 = dma.done.wait [#allocation3], 32768  }
  0x14   :  { %5190 = vsyncadd [#allocation3], 4294934528  ;;  %vm663_vm0 = vcmask 1043456   ;;  %vm278_vm1 = vcmask 293888   ;;  %v213_v0 = vld [vmem:[%s6746_s4 + $0x20] sm:$0xf] }
  0x15   :  { %v212_v1 = vld [vmem:[%s6746_s4 + $0x18] sm:$0xff]  ;;  %4789 = vmatprep.subr.msk.mxu0 %vm663_vm0, %v213_v0  ;;  %s6768_s28 = sld [smem:[#allocation12_spill]]  ;;  %v211_v3 = vld [vmem:[%s6746_s4 + $0x10] sm:$0xff]  ;;  %v210_v4 = vld [vmem:[%s6746_s4 + $0x8] sm:$0xff]  ;;  %vm2486_vm2 = vcmask 31744   ;;  %vm2648_vm3 = vcmask 1041408  }
  0x16   :  { %4790 = vmatpush3.msk.msra.mxu0 %vm663_vm0, %v213_v0  ;;  %v209_v5 = vld [vmem:[%s6746_s4] sm:$0xff]  ;;  %s6769_s2 = sld [smem:[#allocation13_spill]]  ;;  %vm2644_vm4 = vcmask 15360   ;;  %vm5199_vm5 = vmmov 0   ;;  %vm4112_vm6 = vcmask 523264  }
  0x17   :  { %4791 = vmatprep.subr.mxu0 %v212_v1  ;;  %s6770_s24 = sld [smem:[#allocation14_spill]] }
  0x18   :  { %4792 = vmatpush3.msra.mxu0 %v212_v1  ;;  %s6771_s4 = sld [smem:[#allocation15_spill]] }
  0x19   :  { %4793 = vmatprep.subr.mxu0 %v211_v3 }
  0x1a   :  { %4794 = vmatpush3.msra.mxu0 %v211_v3 }
  0x1b   :  { %v77_v2 = vld [vmem:[%s6768_s28] sm:$0xff]  ;;  %4795 = vmatprep.subr.mxu0 %v210_v4  ;;  %v78_v6 = vld [vmem:[%s6768_s28 + $0x8] sm:$0xff]  ;;  %v79_v7 = vld [vmem:[%s6768_s28 + $0x10] sm:$0xff] }
  0x1c   :  { %4799 = vmatprep.mubr.msk.f32.mxu0 %vm278_vm1, %v77_v2  ;;  %4796 = vmatpush3.msra.mxu0 %v210_v4  ;;  %v80_v8 = vld [vmem:[%s6768_s28 + $0x18] sm:$0xff]  ;;  %v81_v9 = vld [vmem:[%s6768_s28 + $0x20] sm:$0xff]  ;;  %v82_v10 = vld [vmem:[%s6768_s28 + $0x28] sm:$0xff] }
  0x1d   :  { %4797 = vmatprep.subr.mxu0 %v209_v5  ;;  %v83_v11 = vld [vmem:[%s6768_s28 + $0x30] sm:$0xff]  ;;  %v84_v12 = vld [vmem:[%s6768_s28 + $0x38] sm:$0xff]  ;;  %v85_v13 = vld [vmem:[%s6768_s28 + $0x40] sm:$0xff] }
  0x1e   :  { %4798 = vmatpush3.msra.mxu0 %v209_v5  ;;  %v86_v14 = vld [vmem:[%s6768_s28 + $0x48] sm:$0xff]  ;;  %v87_v15 = vld [vmem:[%s6768_s28 + $0x50] sm:$0xff]  ;;  %v88_v16 = vld [vmem:[%s6768_s28 + $0x58] sm:$0xff] }
  0x1f   :  { %4800 = vmatmul.mubr.msk.f32.vlgmr.msra.gmra.mxu0 %vm278_vm1, %v78_v6  ;;  %v89_v17 = vld [vmem:[%s6768_s28 + $0x60] sm:$0xff]  ;;  %v90_v18 = vld [vmem:[%s6768_s28 + $0x68] sm:$0xff]  ;;  %v91_v19 = vld [vmem:[%s6768_s28 + $0x70] sm:$0xff] }
  0x20   :  { %4802 = vmatprep.mubr.msk.f32.mxu0 %vm278_vm1, %v79_v7  ;;  %v92_v20 = vld [vmem:[%s6768_s28 + $0x78] sm:$0xff]  ;;  %v93_v21 = vld [vmem:[%s6768_s28 + $0x80] sm:$0xff]  ;;  %v94_v22 = vld [vmem:[%s6768_s28 + $0x88] sm:$0xff] }
  0x21   :  { %v95_v23 = vld [vmem:[%s6768_s28 + $0x90] sm:$0xff]  ;;  %v96_v24 = vld [vmem:[%s6768_s28 + $0x98] sm:$0xff]  ;;  %v97_v25 = vld [vmem:[%s6768_s28 + $0xa0] sm:$0xff] }
  0x22   :  { %v98_v26 = vld [vmem:[%s6768_s28 + $0xa8] sm:$0xff]  ;;  %v99_v27 = vld [vmem:[%s6768_s28 + $0xb0] sm:$0xff]  ;;  %v100_v28 = vld [vmem:[%s6768_s28 + $0xb8] sm:$0xff] }
  0x23   :  { %4803 = vmatmul.mubr.msk.f32.gmra.mxu0 %vm278_vm1, %v80_v8  ;;  %v101_v29 = vld [vmem:[%s6768_s28 + $0xc0] sm:$0xff]  ;;  %v102_v30 = vld [vmem:[%s6768_s28 + $0xc8] sm:$0xff]  ;;  %v103_v31 = vld [vmem:[%s6768_s28 + $0xd0] sm:$0xff] }
  0x24   :  { %4805 = vmatprep.mubr.msk.f32.mxu0 %vm278_vm1, %v81_v9  ;;  %v104_v32 = vld [vmem:[%s6768_s28 + $0xd8] sm:$0xff]  ;;  %v105_v33 = vld [vmem:[%s6768_s28 + $0xe0] sm:$0xff]  ;;  %v106_v34 = vld [vmem:[%s6768_s28 + $0xe8] sm:$0xff] }
  0x25   :  { %v107_v35 = vld [vmem:[%s6768_s28 + $0xf0] sm:$0xff]  ;;  %v108_v36 = vld [vmem:[%s6768_s28 + $0xf8] sm:$0xff]  ;;  %v109_v37 = vld [vmem:[%s6768_s28 + $0x100] sm:$0xff] }
  0x26   :  { %v110_v38 = vld [vmem:[%s6768_s28 + $0x108] sm:$0xff]  ;;  %v111_v39 = vld [vmem:[%s6768_s28 + $0x110] sm:$0xff]  ;;  %v112_v40 = vld [vmem:[%s6768_s28 + $0x118] sm:$0xff] }
  0x27   :  { %4806 = vmatmul.mubr.msk.f32.gmra.mxu0 %vm278_vm1, %v82_v10  ;;  %v113_v41 = vld [vmem:[%s6768_s28 + $0x120] sm:$0xff]  ;;  %v114_v42 = vld [vmem:[%s6768_s28 + $0x128] sm:$0xff]  ;;  %v115_v43 = vld [vmem:[%s6768_s28 + $0x130] sm:$0xff] }
  0x28   :  { %4808 = vmatprep.mubr.msk.f32.mxu0 %vm278_vm1, %v83_v11  ;;  %v116_v44 = vld [vmem:[%s6768_s28 + $0x138] sm:$0xff]  ;;  %v117_v45 = vld [vmem:[%s6768_s28 + $0x140] sm:$0xff]  ;;  %v118_v46 = vld [vmem:[%s6768_s28 + $0x148] sm:$0xff] }
  0x29   :  { %v119_v47 = vld [vmem:[%s6768_s28 + $0x150] sm:$0xff]  ;;  %v120_v48 = vld [vmem:[%s6768_s28 + $0x158] sm:$0xff]  ;;  %v121_v49 = vld [vmem:[%s6768_s28 + $0x160] sm:$0xff] }
  0x2a   :  { %v122_v50 = vld [vmem:[%s6768_s28 + $0x168] sm:$0xff]  ;;  %v123_v51 = vld [vmem:[%s6768_s28 + $0x170] sm:$0xff]  ;;  %v124_v52 = vld [vmem:[%s6768_s28 + $0x178] sm:$0xff] }
  0x2b   :  { %4809 = vmatmul.mubr.msk.f32.gmra.mxu0 %vm278_vm1, %v84_v12  ;;  %v125_v53 = vld [vmem:[%s6768_s28 + $0x180] sm:$0xff]  ;;  %v126_v54 = vld [vmem:[%s6768_s28 + $0x188] sm:$0xff]  ;;  %v127_v55 = vld [vmem:[%s6768_s28 + $0x190] sm:$0xff] }
  0x2c   :  { %4811 = vmatprep.mubr.msk.f32.mxu0 %vm278_vm1, %v85_v13  ;;  %v128_v56 = vld [vmem:[%s6768_s28 + $0x198] sm:$0xff]  ;;  %v129_v57 = vld [vmem:[%s6768_s28 + $0x1a0] sm:$0xff]  ;;  %v130_v58 = vld [vmem:[%s6768_s28 + $0x1a8] sm:$0xff] }
  0x2d   :  { %v131_v59 = vld [vmem:[%s6768_s28 + $0x1b0] sm:$0xff]  ;;  %v132_v60 = vld [vmem:[%s6768_s28 + $0x1b8] sm:$0xff]  ;;  %v133_v61 = vld [vmem:[%s6768_s28 + $0x1c0] sm:$0xff] }
  0x2e   :  { %v134_v62 = vld [vmem:[%s6768_s28 + $0x1c8] sm:$0xff]  ;;  %v135_v63 = vld [vmem:[%s6768_s28 + $0x1d0] sm:$0xff]  ;;  %v136_v0 = vld [vmem:[%s6768_s28 + $0x1d8] sm:$0xff] }
  0x2f   :  { %4812 = vmatmul.mubr.msk.f32.gmra.mxu0 %vm278_vm1, %v86_v14  ;;  %v137_v1 = vld [vmem:[%s6768_s28 + $0x1e0] sm:$0xff]  ;;  %v138_v2 = vld [vmem:[%s6768_s28 + $0x1e8] sm:$0xff]  ;;  %v139_v3 = vld [vmem:[%s6768_s28 + $0x1f0] sm:$0xff] }
  0x30   :  { %4814 = vmatprep.mubr.msk.f32.mxu0 %vm278_vm1, %v87_v15  ;;  %v140_v4 = vld [vmem:[%s6768_s28 + $0x1f8] sm:$0xff]  ;;  %v141_v5 = vld [vmem:[%s6768_s28 + $0x200] sm:$0xff]  ;;  %v142_v6 = vld [vmem:[%s6768_s28 + $0x208] sm:$0xff] }
  0x31   :  { %v143_v7 = vld [vmem:[%s6768_s28 + $0x210] sm:$0xff]  ;;  %v144_v8 = vld [vmem:[%s6768_s28 + $0x218] sm:$0xff]  ;;  %v145_v9 = vld [vmem:[%s6768_s28 + $0x220] sm:$0xff] }
  0x32   :  { %v146_v10 = vld [vmem:[%s6768_s28 + $0x228] sm:$0xff]  ;;  %v147_v11 = vld [vmem:[%s6768_s28 + $0x230] sm:$0xff]  ;;  %v148_v12 = vld [vmem:[%s6768_s28 + $0x238] sm:$0xff] }
  0x33   :  { %4815 = vmatmul.mubr.msk.f32.gmra.mxu0 %vm278_vm1, %v88_v16  ;;  %v149_v13 = vld [vmem:[%s6768_s28 + $0x240] sm:$0xff]  ;;  %v150_v14 = vld [vmem:[%s6768_s28 + $0x248] sm:$0xff]  ;;  %v151_v15 = vld [vmem:[%s6768_s28 + $0x250] sm:$0xff] }
  0x34   :  { %4817 = vmatprep.mubr.msk.f32.mxu0 %vm278_vm1, %v89_v17  ;;  %v152_v16 = vld [vmem:[%s6768_s28 + $0x258] sm:$0xff]  ;;  %v153_v17 = vld [vmem:[%s6768_s28 + $0x260] sm:$0xff] }
  0x37   :  { %4818 = vmatmul.mubr.msk.f32.gmra.mxu0 %vm278_vm1, %v90_v18  ;;  %v154_v18 = vld [vmem:[%s6768_s28 + $0x268] sm:$0xff] }
  0x38   :  { %4820 = vmatprep.mubr.msk.f32.mxu0 %vm278_vm1, %v91_v19  ;;  %v155_v19 = vld [vmem:[%s6768_s28 + $0x270] sm:$0xff] }
  0x3b   :  { %4821 = vmatmul.mubr.msk.f32.gmra.mxu0 %vm278_vm1, %v92_v20  ;;  %v156_v20 = vld [vmem:[%s6768_s28 + $0x278] sm:$0xff] }
  0x3c   :  { %4823 = vmatprep.mubr.msk.f32.mxu0 %vm278_vm1, %v93_v21  ;;  %v157_v21 = vld [vmem:[%s6768_s28 + $0x280] sm:$0xff] }
  0x3f   :  { %4824 = vmatmul.mubr.msk.f32.gmra.mxu0 %vm278_vm1, %v94_v22  ;;  %v158_v22 = vld [vmem:[%s6768_s28 + $0x288] sm:$0xff] }
  0x40   :  { %4826 = vmatprep.mubr.msk.f32.mxu0 %vm278_vm1, %v95_v23  ;;  %v159_v23 = vld [vmem:[%s6768_s28 + $0x290] sm:$0xff] }
  0x43   :  { %4827 = vmatmul.mubr.msk.f32.gmra.mxu0 %vm278_vm1, %v96_v24  ;;  %v160_v24 = vld [vmem:[%s6768_s28 + $0x298] sm:$0xff] }
  0x44   :  { %4829 = vmatprep.mubr.msk.f32.mxu0 %vm278_vm1, %v97_v25  ;;  %v161_v25 = vld [vmem:[%s6768_s28 + $0x2a0] sm:$0xff] }
  0x47   :  { %4830 = vmatmul.mubr.msk.f32.gmra.mxu0 %vm278_vm1, %v98_v26  ;;  %v162_v26 = vld [vmem:[%s6768_s28 + $0x2a8] sm:$0xff] }
  0x48   :  { %4832 = vmatprep.mubr.msk.f32.mxu0 %vm278_vm1, %v99_v27  ;;  %v163_v27 = vld [vmem:[%s6768_s28 + $0x2b0] sm:$0xff] }
  0x4b   :  { %4833 = vmatmul.mubr.msk.f32.gmra.mxu0 %vm278_vm1, %v100_v28  ;;  %v164_v28 = vld [vmem:[%s6768_s28 + $0x2b8] sm:$0xff] }
  0x4c   :  { %4835 = vmatprep.mubr.msk.f32.mxu0 %vm278_vm1, %v101_v29  ;;  %v165_v29 = vld [vmem:[%s6768_s28 + $0x2c0] sm:$0xff] }
  0x4f   :  { %4836 = vmatmul.mubr.msk.f32.gmra.mxu0 %vm278_vm1, %v102_v30  ;;  %v166_v30 = vld [vmem:[%s6768_s28 + $0x2c8] sm:$0xff] }
  0x50   :  { %4838 = vmatprep.mubr.msk.f32.mxu0 %vm278_vm1, %v103_v31  ;;  %v167_v31 = vld [vmem:[%s6768_s28 + $0x2d0] sm:$0xff] }
  0x53   :  { %4839 = vmatmul.mubr.msk.f32.gmra.mxu0 %vm278_vm1, %v104_v32  ;;  %v168_v32 = vld [vmem:[%s6768_s28 + $0x2d8] sm:$0xff] }
  0x54   :  { %4841 = vmatprep.mubr.msk.f32.mxu0 %vm278_vm1, %v105_v33  ;;  %v169_v33 = vld [vmem:[%s6768_s28 + $0x2e0] sm:$0xff] }
  0x57   :  { %4842 = vmatmul.mubr.msk.f32.gmra.mxu0 %vm278_vm1, %v106_v34  ;;  %v170_v34 = vld [vmem:[%s6768_s28 + $0x2e8] sm:$0xff] }
  0x58   :  { %4844 = vmatprep.mubr.msk.f32.mxu0 %vm278_vm1, %v107_v35  ;;  %v171_v35 = vld [vmem:[%s6768_s28 + $0x2f0] sm:$0xff] }
  0x5b   :  { %4845 = vmatmul.mubr.msk.f32.gmra.mxu0 %vm278_vm1, %v108_v36  ;;  %v172_v36 = vld [vmem:[%s6768_s28 + $0x2f8] sm:$0xff] }
  0x5c   :  { %4847 = vmatprep.mubr.msk.f32.mxu0 %vm278_vm1, %v109_v37  ;;  %v173_v37 = vld [vmem:[%s6768_s28 + $0x300] sm:$0xff] }
  0x5f   :  { %4848 = vmatmul.mubr.msk.f32.gmra.mxu0 %vm278_vm1, %v110_v38  ;;  %v5713_v38 = vld [vmem:[%s6769_s2] sm:$0xff] }
  0x60   :  { %4850 = vmatprep.mubr.msk.f32.mxu0 %vm278_vm1, %v111_v39  ;;  %v174_v39 = vld [vmem:[%s6768_s28 + $0x308] sm:$0xff] }
  0x63   :  { %4851 = vmatmul.mubr.msk.f32.gmra.mxu0 %vm278_vm1, %v112_v40  ;;  %v1504_v40 = vcombine.high %v5713_v38, %v5713_v38 }
  0x64   :  { %4853 = vmatprep.mubr.msk.f32.mxu0 %vm278_vm1, %v113_v41  ;;  %v175_v41 = vld [vmem:[%s6768_s28 + $0x310] sm:$0xff] }
  0x65   :  { %1576 = vmatprep.mubr.f32.mxu1 %v1504_v40 }
  0x67   :  { %4854 = vmatmul.mubr.msk.f32.gmra.mxu0 %vm278_vm1, %v114_v42 }
  0x68   :  { %4856 = vmatprep.mubr.msk.f32.mxu0 %vm278_vm1, %v115_v43  ;;  %v176_v43 = vld [vmem:[%s6768_s28 + $0x318] sm:$0xff] }
  0x6b   :  { %4857 = vmatmul.mubr.msk.f32.gmra.mxu0 %vm278_vm1, %v116_v44 }
  0x6c   :  { %4859 = vmatprep.mubr.msk.f32.mxu0 %vm278_vm1, %v117_v45  ;;  %v177_v45 = vld [vmem:[%s6768_s28 + $0x320] sm:$0xff] }
  0x6f   :  { %4860 = vmatmul.mubr.msk.f32.gmra.mxu0 %vm278_vm1, %v118_v46 }
  0x70   :  { %4862 = vmatprep.mubr.msk.f32.mxu0 %vm278_vm1, %v119_v47  ;;  %v178_v47 = vld [vmem:[%s6768_s28 + $0x328] sm:$0xff] }
  0x73   :  { %4863 = vmatmul.mubr.msk.f32.gmra.mxu0 %vm278_vm1, %v120_v48 }
  0x74   :  { %4865 = vmatprep.mubr.msk.f32.mxu0 %vm278_vm1, %v121_v49  ;;  %v179_v49 = vld [vmem:[%s6768_s28 + $0x330] sm:$0xff] }
  0x77   :  { %4866 = vmatmul.mubr.msk.f32.gmra.mxu0 %vm278_vm1, %v122_v50 }
  0x78   :  { %4868 = vmatprep.mubr.msk.f32.mxu0 %vm278_vm1, %v123_v51  ;;  %v180_v51 = vld [vmem:[%s6768_s28 + $0x338] sm:$0xff] }
  0x7b   :  { %4869 = vmatmul.mubr.msk.f32.gmra.mxu0 %vm278_vm1, %v124_v52 }
  0x7c   :  { %4871 = vmatprep.mubr.msk.f32.mxu0 %vm278_vm1, %v125_v53  ;;  %v181_v53 = vld [vmem:[%s6768_s28 + $0x340] sm:$0xff] }
  0x7f   :  { %4872 = vmatmul.mubr.msk.f32.gmra.mxu0 %vm278_vm1, %v126_v54 }
  0x80   :  { %4874 = vmatprep.mubr.msk.f32.mxu0 %vm278_vm1, %v127_v55  ;;  %v182_v55 = vld [vmem:[%s6768_s28 + $0x348] sm:$0xff] }
  0x83   :  { %4875 = vmatmul.mubr.msk.f32.gmra.mxu0 %vm278_vm1, %v128_v56 }
  0x84   :  { %4877 = vmatprep.mubr.msk.f32.mxu0 %vm278_vm1, %v129_v57  ;;  %v183_v57 = vld [vmem:[%s6768_s28 + $0x350] sm:$0xff] }
  0x87   :  { %4878 = vmatmul.mubr.msk.f32.gmra.mxu0 %vm278_vm1, %v130_v58 }
  0x88   :  { %4880 = vmatprep.mubr.msk.f32.mxu0 %vm278_vm1, %v131_v59  ;;  %v184_v59 = vld [vmem:[%s6768_s28 + $0x358] sm:$0xff] }
  0x8b   :  { %4881 = vmatmul.mubr.msk.f32.gmra.mxu0 %vm278_vm1, %v132_v60 }
  0x8c   :  { %4883 = vmatprep.mubr.msk.f32.mxu0 %vm278_vm1, %v133_v61  ;;  %v185_v61 = vld [vmem:[%s6768_s28 + $0x360] sm:$0xff] }
  0x8f   :  { %4884 = vmatmul.mubr.msk.f32.gmra.mxu0 %vm278_vm1, %v134_v62 }
  0x90   :  { %4886 = vmatprep.mubr.msk.f32.mxu0 %vm278_vm1, %v135_v63  ;;  %v186_v63 = vld [vmem:[%s6768_s28 + $0x368] sm:$0xff] }
  0x93   :  { %4887 = vmatmul.mubr.msk.f32.gmra.mxu0 %vm278_vm1, %v136_v0 }
  0x94   :  { %4889 = vmatprep.mubr.msk.f32.mxu0 %vm278_vm1, %v137_v1  ;;  %v187_v1 = vld [vmem:[%s6768_s28 + $0x370] sm:$0xff] }
  0x97   :  { %4890 = vmatmul.mubr.msk.f32.gmra.mxu0 %vm278_vm1, %v138_v2 }
  0x98   :  { %4892 = vmatprep.mubr.msk.f32.mxu0 %vm278_vm1, %v139_v3  ;;  %v188_v3 = vld [vmem:[%s6768_s28 + $0x378] sm:$0xff] }
  0x9b   :  { %4893 = vmatmul.mubr.msk.f32.gmra.mxu0 %vm278_vm1, %v140_v4 }
  0x9c   :  { %4895 = vmatprep.mubr.msk.f32.mxu0 %vm278_vm1, %v141_v5  ;;  %v189_v5 = vld [vmem:[%s6768_s28 + $0x380] sm:$0xff] }
  0x9f   :  { %4896 = vmatmul.mubr.msk.f32.gmra.mxu0 %vm278_vm1, %v142_v6 }
  0xa0   :  { %4898 = vmatprep.mubr.msk.f32.mxu0 %vm278_vm1, %v143_v7  ;;  %v190_v7 = vld [vmem:[%s6768_s28 + $0x388] sm:$0xff] }
  0xa3   :  { %4899 = vmatmul.mubr.msk.f32.gmra.mxu0 %vm278_vm1, %v144_v8 }
  0xa4   :  { %4901 = vmatprep.mubr.msk.f32.mxu0 %vm278_vm1, %v145_v9  ;;  %v191_v9 = vld [vmem:[%s6768_s28 + $0x390] sm:$0xff] }
  0xa7   :  { %4902 = vmatmul.mubr.msk.f32.gmra.mxu0 %vm278_vm1, %v146_v10 }
  0xa8   :  { %4904 = vmatprep.mubr.msk.f32.mxu0 %vm278_vm1, %v147_v11  ;;  %v192_v11 = vld [vmem:[%s6768_s28 + $0x398] sm:$0xff] }
  0xab   :  { %4905 = vmatmul.mubr.msk.f32.gmra.mxu0 %vm278_vm1, %v148_v12 }
  0xac   :  { %4907 = vmatprep.mubr.msk.f32.mxu0 %vm278_vm1, %v149_v13  ;;  %v193_v13 = vld [vmem:[%s6768_s28 + $0x3a0] sm:$0xff] }
  0xaf   :  { %4908 = vmatmul.mubr.msk.f32.gmra.mxu0 %vm278_vm1, %v150_v14 }
  0xb0   :  { %4910 = vmatprep.mubr.msk.f32.mxu0 %vm278_vm1, %v151_v15  ;;  %v194_v15 = vld [vmem:[%s6768_s28 + $0x3a8] sm:$0xff] }
  0xb3   :  { %4911 = vmatmul.mubr.msk.f32.gmra.mxu0 %vm278_vm1, %v152_v16 }
  0xb4   :  { %4913 = vmatprep.mubr.msk.f32.mxu0 %vm278_vm1, %v153_v17  ;;  %v195_v17 = vld [vmem:[%s6768_s28 + $0x3b0] sm:$0xff] }
  0xb7   :  { %4914 = vmatmul.mubr.msk.f32.gmra.mxu0 %vm278_vm1, %v154_v18 }
  0xb8   :  { %4916 = vmatprep.mubr.msk.f32.mxu0 %vm278_vm1, %v155_v19  ;;  %v196_v19 = vld [vmem:[%s6768_s28 + $0x3b8] sm:$0xff] }
  0xbb   :  { %4917 = vmatmul.mubr.msk.f32.gmra.mxu0 %vm278_vm1, %v156_v20 }
  0xbc   :  { %4919 = vmatprep.mubr.msk.f32.mxu0 %vm278_vm1, %v157_v21  ;;  %v197_v21 = vld [vmem:[%s6768_s28 + $0x3c0] sm:$0xff] }
  0xbf   :  { %4920 = vmatmul.mubr.msk.f32.gmra.mxu0 %vm278_vm1, %v158_v22 }
  0xc0   :  { %4922 = vmatprep.mubr.msk.f32.mxu0 %vm278_vm1, %v159_v23  ;;  %v198_v23 = vld [vmem:[%s6768_s28 + $0x3c8] sm:$0xff] }
  0xc3   :  { %4923 = vmatmul.mubr.msk.f32.gmra.mxu0 %vm278_vm1, %v160_v24 }
  0xc4   :  { %4925 = vmatprep.mubr.msk.f32.mxu0 %vm278_vm1, %v161_v25  ;;  %v199_v25 = vld [vmem:[%s6768_s28 + $0x3d0] sm:$0xff] }
  0xc7   :  { %4926 = vmatmul.mubr.msk.f32.gmra.mxu0 %vm278_vm1, %v162_v26 }
  0xc8   :  { %4928 = vmatprep.mubr.msk.f32.mxu0 %vm278_vm1, %v163_v27  ;;  %v200_v27 = vld [vmem:[%s6768_s28 + $0x3d8] sm:$0xff] }
  0xcb   :  { %4929 = vmatmul.mubr.msk.f32.gmra.mxu0 %vm278_vm1, %v164_v28 }
  0xcc   :  { %4931 = vmatprep.mubr.msk.f32.mxu0 %vm278_vm1, %v165_v29  ;;  %v201_v29 = vld [vmem:[%s6768_s28 + $0x3e0] sm:$0xff] }
  0xcf   :  { %4932 = vmatmul.mubr.msk.f32.gmra.mxu0 %vm278_vm1, %v166_v30 }
  0xd0   :  { %4934 = vmatprep.mubr.msk.f32.mxu0 %vm278_vm1, %v167_v31  ;;  %v202_v31 = vld [vmem:[%s6768_s28 + $0x3e8] sm:$0xff] }
  0xd3   :  { %4935 = vmatmul.mubr.msk.f32.gmra.mxu0 %vm278_vm1, %v168_v32 }
  0xd4   :  { %4937 = vmatprep.mubr.msk.f32.mxu0 %vm278_vm1, %v169_v33  ;;  %v203_v33 = vld [vmem:[%s6768_s28 + $0x3f0] sm:$0xff] }
  0xd7   :  { %4938 = vmatmul.mubr.msk.f32.gmra.mxu0 %vm278_vm1, %v170_v34 }
  0xd8   :  { %4940 = vmatprep.mubr.msk.f32.mxu0 %vm278_vm1, %v171_v35  ;;  %v204_v35 = vld [vmem:[%s6768_s28 + $0x3f8] sm:$0xff]  ;;  %s5201_s28 = smov [#allocation5]  }
  0xd9   :  { %s4193_s25 = sshll.u32 %s5201_s28, 4  ;;  %s4194_s25 = int_to_ptr.vmem [resolvable:$true] %s4193_s25 }
  0xdb   :  { %4941 = vmatmul.mubr.msk.f32.gmra.mxu0 %vm278_vm1, %v172_v36 }
  0xdc   :  { %4943 = vmatprep.mubr.msk.f32.mxu0 %vm278_vm1, %v173_v37 }
  0xdf   :  { %v5724_v42 = vpop.f32.mrf.mxu0  ;;  %4944 = vmatmul.mubr.msk.f32.gmra.mxu0 %vm278_vm1, %v174_v39 }
  0xe0   :  { %4946 = vmatprep.mubr.msk.f32.mxu0 %vm278_vm1, %v175_v41 }
  0xe1   :  { %v5731_v44 = vpop.f32.mrf.mxu0 }
  0xe3   :  { %v5736_v46 = vpop.f32.mrf.mxu0  ;;  %4947 = vmatmul.mubr.msk.f32.gmra.mxu0 %vm278_vm1, %v176_v43 }
  0xe4   :  { %4949 = vmatprep.mubr.msk.f32.mxu0 %vm278_vm1, %v177_v45 }
  0xe5   :  { %v5743_v48 = vpop.f32.mrf.mxu0 }
  0xe7   :  { %v5748_v50 = vpop.f32.mrf.mxu0  ;;  %4950 = vmatmul.mubr.msk.f32.gmra.mxu0 %vm278_vm1, %v178_v47 }
  0xe8   :  { %4952 = vmatprep.mubr.msk.f32.mxu0 %vm278_vm1, %v179_v49 }
  0xe9   :  { %v5755_v52 = vpop.f32.mrf.mxu0 }
  0xeb   :  { %v5760_v54 = vpop.f32.mrf.mxu0  ;;  %4953 = vmatmul.mubr.msk.f32.gmra.mxu0 %vm278_vm1, %v180_v51 }
  0xec   :  { %4955 = vmatprep.mubr.msk.f32.mxu0 %vm278_vm1, %v181_v53 }
  0xed   :  { %v5767_v56 = vpop.f32.mrf.mxu0 }
  0xef   :  { %v5772_v58 = vpop.f32.mrf.mxu0  ;;  %4956 = vmatmul.mubr.msk.f32.gmra.mxu0 %vm278_vm1, %v182_v55 }
  0xf0   :  { %4958 = vmatprep.mubr.msk.f32.mxu0 %vm278_vm1, %v183_v57 }
  0xf1   :  { %v5779_v60 = vpop.f32.mrf.mxu0 }
  0xf3   :  { %v5784_v62 = vpop.f32.mrf.mxu0  ;;  %4959 = vmatmul.mubr.msk.f32.gmra.mxu0 %vm278_vm1, %v184_v59 }
  0xf4   :  { %4961 = vmatprep.mubr.msk.f32.mxu0 %vm278_vm1, %v185_v61 }
  0xf5   :  { %v5791_v0 = vpop.f32.mrf.mxu0 }
  0xf7   :  { %v5796_v2 = vpop.f32.mrf.mxu0  ;;  %4962 = vmatmul.mubr.msk.f32.gmra.mxu0 %vm278_vm1, %v186_v63  ;;  %v1383_v63 = vmax.f32 %v5784_v62, 0.0  ;;  %v1380_v62 = vmax.f32 %v5779_v60, 0.0 }
  0xf8   :  { %4964 = vmatprep.mubr.msk.f32.mxu0 %vm278_vm1, %v187_v1  ;;  %v1385_v51 = vmax.f32 %v5796_v2, 0.0  ;;  %v1382_v2 = vmax.f32 %v5791_v0, 0.0  ;;  %v1379_v0 = vmax.f32 %v5760_v54, 0.0 }
  0xf9   :  { %v5803_v4 = vpop.f32.mrf.mxu0 }
  0xfa   :  { %v1384_v57 = vmax.f32 %v5803_v4, 0.0  ;;  %v1381_v4 = vmax.f32 %v5772_v58, 0.0 }
  0xfb   :  { %v4822_v6 = vpop.f32.mrf.mxu0  ;;  %4965 = vmatmul.mubr.msk.f32.gmra.mxu0 %vm278_vm1, %v188_v3 }
  0xfc   :  { %4967 = vmatprep.mubr.msk.f32.mxu0 %vm278_vm1, %v189_v5  ;;  %v1387_v40 = vmax.f32 %v4822_v6, 0.0 }
  0xfd   :  { %v803_v8 = vpop.f32.mrf.mxu0 }
  0xfe   :  { %v1386_v45 = vmax.f32 %v803_v8, 0.0 }
  0xff   :  { %v5816_v10 = vpop.f32.mrf.mxu0  ;;  %4968 = vmatmul.mubr.msk.f32.gmra.mxu0 %vm278_vm1, %v190_v7 }
 0x100   :  { %4970 = vmatprep.mubr.msk.f32.mxu0 %vm278_vm1, %v191_v9 }
 0x101   :  { %v5823_v12 = vpop.f32.mrf.mxu0 }
 0x103   :  { %v5828_v14 = vpop.f32.mrf.mxu0  ;;  %4971 = vmatmul.mubr.msk.f32.gmra.mxu0 %vm278_vm1, %v192_v11 }
 0x104   :  { %4973 = vmatprep.mubr.msk.f32.mxu0 %vm278_vm1, %v193_v13 }
 0x105   :  { %v5835_v16 = vpop.f32.mrf.mxu0 }
 0x107   :  { %v5840_v18 = vpop.f32.mrf.mxu0  ;;  %4974 = vmatmul.mubr.msk.f32.gmra.mxu0 %vm278_vm1, %v194_v15  ;;  %v1378_v15 = vmax.f32 %v5767_v56, 0.0  ;;  %v1391_v56 = vmax.f32 %v5828_v14, 0.0  ;;  %v5932_v14 = vld [vmem:[%s6769_s2 + $0x8] sm:$0xff] }
 0x108   :  { %4976 = vmatprep.mubr.msk.f32.mxu0 %vm278_vm1, %v195_v17  ;;  %v1393_v60 = vmax.f32 %v5840_v18, 0.0 }
 0x109   :  { %v5847_v20 = vpop.f32.mrf.mxu0 }
 0x10a   :  { %v1392_v54 = vmax.f32 %v5847_v20, 0.0 }
 0x10b   :  { %v5852_v22 = vpop.f32.mrf.mxu0  ;;  %4977 = vmatmul.mubr.msk.f32.gmra.mxu0 %vm278_vm1, %v196_v19  ;;  %v1377_v19 = vmax.f32 %v5748_v50, 0.0  ;;  %v1390_v50 = vmax.f32 %v5835_v16, 0.0  ;;  %v1372_v16 = vmax.f32 %v5731_v44, 0.0 }
 0x10c   :  { %4979 = vmatprep.mubr.msk.f32.mxu0 %vm278_vm1, %v197_v21  ;;  %v1395_v11 = vmax.f32 %v5852_v22, 0.0  ;;  %v1376_v22 = vmax.f32 %v5755_v52, 0.0  ;;  %v1389_v52 = vmax.f32 %v5816_v10, 0.0  ;;  %v1505_v10 = vcombine.high %v5932_v14, %v5932_v14 }
 0x10d   :  { %v5859_v24 = vpop.f32.mrf.mxu0 }
 0x10e   :  { %v1394_v58 = vmax.f32 %v5859_v24, 0.0  ;;  %v1375_v24 = vmax.f32 %v5736_v46, 0.0  ;;  %v1373_v46 = vmax.f32 %v5724_v42, 0.0 }
 0x10f   :  { %v4837_v26 = vpop.f32.mrf.mxu0  ;;  %4980 = vmatmul.mubr.msk.f32.gmra.mxu0 %vm278_vm1, %v198_v23 }
 0x110   :  { %4982 = vmatprep.mubr.msk.f32.mxu0 %vm278_vm1, %v199_v25  ;;  %v1397_v6 = vmax.f32 %v4837_v26, 0.0  ;;  %v1374_v25 = vmax.f32 %v5743_v48, 0.0 }
 0x111   :  { %v853_v28 = vpop.f32.mrf.mxu0 }
 0x112   :  { %v1396_v8 = vmax.f32 %v853_v28, 0.0 }
 0x113   :  { %v4840_v30 = vpop.f32.mrf.mxu0  ;;  %4983 = vmatmul.mubr.msk.f32.gmra.mxu0 %vm278_vm1, %v200_v27  ;;  %v1388_v27 = vmax.f32 %v5823_v12, 0.0 }
 0x114   :  { %4985 = vmatprep.mubr.msk.f32.mxu0 %vm278_vm1, %v201_v29  ;;  %v1399_v61 = vmax.f32 %v4840_v30, 0.0 }
 0x115   :  { %v863_v32 = vpop.f32.mrf.mxu0 }
 0x116   :  { %v1398_v3 = vmax.f32 %v863_v32, 0.0 }
 0x117   :  { %v4843_v34 = vpop.f32.mrf.mxu0  ;;  %4986 = vmatmul.mubr.msk.f32.gmra.mxu0 %vm278_vm1, %v202_v31 }
 0x118   :  { %4988 = vmatprep.mubr.msk.f32.mxu0 %vm278_vm1, %v203_v33  ;;  %v1401_v49 = vmax.f32 %v4843_v34, 0.0 }
 0x119   :  { %v873_v36 = vpop.f32.mrf.mxu0 }
 0x11a   :  { %v1400_v55 = vmax.f32 %v873_v36, 0.0 }
 0x11b   :  { %v4846_v37 = vpop.f32.mrf.mxu0  ;;  %4989 = vmatmul.mubr.msk.f32.gmra.mxu0 %vm278_vm1, %v204_v35 }
 0x11c   :  { %v1403_v39 = vmax.f32 %v4846_v37, 0.0 }
 0x11d   :  { %v883_v41 = vpop.f32.mrf.mxu0 }
 0x11e   :  { %v1402_v43 = vmax.f32 %v883_v41, 0.0  ;;  %4537 = vmatprep.subr.mxu1 %v1403_v39 }
 0x11f   :  { %v5886_v47 = vpop.f32.mrf.mxu0  ;;  %4538 = vmatpush3.msra.mxu1 %v1387_v40 }
 0x120   :  { %4539 = vmatprep.subr.mxu1 %v1402_v43 }
 0x121   :  { %v5889_v53 = vpop.f32.mrf.mxu0  ;;  %4540 = vmatpush3.msra.mxu1 %v1386_v45 }
 0x122   :  { %4541 = vmatprep.subr.mxu1 %v1401_v49 }
 0x123   :  { %v5892_v59 = vpop.f32.mrf.mxu0  ;;  %4542 = vmatpush3.msra.mxu1 %v1385_v51 }
 0x124   :  { %4543 = vmatprep.subr.mxu1 %v1400_v55 }
 0x125   :  { %v5895_v1 = vpop.f32.mrf.mxu0  ;;  %4544 = vmatpush3.msra.mxu1 %v1384_v57 }
 0x126   :  { %4545 = vmatprep.subr.mxu1 %v1399_v61 }
 0x127   :  { %v5898_v5 = vpop.f32.mrf.mxu0  ;;  %4546 = vmatpush3.msra.mxu1 %v1383_v63 }
 0x128   :  { %4547 = vmatprep.subr.mxu1 %v1398_v3 }
 0x129   :  { %v5901_v7 = vpop.f32.mrf.mxu0  ;;  %4548 = vmatpush3.msra.mxu1 %v1382_v2 }
 0x12a   :  { %4549 = vmatprep.subr.mxu1 %v1397_v6 }
 0x12b   :  { %v5904_v9 = vpop.f32.mrf.mxu0  ;;  %4550 = vmatpush3.msra.mxu1 %v1381_v4 }
 0x12c   :  { %4551 = vmatprep.subr.mxu1 %v1396_v8 }
 0x12d   :  { %v5908_v13 = vpop.f32.mrf.mxu0  ;;  %4552 = vmatpush3.msra.mxu1 %v1380_v62 }
 0x12e   :  { %4553 = vmatprep.subr.mxu1 %v1395_v11 }
 0x12f   :  { %v5912_v17 = vpop.f32.mrf.mxu0  ;;  %4554 = vmatpush3.msra.mxu1 %v1379_v0 }
 0x130   :  { %4555 = vmatprep.subr.mxu1 %v1394_v58 }
 0x131   :  { %v5916_v21 = vpop.f32.mrf.mxu0  ;;  %4556 = vmatpush3.msra.mxu1 %v1378_v15 }
 0x132   :  { %4557 = vmatprep.subr.mxu1 %v1393_v60  ;;  %v1413_v60 = vmax.f32 %v5912_v17, 0.0  ;;  %v1410_v17 = vmax.f32 %v5908_v13, 0.0 }
 0x133   :  { %v5920_v23 = vpop.f32.mrf.mxu0  ;;  %4558 = vmatpush3.msra.mxu1 %v1377_v19 }
 0x134   :  { %4559 = vmatprep.subr.mxu1 %v1392_v54  ;;  %v1415_v8 = vmax.f32 %v5920_v23, 0.0 }
 0x135   :  { %v5924_v18 = vpop.f32.mrf.mxu0  ;;  %4560 = vmatpush3.msra.mxu1 %v1376_v22  ;;  %v1412_v22 = vmax.f32 %v5916_v21, 0.0  ;;  %v1409_v21 = vmax.f32 %v5898_v5, 0.0 }
 0x136   :  { %4561 = vmatprep.subr.mxu1 %v1391_v56  ;;  %v1414_v0 = vmax.f32 %v5924_v18, 0.0 }
 0x137   :  { %v4867_v20 = vpop.f32.mrf.mxu0  ;;  %4562 = vmatpush3.msra.mxu1 %v1375_v24  ;;  %v1411_v24 = vmax.f32 %v5904_v9, 0.0 }
 0x138   :  { %4563 = vmatprep.subr.mxu1 %v1390_v50  ;;  %v1417_v61 = vmax.f32 %v4867_v20, 0.0 }
 0x139   :  { %v953_v26 = vpop.f32.mrf.mxu0  ;;  %4564 = vmatpush3.msra.mxu1 %v1374_v25 }
 0x13a   :  { %4565 = vmatprep.subr.mxu1 %v1389_v52  ;;  %v1416_v2 = vmax.f32 %v953_v26, 0.0 }
 0x13b   :  { %v4870_v48 = vpop.f32.mrf.mxu0  ;;  %4566 = vmatpush3.msra.mxu1 %v1373_v46  ;;  %v1408_v46 = vmax.f32 %v5901_v7, 0.0 }
 0x13c   :  { %4567 = vmatprep.subr.mxu1 %v1388_v27  ;;  %v1419_v43 = vmax.f32 %v4870_v48, 0.0  ;;  %v1407_v27 = vmax.f32 %v5892_v59, 0.0  ;;  %v1406_v48 = vmax.f32 %v5895_v1, 0.0  ;;  %v1405_v59 = vmax.f32 %v5886_v47, 0.0 }
 0x13d   :  { %v963_v28 = vpop.f32.mrf.mxu0  ;;  %4568 = vmatpush3.msra.mxu1 %v1372_v16 }
 0x13e   :  { %1577 = vmatmul.mubr.f32.vlgmr.msra.gmra.mxu1 %v5713_v38  ;;  %v1418_v51 = vmax.f32 %v963_v28, 0.0  ;;  %v5994_v28 = vld [vmem:[%s6769_s2 + $0x10] sm:$0xff] }
 0x13f   :  { %v5940_v29 = vpop.f32.mrf.mxu0  ;;  %1646 = vmatprep.mubr.f32.mxu1 %v1505_v10 }
 0x140   :  { %v1421_v7 = vmax.f32 %v5940_v29, 0.0  ;;  %v1506_v29 = vcombine.high %v5994_v28, %v5994_v28 }
 0x141   :  { %v5942_v42 = vpop.f32.mrf.mxu0 }
 0x143   :  { %v5944_v30 = vpop.f32.mrf.mxu0 }
 0x144   :  { %v1423_v13 = vmax.f32 %v5944_v30, 0.0 }
 0x145   :  { %v5946_v12 = vpop.f32.mrf.mxu0 }
 0x146   :  { %v1422_v5 = vmax.f32 %v5946_v12, 0.0  ;;  %v1404_v12 = vmax.f32 %v5889_v53, 0.0 }
 0x147   :  { %v5948_v44 = vpop.f32.mrf.mxu0 }
 0x148   :  { %v1425_v20 = vmax.f32 %v5948_v44, 0.0  ;;  %v1420_v44 = vmax.f32 %v5942_v42, 0.0 }
 0x149   :  { %v5950_v31 = vpop.f32.mrf.mxu0 }
 0x14a   :  { %v1424_v9 = vmax.f32 %v5950_v31, 0.0 }
 0x14b   :  { %v4882_v32 = vpop.f32.mrf.mxu0 }
 0x14c   :  { %v1427_v56 = vmax.f32 %v4882_v32, 0.0 }
 0x14d   :  { %v1003_v33 = vpop.f32.mrf.mxu0 }
 0x14e   :  { %v1426_v50 = vmax.f32 %v1003_v33, 0.0 }
 0x14f   :  { %v4885_v34 = vpop.f32.mrf.mxu0 }
 0x150   :  { %v1429_v15 = vmax.f32 %v4885_v34, 0.0 }
 0x151   :  { %v1013_v35 = vpop.f32.mrf.mxu0 }
 0x152   :  { %v1428_v54 = vmax.f32 %v1013_v35, 0.0 }
 0x153   :  { %v4888_v36 = vpop.f32.mrf.mxu0 }
 0x154   :  { %v1431_v4 = vmax.f32 %v4888_v36, 0.0 }
 0x155   :  { %v1023_v37 = vpop.f32.mrf.mxu0 }
 0x156   :  { %v1430_v11 = vmax.f32 %v1023_v37, 0.0 }
 0x157   :  { %v4891_v38 = vpop.f32.mrf.mxu0 }
 0x158   :  { %v1433_v57 = vmax.f32 %v4891_v38, 0.0 }
 0x159   :  { %v1033_v39 = vpop.f32.mrf.mxu0 }
 0x15a   :  { %v1432_v3 = vmax.f32 %v1033_v39, 0.0 }
 0x15b   :  { %v4894_v40 = vpop.f32.mrf.mxu0 }
 0x15c   :  { %v1435_v41 = vmax.f32 %v4894_v40, 0.0 }
 0x15d   :  { %v1043_v45 = vpop.f32.mrf.mxu0 }
 0x15e   :  { %v1434_v49 = vmax.f32 %v1043_v45, 0.0  ;;  %4572 = vmatprep.subr.mxu1 %v1435_v41 }
 0x15f   :  { %v5952_v55 = vpop.f32.mrf.mxu0  ;;  %4573 = vmatpush3.msra.mxu1 %v1419_v43 }
 0x160   :  { %4574 = vmatprep.subr.mxu1 %v1434_v49 }
 0x161   :  { %v5954_v63 = vpop.f32.mrf.mxu0  ;;  %4575 = vmatpush3.msra.mxu1 %v1418_v51 }
 0x162   :  { %4576 = vmatprep.subr.mxu1 %v1433_v57 }
 0x163   :  { %v5956_v6 = vpop.f32.mrf.mxu0  ;;  %4577 = vmatpush3.msra.mxu1 %v1417_v61 }
 0x164   :  { %4578 = vmatprep.subr.mxu1 %v1432_v3 }
 0x165   :  { %v5959_v62 = vpop.f32.mrf.mxu0  ;;  %4579 = vmatpush3.msra.mxu1 %v1416_v2 }
 0x166   :  { %4580 = vmatprep.subr.mxu1 %v1431_v4 }
 0x167   :  { %v5962_v58 = vpop.f32.mrf.mxu0  ;;  %4581 = vmatpush3.msra.mxu1 %v1415_v8 }
 0x168   :  { %4582 = vmatprep.subr.mxu1 %v1430_v11 }
 0x169   :  { %v5965_v19 = vpop.f32.mrf.mxu0  ;;  %4583 = vmatpush3.msra.mxu1 %v1414_v0 }
 0x16a   :  { %4584 = vmatprep.subr.mxu1 %v1429_v15 }
 0x16b   :  { %v5968_v23 = vpop.f32.mrf.mxu0  ;;  %4585 = vmatpush3.msra.mxu1 %v1413_v60 }
 0x16c   :  { %4586 = vmatprep.subr.mxu1 %v1428_v54 }
 0x16d   :  { %v5971_v18 = vpop.f32.mrf.mxu0  ;;  %4587 = vmatpush3.msra.mxu1 %v1412_v22 }
 0x16e   :  { %4588 = vmatprep.subr.mxu1 %v1427_v56 }
 0x16f   :  { %v5974_v25 = vpop.f32.mrf.mxu0  ;;  %4589 = vmatpush3.msra.mxu1 %v1411_v24 }
 0x170   :  { %4590 = vmatprep.subr.mxu1 %v1426_v50 }
 0x171   :  { %v5978_v52 = vpop.f32.mrf.mxu0  ;;  %4591 = vmatpush3.msra.mxu1 %v1410_v17 }
 0x172   :  { %4592 = vmatprep.subr.mxu1 %v1425_v20  ;;  %v1445_v20 = vmax.f32 %v5974_v25, 0.0  ;;  %v1442_v25 = vmax.f32 %v5971_v18, 0.0 }
 0x173   :  { %v5982_v26 = vpop.f32.mrf.mxu0  ;;  %4593 = vmatpush3.msra.mxu1 %v1409_v21 }
 0x174   :  { %4594 = vmatprep.subr.mxu1 %v1424_v9  ;;  %v1447_v54 = vmax.f32 %v5982_v26, 0.0 }
 0x175   :  { %v5986_v16 = vpop.f32.mrf.mxu0  ;;  %4595 = vmatpush3.msra.mxu1 %v1408_v46  ;;  %v1444_v46 = vmax.f32 %v5978_v52, 0.0  ;;  %v1441_v52 = vmax.f32 %v5962_v58, 0.0 }
 0x176   :  { %4596 = vmatprep.subr.mxu1 %v1423_v13  ;;  %v1446_v24 = vmax.f32 %v5986_v16, 0.0 }
 0x177   :  { %v4915_v10 = vpop.f32.mrf.mxu0  ;;  %4597 = vmatpush3.msra.mxu1 %v1407_v27  ;;  %v1443_v27 = vmax.f32 %v5968_v23, 0.0 }
 0x178   :  { %4598 = vmatprep.subr.mxu1 %v1422_v5  ;;  %v1449_v4 = vmax.f32 %v4915_v10, 0.0 }
 0x179   :  { %v1113_v30 = vpop.f32.mrf.mxu0  ;;  %4599 = vmatpush3.msra.mxu1 %v1406_v48 }
 0x17a   :  { %4600 = vmatprep.subr.mxu1 %v1421_v7  ;;  %v1448_v0 = vmax.f32 %v1113_v30, 0.0 }
 0x17b   :  { %v4918_v1 = vpop.f32.mrf.mxu0  ;;  %4601 = vmatpush3.msra.mxu1 %v1405_v59  ;;  %v1440_v59 = vmax.f32 %v5965_v19, 0.0 }
 0x17c   :  { %4602 = vmatprep.subr.mxu1 %v1420_v44  ;;  %v1451_v49 = vmax.f32 %v4918_v1, 0.0  ;;  %v1439_v44 = vmax.f32 %v5956_v6, 0.0  ;;  %v1438_v1 = vmax.f32 %v5959_v62, 0.0  ;;  %v1437_v6 = vmax.f32 %v5952_v55, 0.0 }
 0x17d   :  { %v1123_v31 = vpop.f32.mrf.mxu0  ;;  %4603 = vmatpush3.msra.mxu1 %v1404_v12 }
 0x17e   :  { %1647 = vmatmul.mubr.f32.vlgmr.msra.gmra.mxu1 %v5932_v14  ;;  %v1450_v61 = vmax.f32 %v1123_v31, 0.0  ;;  %v6056_v31 = vld [vmem:[%s6769_s2 + $0x18] sm:$0xff] }
 0x17f   :  { %v6002_v32 = vpop.f32.mrf.mxu0  ;;  %1716 = vmatprep.mubr.f32.mxu1 %v1506_v29 }
 0x180   :  { %v1453_v19 = vmax.f32 %v6002_v32, 0.0  ;;  %v1507_v32 = vcombine.high %v6056_v31, %v6056_v31 }
 0x181   :  { %v6004_v47 = vpop.f32.mrf.mxu0 }
 0x183   :  { %v6006_v33 = vpop.f32.mrf.mxu0 }
 0x184   :  { %v1455_v18 = vmax.f32 %v6006_v33, 0.0 }
 0x185   :  { %v6008_v42 = vpop.f32.mrf.mxu0 }
 0x186   :  { %v1454_v58 = vmax.f32 %v6008_v42, 0.0  ;;  %v1436_v42 = vmax.f32 %v5954_v63, 0.0 }
 0x187   :  { %v6010_v53 = vpop.f32.mrf.mxu0 }
 0x188   :  { %v1457_v10 = vmax.f32 %v6010_v53, 0.0  ;;  %v1452_v53 = vmax.f32 %v6004_v47, 0.0 }
 0x189   :  { %v6012_v34 = vpop.f32.mrf.mxu0 }
 0x18a   :  { %v1456_v23 = vmax.f32 %v6012_v34, 0.0 }
 0x18b   :  { %v4930_v35 = vpop.f32.mrf.mxu0 }
 0x18c   :  { %v1459_v13 = vmax.f32 %v4930_v35, 0.0 }
 0x18d   :  { %v1163_v36 = vpop.f32.mrf.mxu0 }
 0x18e   :  { %v1458_v5 = vmax.f32 %v1163_v36, 0.0 }
 0x18f   :  { %v4933_v37 = vpop.f32.mrf.mxu0 }
 0x190   :  { %v1461_v17 = vmax.f32 %v4933_v37, 0.0 }
 0x191   :  { %v1173_v38 = vpop.f32.mrf.mxu0 }
 0x192   :  { %v1460_v9 = vmax.f32 %v1173_v38, 0.0 }
 0x193   :  { %v4936_v39 = vpop.f32.mrf.mxu0 }
 0x194   :  { %v1463_v60 = vmax.f32 %v4936_v39, 0.0 }
 0x195   :  { %v1183_v40 = vpop.f32.mrf.mxu0 }
 0x196   :  { %v1462_v56 = vmax.f32 %v1183_v40, 0.0 }
 0x197   :  { %v4939_v14 = vpop.f32.mrf.mxu0 }
 0x198   :  { %v1465_v2 = vmax.f32 %v4939_v14, 0.0 }
 0x199   :  { %v1193_v41 = vpop.f32.mrf.mxu0 }
 0x19a   :  { %v1464_v11 = vmax.f32 %v1193_v41, 0.0 }
 0x19b   :  { %v4942_v43 = vpop.f32.mrf.mxu0 }
 0x19c   :  { %v1467_v45 = vmax.f32 %v4942_v43, 0.0 }
 0x19d   :  { %v1203_v51 = vpop.f32.mrf.mxu0 }
 0x19e   :  { %v1466_v57 = vmax.f32 %v1203_v51, 0.0  ;;  %4607 = vmatprep.subr.mxu1 %v1467_v45 }
 0x19f   :  { %v6014_v3 = vpop.f32.mrf.mxu0  ;;  %4608 = vmatpush3.msra.mxu1 %v1451_v49 }
 0x1a0   :  { %4609 = vmatprep.subr.mxu1 %v1466_v57 }
 0x1a1   :  { %v6016_v8 = vpop.f32.mrf.mxu0  ;;  %4610 = vmatpush3.msra.mxu1 %v1450_v61 }
 0x1a2   :  { %4611 = vmatprep.subr.mxu1 %v1465_v2 }
 0x1a3   :  { %v6018_v15 = vpop.f32.mrf.mxu0  ;;  %4612 = vmatpush3.msra.mxu1 %v1449_v4 }
 0x1a4   :  { %4613 = vmatprep.subr.mxu1 %v1464_v11 }
 0x1a5   :  { %v6021_v22 = vpop.f32.mrf.mxu0  ;;  %4614 = vmatpush3.msra.mxu1 %v1448_v0 }
 0x1a6   :  { %4615 = vmatprep.subr.mxu1 %v1463_v60 }
 0x1a7   :  { %v6024_v50 = vpop.f32.mrf.mxu0  ;;  %4616 = vmatpush3.msra.mxu1 %v1447_v54 }
 0x1a8   :  { %4617 = vmatprep.subr.mxu1 %v1462_v56 }
 0x1a9   :  { %v6027_v21 = vpop.f32.mrf.mxu0  ;;  %4618 = vmatpush3.msra.mxu1 %v1446_v24 }
 0x1aa   :  { %4619 = vmatprep.subr.mxu1 %v1461_v17 }
 0x1ab   :  { %v6030_v26 = vpop.f32.mrf.mxu0  ;;  %4620 = vmatpush3.msra.mxu1 %v1445_v20 }
 0x1ac   :  { %4621 = vmatprep.subr.mxu1 %v1460_v9 }
 0x1ad   :  { %v6033_v16 = vpop.f32.mrf.mxu0  ;;  %4622 = vmatpush3.msra.mxu1 %v1444_v46 }
 0x1ae   :  { %4623 = vmatprep.subr.mxu1 %v1459_v13 }
 0x1af   :  { %v6036_v48 = vpop.f32.mrf.mxu0  ;;  %4624 = vmatpush3.msra.mxu1 %v1443_v27 }
 0x1b0   :  { %4625 = vmatprep.subr.mxu1 %v1458_v5  ;;  %v1477_v46 = vmax.f32 %v6036_v48, 0.0  ;;  %v1473_v48 = vmax.f32 %v6024_v50, 0.0 }
 0x1b1   :  { %v6040_v7 = vpop.f32.mrf.mxu0  ;;  %4626 = vmatpush3.msra.mxu1 %v1442_v25  ;;  %v1475_v25 = vmax.f32 %v6030_v26, 0.0  ;;  %v1471_v26 = vmax.f32 %v6018_v15, 0.0  ;;  %v275_v15 = vld [vmem:[%s6747_s5 + $0x1e8] sm:$0xff] }
 0x1b2   :  { %4627 = vmatprep.subr.mxu1 %v1457_v10  ;;  %v1476_v27 = vmax.f32 %v6040_v7, 0.0  ;;  %v1472_v7 = vmax.f32 %v6027_v21, 0.0 }
 0x1b3   :  { %v6044_v30 = vpop.f32.mrf.mxu0  ;;  %4628 = vmatpush3.msra.mxu1 %v1441_v52  ;;  %v1474_v52 = vmax.f32 %v6033_v16, 0.0  ;;  %v1470_v16 = vmax.f32 %v6021_v22, 0.0  ;;  %v274_v22 = vld [vmem:[%s6747_s5 + $0x1e0] sm:$0xff] }
 0x1b4   :  { %4629 = vmatprep.subr.mxu1 %v1456_v23  ;;  %v1479_v24 = vmax.f32 %v6044_v30, 0.0 }
 0x1b5   :  { %v6048_v12 = vpop.f32.mrf.mxu0  ;;  %4630 = vmatpush3.msra.mxu1 %v1440_v59 }
 0x1b6   :  { %4631 = vmatprep.subr.mxu1 %v1455_v18  ;;  %v1478_v20 = vmax.f32 %v6048_v12, 0.0  ;;  %v1468_v12 = vmax.f32 %v6016_v8, 0.0  ;;  %v270_v8 = vld [vmem:[%s6747_s5 + $0x1c0] sm:$0xff] }
 0x1b7   :  { %v4963_v29 = vpop.f32.mrf.mxu0  ;;  %4632 = vmatpush3.msra.mxu1 %v1439_v44  ;;  %v1469_v44 = vmax.f32 %v6014_v3, 0.0  ;;  %v271_v3 = vld [vmem:[%s6747_s5 + $0x1c8] sm:$0xff] }
 0x1b8   :  { %4633 = vmatprep.subr.mxu1 %v1454_v58  ;;  %v1481_v0 = vmax.f32 %v4963_v29, 0.0  ;;  %v267_v58 = vld [vmem:[%s6747_s5 + $0x1a8] sm:$0xff]  ;;  %v266_v29 = vld [vmem:[%s6747_s5 + $0x1a0] sm:$0xff] }
 0x1b9   :  { %v1273_v33 = vpop.f32.mrf.mxu0  ;;  %4634 = vmatpush3.msra.mxu1 %v1438_v1  ;;  %v2133_v1 = vld [vmem:[#allocation2 + $0x5e8] sm:$0xff] }
 0x1ba   :  { %4635 = vmatprep.subr.mxu1 %v1453_v19  ;;  %v1480_v54 = vmax.f32 %v1273_v33, 0.0  ;;  %2271 = vmatprep.subr.mxu0 %v2133_v1  ;;  %v2132_v19 = vld [vmem:[#allocation2 + $0x5e0] sm:$0xff]  ;;  %v2129_v33 = vld [vmem:[#allocation2 + $0x5c8] sm:$0xff] }
 0x1bb   :  { %v4966_v62 = vpop.f32.mrf.mxu0  ;;  %4636 = vmatpush3.msra.mxu1 %v1437_v6  ;;  %2272 = vmatpush1.msra.mxu0 %v2132_v19  ;;  %v262_v6 = vld [vmem:[%s6747_s5 + $0x180] sm:$0xff] }
 0x1bc   :  { %4637 = vmatprep.subr.mxu1 %v1452_v53  ;;  %v1483_v57 = vmax.f32 %v4966_v62, 0.0  ;;  %v259_v53 = vld [vmem:[%s6747_s5 + $0x168] sm:$0xff]  ;;  %2273 = vmatprep.subr.mxu0 %v2129_v33  ;;  %v258_v62 = vld [vmem:[%s6747_s5 + $0x160] sm:$0xff] }
 0x1bd   :  { %v1283_v34 = vpop.f32.mrf.mxu0  ;;  %4638 = vmatpush3.msra.mxu1 %v1436_v42  ;;  %v2128_v42 = vld [vmem:[#allocation2 + $0x5c0] sm:$0xff]  ;;  %v2181_v33 = vld [vmem:[#allocation2 + $0x768] sm:$0xff] }
 0x1be   :  { %1717 = vmatmul.mubr.f32.vlgmr.msra.gmra.mxu1 %v5994_v28  ;;  %v1482_v4 = vmax.f32 %v1283_v34, 0.0  ;;  %2274 = vmatpush1.msra.mxu0 %v2128_v42  ;;  %v254_v34 = vld [vmem:[%s6747_s5 + $0x140] sm:$0xff]  ;;  %v2177_v42 = vld [vmem:[#allocation2 + $0x748] sm:$0xff] }
 0x1bf   :  { %v6064_v35 = vpop.f32.mrf.mxu0  ;;  %1786 = vmatprep.mubr.f32.mxu1 %v1507_v32  ;;  %v255_v32 = vld [vmem:[%s6747_s5 + $0x148] sm:$0xff]  ;;  %v2192_v1 = vld [vmem:[#allocation2 + $0x7c0] sm:$0xff] }
 0x1c0   :  { %v1485_v50 = vmax.f32 %v6064_v35, 0.0  ;;  %v2125_v35 = vld [vmem:[#allocation2 + $0x5a8] sm:$0xff]  ;;  %v2188_v19 = vld [vmem:[#allocation2 + $0x7a0] sm:$0xff] }
 0x1c1   :  { %v6066_v55 = vpop.f32.mrf.mxu0  ;;  %2275 = vmatprep.subr.mxu0 %v2125_v35  ;;  %v2169_v35 = vld [vmem:[#allocation2 + $0x708] sm:$0xff] }
 0x1c2   :  { %v1484_v21 = vmax.f32 %v6066_v55, 0.0  ;;  %v2124_v55 = vld [vmem:[#allocation2 + $0x5a0] sm:$0xff] }
 0x1c3   :  { %v6068_v36 = vpop.f32.mrf.mxu0  ;;  %2276 = vmatpush1.msra.mxu0 %v2124_v55  ;;  %v2168_v55 = vld [vmem:[#allocation2 + $0x700] sm:$0xff] }
 0x1c4   :  { %v1487_v30 = vmax.f32 %v6068_v36, 0.0  ;;  %v251_v36 = vld [vmem:[%s6747_s5 + $0x128] sm:$0xff] }
 0x1c5   :  { %v6070_v47 = vpop.f32.mrf.mxu0 }
 0x1c6   :  { %v1486_v18 = vmax.f32 %v6070_v47, 0.0  ;;  %v250_v47 = vld [vmem:[%s6747_s5 + $0x120] sm:$0xff] }
 0x1c7   :  { %v4975_v63 = vpop.f32.mrf.mxu0 }
 0x1c8   :  { %v1489_v23 = vmax.f32 %v4975_v63, 0.0  ;;  %v247_v63 = vld [vmem:[%s6747_s5 + $0x108] sm:$0xff] }
 0x1c9   :  { %v1313_v37 = vpop.f32.mrf.mxu0 }
 0x1ca   :  { %v1488_v59 = vmax.f32 %v1313_v37, 0.0  ;;  %v246_v37 = vld [vmem:[%s6747_s5 + $0x100] sm:$0xff] }
 0x1cb   :  { %v4978_v38 = vpop.f32.mrf.mxu0 }
 0x1cc   :  { %v1491_v5 = vmax.f32 %v4978_v38, 0.0  ;;  %v243_v38 = vld [vmem:[%s6747_s5 + $0xe8] sm:$0xff] }
 0x1cd   :  { %v1323_v39 = vpop.f32.mrf.mxu0 }
 0x1ce   :  { %v1490_v10 = vmax.f32 %v1323_v39, 0.0  ;;  %v242_v39 = vld [vmem:[%s6747_s5 + $0xe0] sm:$0xff] }
 0x1cf   :  { %v4981_v40 = vpop.f32.mrf.mxu0 }
 0x1d0   :  { %v1493_v9 = vmax.f32 %v4981_v40, 0.0  ;;  %v239_v40 = vld [vmem:[%s6747_s5 + $0xc8] sm:$0xff] }
 0x1d1   :  { %v1333_v14 = vpop.f32.mrf.mxu0 }
 0x1d2   :  { %v1492_v13 = vmax.f32 %v1333_v14, 0.0  ;;  %v238_v14 = vld [vmem:[%s6747_s5 + $0xc0] sm:$0xff] }
 0x1d3   :  { %v4984_v41 = vpop.f32.mrf.mxu0 }
 0x1d4   :  { %v1495_v56 = vmax.f32 %v4984_v41, 0.0  ;;  %v235_v41 = vld [vmem:[%s6747_s5 + $0xa8] sm:$0xff] }
 0x1d5   :  { %v1343_v43 = vpop.f32.mrf.mxu0 }
 0x1d6   :  { %v1494_v17 = vmax.f32 %v1343_v43, 0.0  ;;  %v234_v43 = vld [vmem:[%s6747_s5 + $0xa0] sm:$0xff] }
 0x1d7   :  { %v4987_v45 = vpop.f32.mrf.mxu0 }
 0x1d8   :  { %v1497_v11 = vmax.f32 %v4987_v45, 0.0  ;;  %v231_v45 = vld [vmem:[%s6747_s5 + $0x88] sm:$0xff] }
 0x1d9   :  { %v1353_v49 = vpop.f32.mrf.mxu0 }
 0x1da   :  { %v1496_v60 = vmax.f32 %v1353_v49, 0.0  ;;  %v230_v49 = vld [vmem:[%s6747_s5 + $0x80] sm:$0xff] }
 0x1db   :  { %v4990_v28 = vpop.f32.mrf.mxu0 }
 0x1dc   :  { %v1499_v51 = vmax.f32 %v4990_v28, 0.0  ;;  %v227_v28 = vld [vmem:[%s6747_s5 + $0x68] sm:$0xff] }
 0x1dd   :  { %v1363_v61 = vpop.f32.mrf.mxu0 }
 0x1de   :  { %v1498_v2 = vmax.f32 %v1363_v61, 0.0  ;;  %4642 = vmatprep.subr.mxu1 %v1499_v51  ;;  %v226_v51 = vld [vmem:[%s6747_s5 + $0x60] sm:$0xff] }
 0x1df   :  { %4643 = vmatpush3.msra.mxu1 %v1483_v57  ;;  %v223_v57 = vld [vmem:[%s6747_s5 + $0x48] sm:$0xff]  ;;  %v222_v61 = vld [vmem:[%s6747_s5 + $0x40] sm:$0xff] }
 0x1e0   :  { %4644 = vmatprep.subr.mxu1 %v1498_v2  ;;  %v219_v2 = vld [vmem:[%s6747_s5 + $0x28] sm:$0xff] }
 0x1e1   :  { %4645 = vmatpush3.msra.mxu1 %v1482_v4  ;;  %v218_v4 = vld [vmem:[%s6747_s5 + $0x20] sm:$0xff] }
 0x1e2   :  { %4646 = vmatprep.subr.mxu1 %v1497_v11  ;;  %v215_v11 = vld [vmem:[%s6747_s5 + $0x8] sm:$0xff] }
 0x1e3   :  { %4647 = vmatpush3.msra.mxu1 %v1481_v0  ;;  %v214_v0 = vld [vmem:[%s6747_s5] sm:$0xff] }
 0x1e4   :  { %4648 = vmatprep.subr.mxu1 %v1496_v60  ;;  %v2121_v60 = vld [vmem:[#allocation2 + $0x588] sm:$0xff] }
 0x1e5   :  { %4649 = vmatpush3.msra.mxu1 %v1480_v54  ;;  %v2120_v54 = vld [vmem:[#allocation2 + $0x580] sm:$0xff]  ;;  %2277 = vmatprep.subr.mxu0 %v2121_v60 }
 0x1e6   :  { %4650 = vmatprep.subr.mxu1 %v1495_v56  ;;  %v277_v56 = vld [vmem:[%s6747_s5 + $0x1f8] sm:$0xff]  ;;  %2278 = vmatpush1.msra.mxu0 %v2120_v54 }
 0x1e7   :  { %4651 = vmatpush3.msra.mxu1 %v1479_v24  ;;  %v5198_v24 = vmov 0.0  }
 0x1e8   :  { %4652 = vmatprep.subr.mxu1 %v1494_v17  ;;  %v2117_v17 = vld [vmem:[#allocation2 + $0x568] sm:$0xff] }
 0x1e9   :  { %4653 = vmatpush3.msra.mxu1 %v1478_v20  ;;  %2279 = vmatprep.subr.mxu0 %v2117_v17  ;;  %v2116_v20 = vld [vmem:[#allocation2 + $0x560] sm:$0xff]  ;;  %v276_v17 = vld [vmem:[%s6747_s5 + $0x1f0] sm:$0xff] }
 0x1ea   :  { %4654 = vmatprep.subr.mxu1 %v1493_v9  ;;  %2280 = vmatpush1.msra.mxu0 %v2116_v20  ;;  %v2113_v9 = vld [vmem:[#allocation2 + $0x548] sm:$0xff]  ;;  %v273_v20 = vld [vmem:[%s6747_s5 + $0x1d8] sm:$0xff] }
 0x1eb   :  { %4655 = vmatpush3.msra.mxu1 %v1477_v46  ;;  %2281 = vmatprep.subr.mxu0 %v2113_v9  ;;  %v2112_v46 = vld [vmem:[#allocation2 + $0x540] sm:$0xff]  ;;  %v272_v9 = vld [vmem:[%s6747_s5 + $0x1d0] sm:$0xff] }
 0x1ec   :  { %4656 = vmatprep.subr.mxu1 %v1492_v13  ;;  %2282 = vmatpush1.msra.mxu0 %v2112_v46  ;;  %v2109_v13 = vld [vmem:[#allocation2 + $0x528] sm:$0xff]  ;;  %v269_v46 = vld [vmem:[%s6747_s5 + $0x1b8] sm:$0xff] }
 0x1ed   :  { %4657 = vmatpush3.msra.mxu1 %v1476_v27  ;;  %2283 = vmatprep.subr.mxu0 %v2109_v13  ;;  %v2108_v27 = vld [vmem:[#allocation2 + $0x520] sm:$0xff]  ;;  %v268_v13 = vld [vmem:[%s6747_s5 + $0x1b0] sm:$0xff] }
 0x1ee   :  { %4658 = vmatprep.subr.mxu1 %v1491_v5  ;;  %2284 = vmatpush1.msra.mxu0 %v2108_v27  ;;  %v2105_v5 = vld [vmem:[#allocation2 + $0x508] sm:$0xff]  ;;  %v265_v27 = vld [vmem:[%s6747_s5 + $0x198] sm:$0xff] }
 0x1ef   :  { %4659 = vmatpush3.msra.mxu1 %v1475_v25  ;;  %2285 = vmatprep.subr.mxu0 %v2105_v5  ;;  %v2104_v25 = vld [vmem:[#allocation2 + $0x500] sm:$0xff]  ;;  %v264_v5 = vld [vmem:[%s6747_s5 + $0x190] sm:$0xff] }
 0x1f0   :  { %4660 = vmatprep.subr.mxu1 %v1490_v10  ;;  %2286 = vmatpush1.msra.mxu0 %v2104_v25  ;;  %v2101_v10 = vld [vmem:[#allocation2 + $0x4e8] sm:$0xff]  ;;  %v261_v25 = vld [vmem:[%s6747_s5 + $0x178] sm:$0xff] }
 0x1f1   :  { %4661 = vmatpush3.msra.mxu1 %v1474_v52  ;;  %v2100_v52 = vld [vmem:[#allocation2 + $0x4e0] sm:$0xff]  ;;  %2287 = vmatprep.subr.mxu0 %v2101_v10  ;;  %v260_v10 = vld [vmem:[%s6747_s5 + $0x170] sm:$0xff] }
 0x1f2   :  { %4662 = vmatprep.subr.mxu1 %v1489_v23  ;;  %v2097_v23 = vld [vmem:[#allocation2 + $0x4c8] sm:$0xff]  ;;  %2288 = vmatpush1.msra.mxu0 %v2100_v52  ;;  %v257_v52 = vld [vmem:[%s6747_s5 + $0x158] sm:$0xff] }
 0x1f3   :  { %4663 = vmatpush3.msra.mxu1 %v1473_v48  ;;  %v2096_v48 = vld [vmem:[#allocation2 + $0x4c0] sm:$0xff]  ;;  %2289 = vmatprep.subr.mxu0 %v2097_v23  ;;  %v256_v23 = vld [vmem:[%s6747_s5 + $0x150] sm:$0xff] }
 0x1f4   :  { %4664 = vmatprep.subr.mxu1 %v1488_v59  ;;  %v2093_v59 = vld [vmem:[#allocation2 + $0x4a8] sm:$0xff]  ;;  %2290 = vmatpush1.msra.mxu0 %v2096_v48  ;;  %v253_v48 = vld [vmem:[%s6747_s5 + $0x138] sm:$0xff] }
 0x1f5   :  { %4665 = vmatpush3.msra.mxu1 %v1472_v7  ;;  %v2092_v7 = vld [vmem:[#allocation2 + $0x4a0] sm:$0xff]  ;;  %2291 = vmatprep.subr.mxu0 %v2093_v59  ;;  %v252_v59 = vld [vmem:[%s6747_s5 + $0x130] sm:$0xff] }
 0x1f6   :  { %4666 = vmatprep.subr.mxu1 %v1487_v30  ;;  %v2089_v30 = vld [vmem:[#allocation2 + $0x488] sm:$0xff]  ;;  %2292 = vmatpush1.msra.mxu0 %v2092_v7  ;;  %v249_v7 = vld [vmem:[%s6747_s5 + $0x118] sm:$0xff] }
 0x1f7   :  { %4667 = vmatpush3.msra.mxu1 %v1471_v26  ;;  %v2088_v26 = vld [vmem:[#allocation2 + $0x480] sm:$0xff]  ;;  %2293 = vmatprep.subr.mxu0 %v2089_v30  ;;  %v248_v30 = vld [vmem:[%s6747_s5 + $0x110] sm:$0xff] }
 0x1f8   :  { %4668 = vmatprep.subr.mxu1 %v1486_v18  ;;  %v2085_v18 = vld [vmem:[#allocation2 + $0x468] sm:$0xff]  ;;  %2294 = vmatpush1.msra.mxu0 %v2088_v26  ;;  %v245_v26 = vld [vmem:[%s6747_s5 + $0xf8] sm:$0xff] }
 0x1f9   :  { %4669 = vmatpush3.msra.mxu1 %v1470_v16  ;;  %v2084_v16 = vld [vmem:[#allocation2 + $0x460] sm:$0xff]  ;;  %2295 = vmatprep.subr.mxu0 %v2085_v18  ;;  %v244_v18 = vld [vmem:[%s6747_s5 + $0xf0] sm:$0xff] }
 0x1fa   :  { %4670 = vmatprep.subr.mxu1 %v1485_v50  ;;  %v2081_v50 = vld [vmem:[#allocation2 + $0x448] sm:$0xff]  ;;  %2296 = vmatpush1.msra.mxu0 %v2084_v16  ;;  %v241_v16 = vld [vmem:[%s6747_s5 + $0xd8] sm:$0xff] }
 0x1fb   :  { %4671 = vmatpush3.msra.mxu1 %v1469_v44  ;;  %v2080_v44 = vld [vmem:[#allocation2 + $0x440] sm:$0xff]  ;;  %2297 = vmatprep.subr.mxu0 %v2081_v50  ;;  %v240_v50 = vld [vmem:[%s6747_s5 + $0xd0] sm:$0xff] }
 0x1fc   :  { %4672 = vmatprep.subr.mxu1 %v1484_v21  ;;  %v2077_v21 = vld [vmem:[#allocation2 + $0x428] sm:$0xff]  ;;  %2298 = vmatpush1.msra.mxu0 %v2080_v44  ;;  %v237_v44 = vld [vmem:[%s6747_s5 + $0xb8] sm:$0xff] }
 0x1fd   :  { %4673 = vmatpush3.msra.mxu1 %v1468_v12  ;;  %v2076_v12 = vld [vmem:[#allocation2 + $0x420] sm:$0xff]  ;;  %2299 = vmatprep.subr.mxu0 %v2077_v21  ;;  %v236_v21 = vld [vmem:[%s6747_s5 + $0xb0] sm:$0xff] }
 0x1fe   :  { %1787 = vmatmul.mubr.f32.vlgmr.msra.gmra.mxu1 %v6056_v31  ;;  %1792 = vmatprep.subr.mxu1 %v275_v15  ;;  %v263_v31 = vld [vmem:[%s6747_s5 + $0x188] sm:$0xff] }
 0x1ff   :  { %1793 = vmatpush1.msra.mxu1 %v274_v22  ;;  %1856 = vmatprep.mubr.f32.mxu1 %v5198_v24  ;;  %v2073_v15 = vld [vmem:[#allocation2 + $0x408] sm:$0xff]  ;;  %v2072_v22 = vld [vmem:[#allocation2 + $0x400] sm:$0xff] }
 0x200   :  { %1794 = vmatprep.subr.mxu1 %v271_v3  ;;  %2300 = vmatpush1.msra.mxu0 %v2076_v12  ;;  %v2197_v3 = vld [vmem:[#allocation2 + $0x7e8] sm:$0xff]  ;;  %v233_v12 = vld [vmem:[%s6747_s5 + $0x98] sm:$0xff] }
 0x201   :  { %1795 = vmatpush1.msra.mxu1 %v270_v8  ;;  %2301 = vmatprep.subr.mxu0 %v2073_v15  ;;  %v2196_v8 = vld [vmem:[#allocation2 + $0x7e0] sm:$0xff]  ;;  %v232_v15 = vld [vmem:[%s6747_s5 + $0x90] sm:$0xff] }
 0x202   :  { %1796 = vmatprep.subr.mxu1 %v267_v58  ;;  %2302 = vmatpush1.msra.mxu0 %v2072_v22  ;;  %v2193_v58 = vld [vmem:[#allocation2 + $0x7c8] sm:$0xff]  ;;  %v229_v22 = vld [vmem:[%s6747_s5 + $0x78] sm:$0xff] }
 0x203   :  { %1797 = vmatpush1.msra.mxu1 %v266_v29  ;;  %2303 = vmatprep.subr.mxu0 %v2197_v3  ;;  %v2189_v29 = vld [vmem:[#allocation2 + $0x7a8] sm:$0xff]  ;;  %v228_v3 = vld [vmem:[%s6747_s5 + $0x70] sm:$0xff] }
 0x204   :  { %1798 = vmatprep.subr.mxu1 %v263_v31  ;;  %2304 = vmatpush2.msra.mxu0 %v2196_v8  ;;  %v2185_v31 = vld [vmem:[#allocation2 + $0x788] sm:$0xff]  ;;  %v225_v8 = vld [vmem:[%s6747_s5 + $0x58] sm:$0xff] }
 0x205   :  { %1799 = vmatpush1.msra.mxu1 %v262_v6  ;;  %2305 = vmatprep.subr.mxu0 %v2193_v58  ;;  %v2184_v6 = vld [vmem:[#allocation2 + $0x780] sm:$0xff]  ;;  %v224_v58 = vld [vmem:[%s6747_s5 + $0x50] sm:$0xff] }
 0x206   :  { %1800 = vmatprep.subr.mxu1 %v259_v53  ;;  %2306 = vmatpush2.msra.mxu0 %v2192_v1  ;;  %v2180_v53 = vld [vmem:[#allocation2 + $0x760] sm:$0xff]  ;;  %v221_v1 = vld [vmem:[%s6747_s5 + $0x38] sm:$0xff] }
 0x207   :  { %1801 = vmatpush1.msra.mxu1 %v258_v62  ;;  %2307 = vmatprep.subr.mxu0 %v2189_v29  ;;  %v2176_v62 = vld [vmem:[#allocation2 + $0x740] sm:$0xff]  ;;  %v220_v29 = vld [vmem:[%s6747_s5 + $0x30] sm:$0xff] }
 0x208   :  { %1802 = vmatprep.subr.mxu1 %v255_v32  ;;  %2308 = vmatpush2.msra.mxu0 %v2188_v19  ;;  %v2173_v32 = vld [vmem:[#allocation2 + $0x728] sm:$0xff]  ;;  %v217_v19 = vld [vmem:[%s6747_s5 + $0x18] sm:$0xff] }
 0x209   :  { %1803 = vmatpush1.msra.mxu1 %v254_v34  ;;  %2309 = vmatprep.subr.mxu0 %v2185_v31  ;;  %v2172_v34 = vld [vmem:[#allocation2 + $0x720] sm:$0xff]  ;;  %v216_v31 = vld [vmem:[%s6747_s5 + $0x10] sm:$0xff] }
 0x20a   :  { %1804 = vmatprep.subr.mxu1 %v251_v36  ;;  %2310 = vmatpush2.msra.mxu0 %v2184_v6  ;;  %v2165_v36 = vld [vmem:[#allocation2 + $0x6e8] sm:$0xff] }
 0x20b   :  { %1805 = vmatpush1.msra.mxu1 %v250_v47  ;;  %2311 = vmatprep.subr.mxu0 %v2181_v33  ;;  %v2164_v47 = vld [vmem:[#allocation2 + $0x6e0] sm:$0xff]  ;;  %v2005_v6 = vld [vmem:[#allocation2 + $0x1e8] sm:$0xff] }
 0x20c   :  { %1806 = vmatprep.subr.mxu1 %v247_v63  ;;  %2312 = vmatpush2.msra.mxu0 %v2180_v53  ;;  %v2161_v63 = vld [vmem:[#allocation2 + $0x6c8] sm:$0xff]  ;;  %v2004_v33 = vld [vmem:[#allocation2 + $0x1e0] sm:$0xff] }
 0x20d   :  { %1807 = vmatpush1.msra.mxu1 %v246_v37  ;;  %2313 = vmatprep.subr.mxu0 %v2177_v42  ;;  %v2160_v37 = vld [vmem:[#allocation2 + $0x6c0] sm:$0xff]  ;;  %v2001_v53 = vld [vmem:[#allocation2 + $0x1c8] sm:$0xff] }
 0x20e   :  { %1808 = vmatprep.subr.mxu1 %v243_v38  ;;  %2314 = vmatpush2.msra.mxu0 %v2176_v62  ;;  %v2157_v38 = vld [vmem:[#allocation2 + $0x6a8] sm:$0xff]  ;;  %v2000_v42 = vld [vmem:[#allocation2 + $0x1c0] sm:$0xff] }
 0x20f   :  { %1809 = vmatpush1.msra.mxu1 %v242_v39  ;;  %2315 = vmatprep.subr.mxu0 %v2173_v32  ;;  %v2156_v39 = vld [vmem:[#allocation2 + $0x6a0] sm:$0xff]  ;;  %v1997_v62 = vld [vmem:[#allocation2 + $0x1a8] sm:$0xff] }
 0x210   :  { %1810 = vmatprep.subr.mxu1 %v239_v40  ;;  %2316 = vmatpush2.msra.mxu0 %v2172_v34  ;;  %v2153_v40 = vld [vmem:[#allocation2 + $0x688] sm:$0xff]  ;;  %v1996_v32 = vld [vmem:[#allocation2 + $0x1a0] sm:$0xff] }
 0x211   :  { %1811 = vmatpush1.msra.mxu1 %v238_v14  ;;  %2317 = vmatprep.subr.mxu0 %v2169_v35  ;;  %v2152_v14 = vld [vmem:[#allocation2 + $0x680] sm:$0xff]  ;;  %v1993_v34 = vld [vmem:[#allocation2 + $0x188] sm:$0xff] }
 0x212   :  { %1812 = vmatprep.subr.mxu1 %v235_v41  ;;  %2318 = vmatpush2.msra.mxu0 %v2168_v55  ;;  %v4569_v41 = vpop.f32.mrf.mxu1  ;;  %v1992_v35 = vld [vmem:[#allocation2 + $0x180] sm:$0xff]  ;;  %v1989_v55 = vld [vmem:[#allocation2 + $0x168] sm:$0xff] }
 0x213   :  { %1813 = vmatpush1.msra.mxu1 %v234_v43  ;;  %2319 = vmatprep.subr.mxu0 %v2165_v36  ;;  %v1988_v36 = vld [vmem:[#allocation2 + $0x160] sm:$0xff] }
 0x214   :  { %1814 = vmatprep.subr.mxu1 %v231_v45  ;;  %2320 = vmatpush2.msra.mxu0 %v2164_v47  ;;  %v4570_v43 = vpop.f32.mrf.mxu1  ;;  %v1985_v47 = vld [vmem:[#allocation2 + $0x148] sm:$0xff] }
 0x215   :  { %1815 = vmatpush1.msra.mxu1 %v230_v49  ;;  %2321 = vmatprep.subr.mxu0 %v2161_v63  ;;  %v1984_v63 = vld [vmem:[#allocation2 + $0x140] sm:$0xff] }
 0x216   :  { %1816 = vmatprep.subr.mxu1 %v227_v28  ;;  %2322 = vmatpush2.msra.mxu0 %v2160_v37  ;;  %v1981_v37 = vld [vmem:[#allocation2 + $0x128] sm:$0xff] }
 0x217   :  { %1817 = vmatpush1.msra.mxu1 %v226_v51  ;;  %2323 = vmatprep.subr.mxu0 %v2157_v38  ;;  %v1980_v38 = vld [vmem:[#allocation2 + $0x120] sm:$0xff] }
 0x218   :  { %1818 = vmatprep.subr.mxu1 %v223_v57  ;;  %2324 = vmatpush2.msra.mxu0 %v2156_v39  ;;  %v4571_v57 = vadd.f32 %v4570_v43, %v4569_v41  ;;  %v1977_v39 = vld [vmem:[#allocation2 + $0x108] sm:$0xff]  ;;  %v1972_v41 = vld [vmem:[#allocation2 + $0xe0] sm:$0xff] }
 0x219   :  { %1819 = vmatpush1.msra.mxu1 %v222_v61  ;;  %2325 = vmatprep.subr.mxu0 %v2153_v40  ;;  %v1976_v40 = vld [vmem:[#allocation2 + $0x100] sm:$0xff]  ;;  %v1969_v43 = vld [vmem:[#allocation2 + $0xc8] sm:$0xff] }
 0x21a   :  { %1820 = vmatprep.subr.mxu1 %v219_v2  ;;  %2326 = vmatpush2.msra.mxu0 %v2152_v14  ;;  %v1973_v14 = vld [vmem:[#allocation2 + $0xe8] sm:$0xff] }
 0x21b   :  { %1821 = vmatpush1.msra.mxu1 %v218_v4 }
 0x21c   :  { %1822 = vmatprep.subr.mxu1 %v215_v11 }
 0x21d   :  { %1823 = vmatpush1.msra.mxu1 %v214_v0 }
 0x21e   :  { %1863 = vmatprep.subr.mxu1 %v277_v56 }
 0x23e   :  { %v4604_v45 = vpop.f32.mrf.mxu1 }
 0x240   :  { %v4605_v49 = vpop.f32.mrf.mxu1 }
 0x241   :  { %v4606_v61 = vadd.f32 %v4605_v49, %v4604_v45  ;;  %v1968_v45 = vld [vmem:[#allocation2 + $0xc0] sm:$0xff]  ;;  %v1965_v49 = vld [vmem:[#allocation2 + $0xa8] sm:$0xff] }
 0x243   :  { %v1649_v11 = vadd.f32 %v4606_v61, %v4571_v57  ;;  %v1960_v57 = vld [vmem:[#allocation2 + $0x80] sm:$0xff]  ;;  %v1957_v61 = vld [vmem:[#allocation2 + $0x68] sm:$0xff] }
 0x27e   :  { %v4639_v28 = vpop.f32.mrf.mxu1 }
 0x280   :  { %v4640_v51 = vpop.f32.mrf.mxu1 }
 0x281   :  { %v4641_v2 = vadd.f32 %v4640_v51, %v4639_v28  ;;  %v1964_v28 = vld [vmem:[#allocation2 + $0xa0] sm:$0xff]  ;;  %v1961_v51 = vld [vmem:[#allocation2 + $0x88] sm:$0xff] }
 0x283   :  { %v1719_v60 = vadd.f32 %v4641_v2, %v1649_v11  ;;  %v1956_v2 = vld [vmem:[#allocation2 + $0x60] sm:$0xff] }
 0x284   :  { %v1952_v11 = vld [vmem:[#allocation2 + $0x40] sm:$0xff] }
 0x2be   :  { %v4674_v4 = vpop.f32.mrf.mxu1 }
 0x2c0   :  { %v4675_v0 = vpop.f32.mrf.mxu1 }
 0x2c1   :  { %v4676_v54 = vadd.f32 %v4675_v0, %v4674_v4  ;;  %v1953_v4 = vld [vmem:[#allocation2 + $0x48] sm:$0xff] }
 0x2c2   :  { %v1949_v0 = vld [vmem:[#allocation2 + $0x28] sm:$0xff] }
 0x2c3   :  { %v6189_v56 = vadd.f32 %v4676_v54, %v1719_v60  ;;  %v1948_v60 = vld [vmem:[#allocation2 + $0x20] sm:$0xff]  ;;  %v1945_v54 = vld [vmem:[#allocation2 + $0x8] sm:$0xff] }
 0x2c5   :  { %1857 = vmatmul.mubr.f32.vlgmr.msra.gmra.mxu1 %v6189_v56 }
 0x2c6   :  { %1864 = vmatpush1.msra.mxu1 %v276_v17  ;;  %1927 = vmatprep.mubr.f32.mxu1 %v5198_v24  ;;  %v2069_v17 = vld [vmem:[#allocation2 + $0x3e8] sm:$0xff] }
 0x2c7   :  { %1865 = vmatprep.subr.mxu1 %v273_v20  ;;  %v2068_v20 = vld [vmem:[#allocation2 + $0x3e0] sm:$0xff] }
 0x2c8   :  { %1866 = vmatpush1.msra.mxu1 %v272_v9  ;;  %v2065_v9 = vld [vmem:[#allocation2 + $0x3c8] sm:$0xff] }
 0x2c9   :  { %1867 = vmatprep.subr.mxu1 %v269_v46  ;;  %v2064_v46 = vld [vmem:[#allocation2 + $0x3c0] sm:$0xff] }
 0x2ca   :  { %1868 = vmatpush1.msra.mxu1 %v268_v13  ;;  %v2061_v13 = vld [vmem:[#allocation2 + $0x3a8] sm:$0xff] }
 0x2cb   :  { %1869 = vmatprep.subr.mxu1 %v265_v27  ;;  %v2060_v27 = vld [vmem:[#allocation2 + $0x3a0] sm:$0xff] }
 0x2cc   :  { %1870 = vmatpush1.msra.mxu1 %v264_v5  ;;  %v2057_v5 = vld [vmem:[#allocation2 + $0x388] sm:$0xff] }
 0x2cd   :  { %1871 = vmatprep.subr.mxu1 %v261_v25  ;;  %v2056_v25 = vld [vmem:[#allocation2 + $0x380] sm:$0xff] }
 0x2ce   :  { %1872 = vmatpush1.msra.mxu1 %v260_v10  ;;  %v2053_v10 = vld [vmem:[#allocation2 + $0x368] sm:$0xff] }
 0x2cf   :  { %1873 = vmatprep.subr.mxu1 %v257_v52  ;;  %v2149_v52 = vld [vmem:[#allocation2 + $0x668] sm:$0xff] }
 0x2d0   :  { %1874 = vmatpush1.msra.mxu1 %v256_v23  ;;  %v2052_v23 = vld [vmem:[#allocation2 + $0x360] sm:$0xff]  ;;  %2327 = vmatprep.subr.mxu0 %v2149_v52  ;;  %v1951_v52 = vld [vmem:[#allocation2 + $0x38] sm:$0xff] }
 0x2d1   :  { %1875 = vmatprep.subr.mxu1 %v253_v48  ;;  %v2148_v48 = vld [vmem:[#allocation2 + $0x660] sm:$0xff] }
 0x2d2   :  { %1876 = vmatpush1.msra.mxu1 %v252_v59  ;;  %v2049_v59 = vld [vmem:[#allocation2 + $0x348] sm:$0xff]  ;;  %2328 = vmatpush2.msra.mxu0 %v2148_v48  ;;  %v1947_v48 = vld [vmem:[#allocation2 + $0x18] sm:$0xff] }
 0x2d3   :  { %1877 = vmatprep.subr.mxu1 %v249_v7  ;;  %v2048_v7 = vld [vmem:[#allocation2 + $0x340] sm:$0xff] }
 0x2d4   :  { %1878 = vmatpush1.msra.mxu1 %v248_v30  ;;  %v2045_v30 = vld [vmem:[#allocation2 + $0x328] sm:$0xff] }
 0x2d5   :  { %1879 = vmatprep.subr.mxu1 %v245_v26  ;;  %v2044_v26 = vld [vmem:[#allocation2 + $0x320] sm:$0xff] }
 0x2d6   :  { %1880 = vmatpush1.msra.mxu1 %v244_v18  ;;  %v2041_v18 = vld [vmem:[#allocation2 + $0x308] sm:$0xff] }
 0x2d7   :  { %1881 = vmatprep.subr.mxu1 %v241_v16  ;;  %v2040_v16 = vld [vmem:[#allocation2 + $0x300] sm:$0xff] }
 0x2d8   :  { %1882 = vmatpush1.msra.mxu1 %v240_v50  ;;  %v2037_v50 = vld [vmem:[#allocation2 + $0x2e8] sm:$0xff] }
 0x2d9   :  { %1883 = vmatprep.subr.mxu1 %v237_v44  ;;  %v2145_v44 = vld [vmem:[#allocation2 + $0x648] sm:$0xff] }
 0x2da   :  { %1884 = vmatpush1.msra.mxu1 %v236_v21  ;;  %v2036_v21 = vld [vmem:[#allocation2 + $0x2e0] sm:$0xff]  ;;  %2329 = vmatprep.subr.mxu0 %v2145_v44  ;;  %v2131_v44 = vld [vmem:[#allocation2 + $0x5d8] sm:$0xff] }
 0x2db   :  { %1885 = vmatprep.subr.mxu1 %v233_v12  ;;  %v2144_v12 = vld [vmem:[#allocation2 + $0x640] sm:$0xff] }
 0x2dc   :  { %1886 = vmatpush1.msra.mxu1 %v232_v15  ;;  %v2033_v15 = vld [vmem:[#allocation2 + $0x2c8] sm:$0xff]  ;;  %2330 = vmatpush2.msra.mxu0 %v2144_v12  ;;  %v2130_v12 = vld [vmem:[#allocation2 + $0x5d0] sm:$0xff] }
 0x2dd   :  { %1887 = vmatprep.subr.mxu1 %v229_v22  ;;  %v2032_v22 = vld [vmem:[#allocation2 + $0x2c0] sm:$0xff] }
 0x2de   :  { %1888 = vmatpush1.msra.mxu1 %v228_v3  ;;  %v2029_v3 = vld [vmem:[#allocation2 + $0x2a8] sm:$0xff] }
 0x2df   :  { %1889 = vmatprep.subr.mxu1 %v225_v8  ;;  %v2028_v8 = vld [vmem:[#allocation2 + $0x2a0] sm:$0xff] }
 0x2e0   :  { %1890 = vmatpush1.msra.mxu1 %v224_v58  ;;  %v2025_v58 = vld [vmem:[#allocation2 + $0x288] sm:$0xff] }
 0x2e1   :  { %1891 = vmatprep.subr.mxu1 %v221_v1  ;;  %v2024_v1 = vld [vmem:[#allocation2 + $0x280] sm:$0xff] }
 0x2e2   :  { %1892 = vmatpush1.msra.mxu1 %v220_v29  ;;  %v2021_v29 = vld [vmem:[#allocation2 + $0x268] sm:$0xff] }
 0x2e3   :  { %1893 = vmatprep.subr.mxu1 %v217_v19  ;;  %v2141_v19 = vld [vmem:[#allocation2 + $0x628] sm:$0xff] }
 0x2e4   :  { %1894 = vmatpush1.msra.mxu1 %v216_v31  ;;  %v2020_v31 = vld [vmem:[#allocation2 + $0x260] sm:$0xff]  ;;  %2331 = vmatprep.subr.mxu0 %v2141_v19  ;;  %v2122_v19 = vld [vmem:[#allocation2 + $0x590] sm:$0xff] }
 0x2e5   :  { %1928 = vmatmul.mubr.f32.vlgmr.msra.gmra.mxu1 %v6189_v56  ;;  %2200 = vmatprep.subr.mxu1 %v2005_v6  ;;  %v1944_v56 = vld [vmem:[#allocation2] sm:$0xff] }
 0x2e6   :  { %2201 = vmatpush1.msra.mxu1 %v2004_v33  ;;  %v2140_v6 = vld [vmem:[#allocation2 + $0x620] sm:$0xff]  ;;  %v2017_v33 = vld [vmem:[#allocation2 + $0x248] sm:$0xff] }
 0x2e7   :  { %2202 = vmatprep.subr.mxu1 %v2001_v53  ;;  %2332 = vmatpush2.msra.mxu0 %v2140_v6  ;;  %v2016_v53 = vld [vmem:[#allocation2 + $0x240] sm:$0xff]  ;;  %v2119_v6 = vld [vmem:[#allocation2 + $0x578] sm:$0xff] }
 0x2e8   :  { %2203 = vmatpush1.msra.mxu1 %v2000_v42  ;;  %v2013_v42 = vld [vmem:[#allocation2 + $0x228] sm:$0xff] }
 0x2e9   :  { %2204 = vmatprep.subr.mxu1 %v1997_v62  ;;  %v2012_v62 = vld [vmem:[#allocation2 + $0x220] sm:$0xff] }
 0x2ea   :  { %2205 = vmatpush1.msra.mxu1 %v1996_v32  ;;  %v2009_v32 = vld [vmem:[#allocation2 + $0x208] sm:$0xff] }
 0x2eb   :  { %2206 = vmatprep.subr.mxu1 %v1993_v34  ;;  %v2008_v34 = vld [vmem:[#allocation2 + $0x200] sm:$0xff] }
 0x2ec   :  { %2207 = vmatpush1.msra.mxu1 %v1992_v35  ;;  %v2007_v35 = vld [vmem:[#allocation2 + $0x1f8] sm:$0xff] }
 0x2ed   :  { %2208 = vmatprep.subr.mxu1 %v1989_v55  ;;  %v2137_v55 = vld [vmem:[#allocation2 + $0x608] sm:$0xff] }
 0x2ee   :  { %2209 = vmatpush1.msra.mxu1 %v1988_v36  ;;  %2333 = vmatprep.subr.mxu0 %v2137_v55  ;;  %v2136_v36 = vld [vmem:[#allocation2 + $0x600] sm:$0xff]  ;;  %v2111_v55 = vld [vmem:[#allocation2 + $0x538] sm:$0xff] }
 0x2ef   :  { %2210 = vmatprep.subr.mxu1 %v1985_v47  ;;  %2334 = vmatpush2.msra.mxu0 %v2136_v36  ;;  %v2135_v47 = vld [vmem:[#allocation2 + $0x5f8] sm:$0xff] }
 0x2f0   :  { %2211 = vmatpush1.msra.mxu1 %v1984_v63  ;;  %2413 = vmatprep.subr.mxu0 %v2135_v47  ;;  %v2047_v36 = vld [vmem:[#allocation2 + $0x338] sm:$0xff]  ;;  %v2110_v47 = vld [vmem:[#allocation2 + $0x530] sm:$0xff] }
 0x2f1   :  { %2212 = vmatprep.subr.mxu1 %v1981_v37 }
 0x2f2   :  { %2213 = vmatpush1.msra.mxu1 %v1980_v38  ;;  %v2006_v38 = vld [vmem:[#allocation2 + $0x1f0] sm:$0xff] }
 0x2f3   :  { %2214 = vmatprep.subr.mxu1 %v1977_v39 }
 0x2f4   :  { %2215 = vmatpush1.msra.mxu1 %v1976_v40  ;;  %v2003_v40 = vld [vmem:[#allocation2 + $0x1d8] sm:$0xff] }
 0x2f5   :  { %2216 = vmatprep.subr.mxu1 %v1973_v14  ;;  %v2002_v14 = vld [vmem:[#allocation2 + $0x1d0] sm:$0xff] }
 0x2f6   :  { %2217 = vmatpush1.msra.mxu1 %v1972_v41  ;;  %v1999_v41 = vld [vmem:[#allocation2 + $0x1b8] sm:$0xff] }
 0x2f7   :  { %2218 = vmatprep.subr.mxu1 %v1969_v43  ;;  %v1998_v43 = vld [vmem:[#allocation2 + $0x1b0] sm:$0xff] }
 0x2f8   :  { %2219 = vmatpush1.msra.mxu1 %v1968_v45  ;;  %v1995_v45 = vld [vmem:[#allocation2 + $0x198] sm:$0xff] }
 0x2f9   :  { %2220 = vmatprep.subr.mxu1 %v1965_v49  ;;  %v1994_v49 = vld [vmem:[#allocation2 + $0x190] sm:$0xff] }
 0x2fa   :  { %2221 = vmatpush1.msra.mxu1 %v1964_v28  ;;  %v1991_v28 = vld [vmem:[#allocation2 + $0x178] sm:$0xff] }
 0x2fb   :  { %2222 = vmatprep.subr.mxu1 %v1961_v51  ;;  %v1990_v51 = vld [vmem:[#allocation2 + $0x170] sm:$0xff] }
 0x2fc   :  { %2223 = vmatpush1.msra.mxu1 %v1960_v57  ;;  %v1987_v57 = vld [vmem:[#allocation2 + $0x158] sm:$0xff] }
 0x2fd   :  { %2224 = vmatprep.subr.mxu1 %v1957_v61  ;;  %v1986_v61 = vld [vmem:[#allocation2 + $0x150] sm:$0xff] }
 0x2fe   :  { %2225 = vmatpush1.msra.mxu1 %v1956_v2  ;;  %v1983_v2 = vld [vmem:[#allocation2 + $0x138] sm:$0xff] }
 0x2ff   :  { %2226 = vmatprep.subr.mxu1 %v1953_v4  ;;  %v1982_v4 = vld [vmem:[#allocation2 + $0x130] sm:$0xff] }
 0x300   :  { %2227 = vmatpush1.msra.mxu1 %v1952_v11  ;;  %v1979_v11 = vld [vmem:[#allocation2 + $0x118] sm:$0xff] }
 0x301   :  { %2228 = vmatprep.subr.mxu1 %v1949_v0  ;;  %v1978_v0 = vld [vmem:[#allocation2 + $0x110] sm:$0xff] }
 0x302   :  { %2229 = vmatpush1.msra.mxu1 %v1948_v60  ;;  %v1975_v60 = vld [vmem:[#allocation2 + $0xf8] sm:$0xff] }
 0x303   :  { %2230 = vmatprep.subr.mxu1 %v1945_v54  ;;  %v1974_v54 = vld [vmem:[#allocation2 + $0xf0] sm:$0xff] }
 0x304   :  { %2231 = vmatpush1.msra.mxu1 %v1944_v56  ;;  %v1971_v56 = vld [vmem:[#allocation2 + $0xd8] sm:$0xff] }
 0x305   :  { %2232 = vmatprep.subr.mxu1 %v2069_v17  ;;  %v1970_v17 = vld [vmem:[#allocation2 + $0xd0] sm:$0xff] }
 0x306   :  { %2233 = vmatpush2.msra.mxu1 %v2068_v20  ;;  %v1967_v20 = vld [vmem:[#allocation2 + $0xb8] sm:$0xff] }
 0x307   :  { %2234 = vmatprep.subr.mxu1 %v2065_v9  ;;  %v1966_v9 = vld [vmem:[#allocation2 + $0xb0] sm:$0xff] }
 0x308   :  { %2235 = vmatpush2.msra.mxu1 %v2064_v46  ;;  %v1963_v46 = vld [vmem:[#allocation2 + $0x98] sm:$0xff] }
 0x309   :  { %2236 = vmatprep.subr.mxu1 %v2061_v13  ;;  %v1962_v13 = vld [vmem:[#allocation2 + $0x90] sm:$0xff] }
 0x30a   :  { %2237 = vmatpush2.msra.mxu1 %v2060_v27  ;;  %v1959_v27 = vld [vmem:[#allocation2 + $0x78] sm:$0xff] }
 0x30b   :  { %2238 = vmatprep.subr.mxu1 %v2057_v5  ;;  %v1958_v5 = vld [vmem:[#allocation2 + $0x70] sm:$0xff] }
 0x30c   :  { %2239 = vmatpush2.msra.mxu1 %v2056_v25  ;;  %v1955_v25 = vld [vmem:[#allocation2 + $0x58] sm:$0xff] }
 0x30d   :  { %2240 = vmatprep.subr.mxu1 %v2053_v10  ;;  %v1954_v10 = vld [vmem:[#allocation2 + $0x50] sm:$0xff] }
 0x30e   :  { %2241 = vmatpush2.msra.mxu1 %v2052_v23  ;;  %v1950_v23 = vld [vmem:[#allocation2 + $0x30] sm:$0xff] }
 0x30f   :  { %2242 = vmatprep.subr.mxu1 %v2049_v59 }
 0x310   :  { %2243 = vmatpush2.msra.mxu1 %v2048_v7  ;;  %v1946_v7 = vld [vmem:[#allocation2 + $0x10] sm:$0xff] }
 0x311   :  { %2244 = vmatprep.subr.mxu1 %v2045_v30  ;;  %v2071_v30 = vld [vmem:[#allocation2 + $0x3f8] sm:$0xff] }
 0x312   :  { %2245 = vmatpush2.msra.mxu1 %v2044_v26 }
 0x313   :  { %2246 = vmatprep.subr.mxu1 %v2041_v18  ;;  %v2134_v18 = vld [vmem:[#allocation2 + $0x5f0] sm:$0xff] }
 0x314   :  { %2247 = vmatpush2.msra.mxu1 %v2040_v16  ;;  %v2070_v16 = vld [vmem:[#allocation2 + $0x3f0] sm:$0xff] }
 0x315   :  { %2248 = vmatprep.subr.mxu1 %v2037_v50 }
 0x316   :  { %2249 = vmatpush2.msra.mxu1 %v2036_v21  ;;  %v2067_v21 = vld [vmem:[#allocation2 + $0x3d8] sm:$0xff] }
 0x317   :  { %2250 = vmatprep.subr.mxu1 %v2033_v15  ;;  %v2066_v15 = vld [vmem:[#allocation2 + $0x3d0] sm:$0xff] }
 0x318   :  { %2251 = vmatpush2.msra.mxu1 %v2032_v22  ;;  %v2127_v22 = vld [vmem:[#allocation2 + $0x5b8] sm:$0xff] }
 0x319   :  { %2252 = vmatprep.subr.mxu1 %v2029_v3  ;;  %v2063_v3 = vld [vmem:[#allocation2 + $0x3b8] sm:$0xff] }
 0x31a   :  { %2253 = vmatpush2.msra.mxu1 %v2028_v8  ;;  %v2126_v8 = vld [vmem:[#allocation2 + $0x5b0] sm:$0xff] }
 0x31b   :  { %2254 = vmatprep.subr.mxu1 %v2025_v58  ;;  %v2062_v58 = vld [vmem:[#allocation2 + $0x3b0] sm:$0xff] }
 0x31c   :  { %2255 = vmatpush2.msra.mxu1 %v2024_v1  ;;  %v2123_v1 = vld [vmem:[#allocation2 + $0x598] sm:$0xff] }
 0x31d   :  { %2256 = vmatprep.subr.mxu1 %v2021_v29  ;;  %v2059_v29 = vld [vmem:[#allocation2 + $0x398] sm:$0xff] }
 0x31e   :  { %2257 = vmatpush2.msra.mxu1 %v2020_v31  ;;  %v2058_v31 = vld [vmem:[#allocation2 + $0x390] sm:$0xff] }
 0x31f   :  { %2258 = vmatprep.subr.mxu1 %v2017_v33  ;;  %v2055_v33 = vld [vmem:[#allocation2 + $0x378] sm:$0xff] }
 0x320   :  { %2259 = vmatpush2.msra.mxu1 %v2016_v53  ;;  %v2118_v53 = vld [vmem:[#allocation2 + $0x570] sm:$0xff] }
 0x321   :  { %2260 = vmatprep.subr.mxu1 %v2013_v42  ;;  %v2054_v42 = vld [vmem:[#allocation2 + $0x370] sm:$0xff] }
 0x322   :  { %2261 = vmatpush2.msra.mxu1 %v2012_v62  ;;  %v2115_v62 = vld [vmem:[#allocation2 + $0x558] sm:$0xff] }
 0x323   :  { %2262 = vmatprep.subr.mxu1 %v2009_v32  ;;  %v2051_v32 = vld [vmem:[#allocation2 + $0x358] sm:$0xff] }
 0x324   :  { %2263 = vmatpush2.msra.mxu1 %v2008_v34  ;;  %v2114_v34 = vld [vmem:[#allocation2 + $0x550] sm:$0xff] }
 0x325   :  { %2342 = vmatprep.subr.mxu1 %v2007_v35  ;;  %v2050_v35 = vld [vmem:[#allocation2 + $0x350] sm:$0xff] }
 0x385   :  { %v6287_v63 = vpop.f32.mrf.mxu1 }
 0x387   :  { %v1860_v37 = vpop.f32.mrf.mxu1 }
 0x388   :  { %v1938_v39 = vcombine.low %v6287_v63, %v1860_v37  ;;  %2264 = vmatprep.mubr.f32.mxu1 %v1860_v37 }
 0x389   :  { %2265 = vmatmul.mubr.f32.vlgmr.msra.gmra.mxu1 %v6287_v63 }
 0x38a   :  { %1942 = vst [vmem:[#allocation5] sm:$0xff] %v1938_v39  ;;  %2343 = vmatpush1.msra.mxu1 %v2006_v38  ;;  %2406 = vmatprep.mubr.f32.mxu1 %v1860_v37  ;;  %v2046_v37 = vld [vmem:[#allocation2 + $0x330] sm:$0xff]  ;;  %v2107_v38 = vld [vmem:[#allocation2 + $0x518] sm:$0xff] }
 0x38b   :  { %2344 = vmatprep.subr.mxu1 %v2003_v40  ;;  %v2043_v39 = vld [vmem:[#allocation2 + $0x318] sm:$0xff]  ;;  %v2106_v40 = vld [vmem:[#allocation2 + $0x510] sm:$0xff] }
 0x38c   :  { %2345 = vmatpush1.msra.mxu1 %v2002_v14  ;;  %v2042_v14 = vld [vmem:[#allocation2 + $0x310] sm:$0xff] }
 0x38d   :  { %2346 = vmatprep.subr.mxu1 %v1999_v41  ;;  %v2103_v41 = vld [vmem:[#allocation2 + $0x4f8] sm:$0xff] }
 0x38e   :  { %2347 = vmatpush1.msra.mxu1 %v1998_v43  ;;  %v2039_v43 = vld [vmem:[#allocation2 + $0x2f8] sm:$0xff] }
 0x38f   :  { %2348 = vmatprep.subr.mxu1 %v1995_v45  ;;  %v2102_v45 = vld [vmem:[#allocation2 + $0x4f0] sm:$0xff] }
 0x390   :  { %2349 = vmatpush1.msra.mxu1 %v1994_v49  ;;  %v2038_v49 = vld [vmem:[#allocation2 + $0x2f0] sm:$0xff] }
 0x391   :  { %2350 = vmatprep.subr.mxu1 %v1991_v28  ;;  %v2099_v28 = vld [vmem:[#allocation2 + $0x4d8] sm:$0xff] }
 0x392   :  { %2351 = vmatpush1.msra.mxu1 %v1990_v51  ;;  %v2035_v51 = vld [vmem:[#allocation2 + $0x2d8] sm:$0xff] }
 0x393   :  { %2352 = vmatprep.subr.mxu1 %v1987_v57  ;;  %v2098_v57 = vld [vmem:[#allocation2 + $0x4d0] sm:$0xff] }
 0x394   :  { %2353 = vmatpush1.msra.mxu1 %v1986_v61  ;;  %v2034_v61 = vld [vmem:[#allocation2 + $0x2d0] sm:$0xff] }
 0x395   :  { %2354 = vmatprep.subr.mxu1 %v1983_v2  ;;  %v2095_v2 = vld [vmem:[#allocation2 + $0x4b8] sm:$0xff] }
 0x396   :  { %2355 = vmatpush1.msra.mxu1 %v1982_v4  ;;  %v2031_v4 = vld [vmem:[#allocation2 + $0x2b8] sm:$0xff] }
 0x397   :  { %2356 = vmatprep.subr.mxu1 %v1979_v11  ;;  %v2094_v11 = vld [vmem:[#allocation2 + $0x4b0] sm:$0xff] }
 0x398   :  { %2357 = vmatpush1.msra.mxu1 %v1978_v0  ;;  %v2030_v0 = vld [vmem:[#allocation2 + $0x2b0] sm:$0xff] }
 0x399   :  { %2358 = vmatprep.subr.mxu1 %v1975_v60  ;;  %v2091_v60 = vld [vmem:[#allocation2 + $0x498] sm:$0xff] }
 0x39a   :  { %2359 = vmatpush1.msra.mxu1 %v1974_v54  ;;  %v2027_v54 = vld [vmem:[#allocation2 + $0x298] sm:$0xff] }
 0x39b   :  { %2360 = vmatprep.subr.mxu1 %v1971_v56  ;;  %v2090_v56 = vld [vmem:[#allocation2 + $0x490] sm:$0xff] }
 0x39c   :  { %2361 = vmatpush1.msra.mxu1 %v1970_v17  ;;  %v2026_v17 = vld [vmem:[#allocation2 + $0x290] sm:$0xff] }
 0x39d   :  { %2362 = vmatprep.subr.mxu1 %v1967_v20  ;;  %v2087_v20 = vld [vmem:[#allocation2 + $0x478] sm:$0xff] }
 0x39e   :  { %2363 = vmatpush1.msra.mxu1 %v1966_v9  ;;  %v2023_v9 = vld [vmem:[#allocation2 + $0x278] sm:$0xff] }
 0x39f   :  { %2364 = vmatprep.subr.mxu1 %v1963_v46  ;;  %v2086_v46 = vld [vmem:[#allocation2 + $0x470] sm:$0xff] }
 0x3a0   :  { %2365 = vmatpush1.msra.mxu1 %v1962_v13  ;;  %v2022_v13 = vld [vmem:[#allocation2 + $0x270] sm:$0xff] }
 0x3a1   :  { %2366 = vmatprep.subr.mxu1 %v1959_v27  ;;  %v2083_v27 = vld [vmem:[#allocation2 + $0x458] sm:$0xff] }
 0x3a2   :  { %2367 = vmatpush1.msra.mxu1 %v1958_v5  ;;  %v2019_v5 = vld [vmem:[#allocation2 + $0x258] sm:$0xff] }
 0x3a3   :  { %2368 = vmatprep.subr.mxu1 %v1955_v25  ;;  %v2082_v25 = vld [vmem:[#allocation2 + $0x450] sm:$0xff] }
 0x3a4   :  { %2369 = vmatpush1.msra.mxu1 %v1954_v10  ;;  %v2018_v10 = vld [vmem:[#allocation2 + $0x250] sm:$0xff] }
 0x3a5   :  { %v6291_v59 = vpop.f32.mrf.mxu1  ;;  %2370 = vmatprep.subr.mxu1 %v1951_v52  ;;  %v2079_v52 = vld [vmem:[#allocation2 + $0x438] sm:$0xff] }
 0x3a6   :  { %2371 = vmatpush1.msra.mxu1 %v1950_v23  ;;  %v2015_v23 = vld [vmem:[#allocation2 + $0x238] sm:$0xff] }
 0x3a7   :  { %v1931_v26 = vpop.f32.mrf.mxu1  ;;  %2372 = vmatprep.subr.mxu1 %v1947_v48  ;;  %v2078_v48 = vld [vmem:[#allocation2 + $0x430] sm:$0xff] }
 0x3a8   :  { %v1939_v50 = vcombine.low %v6291_v59, %v1931_v26  ;;  %2335 = vmatprep.mubr.f32.mxu0 %v1931_v26  ;;  %2373 = vmatpush1.msra.mxu1 %v1946_v7  ;;  %v2014_v7 = vld [vmem:[#allocation2 + $0x230] sm:$0xff] }
 0x3a9   :  { %2336 = vmatmul.mubr.f32.vlgmr.msra.gmra.mxu0 %v6291_v59  ;;  %2374 = vmatprep.subr.mxu1 %v2071_v30  ;;  %v2075_v30 = vld [vmem:[#allocation2 + $0x418] sm:$0xff] }
 0x3aa   :  { %1943 = vst [vmem:[#allocation5 + $0x8] sm:$0xff] %v1939_v50  ;;  %2414 = vmatpush1.msra.mxu0 %v2134_v18  ;;  %2375 = vmatpush2.msra.mxu1 %v2070_v16  ;;  %v2074_v18 = vld [vmem:[#allocation2 + $0x410] sm:$0xff]  ;;  %v2199_v50 = vld [vmem:[#allocation2 + $0x7f8] sm:$0xff] }
 0x3ab   :  { %2415 = vmatprep.subr.mxu0 %v2131_v44  ;;  %2477 = vmatprep.mubr.f32.mxu0 %v1931_v26  ;;  %v2011_v26 = vld [vmem:[#allocation2 + $0x218] sm:$0xff]  ;;  %v2010_v16 = vld [vmem:[#allocation2 + $0x210] sm:$0xff] }
 0x3ac   :  { %2376 = vmatprep.subr.mxu1 %v2067_v21  ;;  %2416 = vmatpush1.msra.mxu0 %v2130_v12  ;;  %v2198_v44 = vld [vmem:[#allocation2 + $0x7f0] sm:$0xff]  ;;  %v2195_v21 = vld [vmem:[#allocation2 + $0x7d8] sm:$0xff] }
 0x3ad   :  { %2377 = vmatpush2.msra.mxu1 %v2066_v15  ;;  %2417 = vmatprep.subr.mxu0 %v2127_v22  ;;  %v2194_v12 = vld [vmem:[#allocation2 + $0x7d0] sm:$0xff]  ;;  %v2191_v15 = vld [vmem:[#allocation2 + $0x7b8] sm:$0xff] }
 0x3ae   :  { %2378 = vmatprep.subr.mxu1 %v2063_v3  ;;  %2418 = vmatpush1.msra.mxu0 %v2126_v8  ;;  %v2190_v22 = vld [vmem:[#allocation2 + $0x7b0] sm:$0xff]  ;;  %v2187_v3 = vld [vmem:[#allocation2 + $0x798] sm:$0xff] }
 0x3af   :  { %2379 = vmatpush2.msra.mxu1 %v2062_v58  ;;  %2419 = vmatprep.subr.mxu0 %v2123_v1  ;;  %v2186_v8 = vld [vmem:[#allocation2 + $0x790] sm:$0xff]  ;;  %v2183_v58 = vld [vmem:[#allocation2 + $0x778] sm:$0xff] }
 0x3b0   :  { %2380 = vmatprep.subr.mxu1 %v2059_v29  ;;  %2420 = vmatpush1.msra.mxu0 %v2122_v19  ;;  %v2182_v1 = vld [vmem:[#allocation2 + $0x770] sm:$0xff]  ;;  %v2179_v29 = vld [vmem:[#allocation2 + $0x758] sm:$0xff] }
 0x3b1   :  { %2381 = vmatpush2.msra.mxu1 %v2058_v31  ;;  %2421 = vmatprep.subr.mxu0 %v2119_v6  ;;  %v2178_v19 = vld [vmem:[#allocation2 + $0x750] sm:$0xff]  ;;  %v2171_v6 = vld [vmem:[#allocation2 + $0x718] sm:$0xff] }
 0x3b2   :  { %2382 = vmatprep.subr.mxu1 %v2055_v33  ;;  %2422 = vmatpush1.msra.mxu0 %v2118_v53  ;;  %v2174_v31 = vld [vmem:[#allocation2 + $0x730] sm:$0xff]  ;;  %v2167_v53 = vld [vmem:[#allocation2 + $0x6f8] sm:$0xff] }
 0x3b3   :  { %2383 = vmatpush2.msra.mxu1 %v2054_v42  ;;  %2423 = vmatprep.subr.mxu0 %v2115_v62  ;;  %v2170_v33 = vld [vmem:[#allocation2 + $0x710] sm:$0xff]  ;;  %v2163_v62 = vld [vmem:[#allocation2 + $0x6d8] sm:$0xff] }
 0x3b4   :  { %2384 = vmatprep.subr.mxu1 %v2051_v32  ;;  %2424 = vmatpush1.msra.mxu0 %v2114_v34  ;;  %v2166_v42 = vld [vmem:[#allocation2 + $0x6f0] sm:$0xff]  ;;  %v2159_v34 = vld [vmem:[#allocation2 + $0x6b8] sm:$0xff] }
 0x3b5   :  { %2385 = vmatpush2.msra.mxu1 %v2050_v35  ;;  %2425 = vmatprep.subr.mxu0 %v2111_v55  ;;  %v2162_v32 = vld [vmem:[#allocation2 + $0x6d0] sm:$0xff]  ;;  %v2155_v55 = vld [vmem:[#allocation2 + $0x698] sm:$0xff] }
 0x3b6   :  { %2386 = vmatprep.subr.mxu1 %v2047_v36  ;;  %2426 = vmatpush1.msra.mxu0 %v2110_v47  ;;  %v2158_v35 = vld [vmem:[#allocation2 + $0x6b0] sm:$0xff]  ;;  %v2151_v47 = vld [vmem:[#allocation2 + $0x678] sm:$0xff] }
 0x3b7   :  { %2387 = vmatpush2.msra.mxu1 %v2046_v37  ;;  %2427 = vmatprep.subr.mxu0 %v2107_v38  ;;  %v2154_v36 = vld [vmem:[#allocation2 + $0x690] sm:$0xff]  ;;  %v2147_v38 = vld [vmem:[#allocation2 + $0x658] sm:$0xff] }
 0x3b8   :  { %2388 = vmatprep.subr.mxu1 %v2043_v39  ;;  %2428 = vmatpush1.msra.mxu0 %v2106_v40  ;;  %v2150_v37 = vld [vmem:[#allocation2 + $0x670] sm:$0xff]  ;;  %v2143_v40 = vld [vmem:[#allocation2 + $0x638] sm:$0xff] }
 0x3b9   :  { %2389 = vmatpush2.msra.mxu1 %v2042_v14  ;;  %2429 = vmatprep.subr.mxu0 %v2103_v41  ;;  %v2146_v39 = vld [vmem:[#allocation2 + $0x650] sm:$0xff]  ;;  %v2139_v41 = vld [vmem:[#allocation2 + $0x618] sm:$0xff] }
 0x3ba   :  { %2390 = vmatprep.subr.mxu1 %v2039_v43  ;;  %2430 = vmatpush1.msra.mxu0 %v2102_v45  ;;  %v2142_v14 = vld [vmem:[#allocation2 + $0x630] sm:$0xff] }
 0x3bb   :  { %2391 = vmatpush2.msra.mxu1 %v2038_v49  ;;  %2431 = vmatprep.subr.mxu0 %v2099_v28  ;;  %v2138_v43 = vld [vmem:[#allocation2 + $0x610] sm:$0xff] }
 0x3bc   :  { %2392 = vmatprep.subr.mxu1 %v2035_v51  ;;  %2432 = vmatpush1.msra.mxu0 %v2098_v57 }
 0x3bd   :  { %2393 = vmatpush2.msra.mxu1 %v2034_v61  ;;  %2433 = vmatprep.subr.mxu0 %v2095_v2  ;;  %v6302_v2 = vld [vmem:[%s6770_s24] sm:$0x3] }
 0x3be   :  { %2394 = vmatprep.subr.mxu1 %v2031_v4  ;;  %2434 = vmatpush1.msra.mxu0 %v2094_v11 }
 0x3bf   :  { %2395 = vmatpush2.msra.mxu1 %v2030_v0  ;;  %2435 = vmatprep.subr.mxu0 %v2091_v60 }
 0x3c0   :  { %2396 = vmatprep.subr.mxu1 %v2027_v54  ;;  %2436 = vmatpush1.msra.mxu0 %v2090_v56 }
 0x3c1   :  { %2397 = vmatpush2.msra.mxu1 %v2026_v17  ;;  %2437 = vmatprep.subr.mxu0 %v2087_v20  ;;  %v6317_v20 = vld [vmem:[%s6771_s4] sm:$0xf] }
 0x3c2   :  { %2398 = vmatprep.subr.mxu1 %v2023_v9  ;;  %2438 = vmatpush1.msra.mxu0 %v2086_v46 }
 0x3c3   :  { %2399 = vmatpush2.msra.mxu1 %v2022_v13  ;;  %2439 = vmatprep.subr.mxu0 %v2083_v27 }
 0x3c4   :  { %2400 = vmatprep.subr.mxu1 %v2019_v5  ;;  %2440 = vmatpush1.msra.mxu0 %v2082_v25 }
 0x3c5   :  { %2401 = vmatpush2.msra.mxu1 %v2018_v10  ;;  %2441 = vmatprep.subr.mxu0 %v2079_v52 }
 0x3c6   :  { %2402 = vmatprep.subr.mxu1 %v2015_v23  ;;  %2442 = vmatpush1.msra.mxu0 %v2078_v48 }
 0x3c7   :  { %2403 = vmatpush2.msra.mxu1 %v2014_v7  ;;  %2443 = vmatprep.subr.mxu0 %v2075_v30 }
 0x3c8   :  { %2404 = vmatprep.subr.mxu1 %v2011_v26  ;;  %2444 = vmatpush1.msra.mxu0 %v2074_v18 }
 0x3c9   :  { %2405 = vmatpush2.msra.mxu1 %v2010_v16  ;;  %2445 = vmatprep.subr.mxu0 %v2199_v50 }
 0x3ca   :  { %2407 = vmatmul.mubr.f32.vlgmr.msra.gmra.mxu1 %v6287_v63  ;;  %2446 = vmatpush2.msra.mxu0 %v2198_v44  ;;  %v2175_v63 = vld [vmem:[#allocation2 + $0x738] sm:$0xff] }
 0x3cb   :  { %2447 = vmatprep.subr.mxu0 %v2195_v21  ;;  %2566 = vmatprep.mubr.f32.mxu1 %v5198_v24  ;;  %v3212_v44 = vld [vmem:[%s6751_s9 + $0xf8] sm:$0xff] }
 0x3cc   :  { %2448 = vmatpush2.msra.mxu0 %v2194_v12  ;;  %v3196_v21 = vld [vmem:[%s6751_s9 + $0x78] sm:$0xff]  ;;  %v3211_v12 = vld [vmem:[%s6751_s9 + $0xf0] sm:$0xff] }
 0x3cd   :  { %2449 = vmatprep.subr.mxu0 %v2191_v15  ;;  %v3195_v15 = vld [vmem:[%s6751_s9 + $0x70] sm:$0xff] }
 0x3ce   :  { %2450 = vmatpush2.msra.mxu0 %v2190_v22 }
 0x3cf   :  { %2451 = vmatprep.subr.mxu0 %v2187_v3 }
 0x3d0   :  { %2452 = vmatpush2.msra.mxu0 %v2186_v8  ;;  %v3210_v8 = vld [vmem:[%s6751_s9 + $0xe8] sm:$0xff] }
 0x3d1   :  { %2453 = vmatprep.subr.mxu0 %v2183_v58  ;;  %v3194_v58 = vld [vmem:[%s6751_s9 + $0x68] sm:$0xff] }
 0x3d2   :  { %2454 = vmatpush2.msra.mxu0 %v2182_v1  ;;  %v3209_v1 = vld [vmem:[%s6751_s9 + $0xe0] sm:$0xff] }
 0x3d3   :  { %2455 = vmatprep.subr.mxu0 %v2179_v29  ;;  %v3193_v29 = vld [vmem:[%s6751_s9 + $0x60] sm:$0xff] }
 0x3d4   :  { %2456 = vmatpush2.msra.mxu0 %v2178_v19  ;;  %v3208_v19 = vld [vmem:[%s6751_s9 + $0xd8] sm:$0xff] }
 0x3d5   :  { %2457 = vmatprep.subr.mxu0 %v2175_v63  ;;  %v3192_v63 = vld [vmem:[%s6751_s9 + $0x58] sm:$0xff] }
 0x3d6   :  { %2458 = vmatpush2.msra.mxu0 %v2174_v31  ;;  %v3207_v31 = vld [vmem:[%s6751_s9 + $0xd0] sm:$0xff] }
 0x3d7   :  { %2459 = vmatprep.subr.mxu0 %v2171_v6  ;;  %v3191_v6 = vld [vmem:[%s6751_s9 + $0x50] sm:$0xff] }
 0x3d8   :  { %2460 = vmatpush2.msra.mxu0 %v2170_v33  ;;  %v3206_v33 = vld [vmem:[%s6751_s9 + $0xc8] sm:$0xff] }
 0x3d9   :  { %2461 = vmatprep.subr.mxu0 %v2167_v53  ;;  %v3190_v53 = vld [vmem:[%s6751_s9 + $0x48] sm:$0xff] }
 0x3da   :  { %2462 = vmatpush2.msra.mxu0 %v2166_v42  ;;  %v3205_v42 = vld [vmem:[%s6751_s9 + $0xc0] sm:$0xff] }
 0x3db   :  { %2463 = vmatprep.subr.mxu0 %v2163_v62  ;;  %v3189_v62 = vld [vmem:[%s6751_s9 + $0x40] sm:$0xff] }
 0x3dc   :  { %2464 = vmatpush2.msra.mxu0 %v2162_v32  ;;  %v3204_v32 = vld [vmem:[%s6751_s9 + $0xb8] sm:$0xff] }
 0x3dd   :  { %2465 = vmatprep.subr.mxu0 %v2159_v34  ;;  %v3188_v34 = vld [vmem:[%s6751_s9 + $0x38] sm:$0xff] }
 0x3de   :  { %2466 = vmatpush2.msra.mxu0 %v2158_v35  ;;  %v3203_v35 = vld [vmem:[%s6751_s9 + $0xb0] sm:$0xff] }
 0x3df   :  { %2467 = vmatprep.subr.mxu0 %v2155_v55  ;;  %v3187_v55 = vld [vmem:[%s6751_s9 + $0x30] sm:$0xff] }
 0x3e0   :  { %2468 = vmatpush2.msra.mxu0 %v2154_v36  ;;  %v3202_v36 = vld [vmem:[%s6751_s9 + $0xa8] sm:$0xff] }
 0x3e1   :  { %2469 = vmatprep.subr.mxu0 %v2151_v47  ;;  %v3186_v47 = vld [vmem:[%s6751_s9 + $0x28] sm:$0xff] }
 0x3e2   :  { %2470 = vmatpush2.msra.mxu0 %v2150_v37  ;;  %v3201_v37 = vld [vmem:[%s6751_s9 + $0xa0] sm:$0xff] }
 0x3e3   :  { %2471 = vmatprep.subr.mxu0 %v2147_v38  ;;  %v3185_v38 = vld [vmem:[%s6751_s9 + $0x20] sm:$0xff] }
 0x3e4   :  { %2472 = vmatpush2.msra.mxu0 %v2146_v39  ;;  %v3200_v39 = vld [vmem:[%s6751_s9 + $0x98] sm:$0xff] }
 0x3e5   :  { %2473 = vmatprep.subr.mxu0 %v2143_v40  ;;  %v3184_v40 = vld [vmem:[%s6751_s9 + $0x18] sm:$0xff] }
 0x3e6   :  { %2474 = vmatpush2.msra.mxu0 %v2142_v14  ;;  %v3199_v14 = vld [vmem:[%s6751_s9 + $0x90] sm:$0xff] }
 0x3e7   :  { %2475 = vmatprep.subr.mxu0 %v2139_v41  ;;  %v3183_v41 = vld [vmem:[%s6751_s9 + $0x10] sm:$0xff] }
 0x3e8   :  { %2476 = vmatpush2.msra.mxu0 %v2138_v43  ;;  %v3198_v43 = vld [vmem:[%s6751_s9 + $0x88] sm:$0xff] }
 0x3e9   :  { %2478 = vmatmul.mubr.f32.vlgmr.msra.gmra.mxu0 %v6291_v59 }
 0x3ea   :  { %2796 = vmatprep.mubr.f32.mxu0 %v5198_v24 }
 0x449   :  { %v2266_v45 = vpop.f32.mrf.mxu1 }
 0x44b   :  { %v2268_v28 = vpop.f32.mrf.mxu1 }
 0x469   :  { %v2337_v49 = vpop.f32.mrf.mxu0 }
 0x46a   :  { %v2338_v61 = vadd.f32 %v2337_v49, %v2266_v45  ;;  %v3182_v45 = vld [vmem:[%s6751_s9 + $0x8] sm:$0xff]  ;;  %v3197_v49 = vld [vmem:[%s6751_s9 + $0x80] sm:$0xff] }
 0x46b   :  { %v2339_v51 = vpop.f32.mrf.mxu0 }
 0x46c   :  { %v2340_v57 = vadd.f32 %v2339_v51, %v2268_v28  ;;  %v3181_v28 = vld [vmem:[%s6751_s9] sm:$0xff]  ;;  %v3244_v51 = vld [vmem:[%s6751_s9 + $0x1f8] sm:$0xff] }
 0x46e   :  { %4358 = vmatprep.subr.msk.mxu1 %vm663_vm0, %v2340_v57 }
 0x46f   :  { %4359 = vmatpush1.msk.msra.mxu1 %vm663_vm0, %v2338_v61 }
 0x470   :  { %4360 = vmatmul.mubr.msk.f32.vlgmr.msra.gmra.mxu1 %vm2486_vm2, %v6302_v2 }
 0x471   :  { %2637 = vmatprep.mubr.f32.mxu1 %v5198_v24 }
 0x48a   :  { %v2408_v59 = vpop.f32.mrf.mxu1 }
 0x48c   :  { %v2410_v11 = vpop.f32.mrf.mxu1 }
 0x4a9   :  { %v2479_v4 = vpop.f32.mrf.mxu0 }
 0x4aa   :  { %v2480_v54 = vadd.f32 %v2479_v4, %v2408_v59  ;;  %v3227_v59 = vld [vmem:[%s6751_s9 + $0x170] sm:$0xff]  ;;  %v3242_v4 = vld [vmem:[%s6751_s9 + $0x1e8] sm:$0xff] }
 0x4ab   :  { %v2481_v0 = vpop.f32.mrf.mxu0 }
 0x4ac   :  { %v2482_v60 = vadd.f32 %v2481_v0, %v2410_v11  ;;  %v3226_v11 = vld [vmem:[%s6751_s9 + $0x168] sm:$0xff]  ;;  %v3241_v0 = vld [vmem:[%s6751_s9 + $0x1e0] sm:$0xff] }
 0x4ae   :  { %4361 = vmatprep.subr.msk.mxu1 %vm663_vm0, %v2482_v60 }
 0x4af   :  { %4362 = vmatpush1.msk.msra.mxu1 %vm663_vm0, %v2480_v54 }
 0x4b0   :  { %4363 = vmatmul.mubr.msk.f32.vlgmr.msra.gmra.mxu1 %vm2486_vm2, %v6302_v2 }
 0x4b1   :  { %2725 = vmatprep.mubr.f32.mxu1 %v5198_v24 }
 0x530   :  { %v2568_v56 = vpop.f32.mrf.mxu1 }
 0x532   :  { %v2570_v17 = vpop.f32.mrf.mxu1 }
 0x533   :  { %4364 = vmatprep.subr.msk.mxu1 %vm2648_vm3, %v2570_v17  ;;  %v3239_v17 = vld [vmem:[%s6751_s9 + $0x1d0] sm:$0xff] }
 0x534   :  { %4365 = vmatpush1.msk.msra.mxu1 %vm2648_vm3, %v2568_v56  ;;  %v3224_v56 = vld [vmem:[%s6751_s9 + $0x158] sm:$0xff] }
 0x535   :  { %4366 = vmatmul.mubr.msk.f32.vlgmr.msra.gmra.mxu1 %vm2644_vm4, %v6317_v20 }
 0x536   :  { %2887 = vmatprep.mubr.f32.mxu1 %v5198_v24 }
 0x570   :  { %v2639_v9 = vpop.f32.mrf.mxu1 }
 0x572   :  { %v2641_v46 = vpop.f32.mrf.mxu1 }
 0x573   :  { %4367 = vmatprep.subr.msk.mxu0 %vm2648_vm3, %v2641_v46  ;;  %v3238_v46 = vld [vmem:[%s6751_s9 + $0x1c8] sm:$0xff] }
 0x574   :  { %4368 = vmatpush1.msk.msra.mxu0 %vm2648_vm3, %v2639_v9  ;;  %v3223_v9 = vld [vmem:[%s6751_s9 + $0x150] sm:$0xff] }
 0x575   :  { %4369 = vmatmul.mubr.msk.f32.vlgmr.msra.gmra.mxu0 %vm2644_vm4, %v6317_v20 }
 0x576   :  { %2958 = vmatprep.mubr.f32.mxu0 %v5198_v24 }
 0x5f5   :  { %v2727_v13 = vpop.f32.mrf.mxu1 }
 0x5f6   :  { %v6329_v27 = vsub.f32 %v2338_v61, %v2727_v13  ;;  %v3243_v61 = vld [vmem:[%s6751_s9 + $0x1f0] sm:$0xff]  ;;  %v3222_v13 = vld [vmem:[%s6751_s9 + $0x148] sm:$0xff] }
 0x5f7   :  { %v2729_v5 = vpop.f32.mrf.mxu1 }
 0x5f8   :  { %v6331_v25 = vsub.f32 %v2340_v57, %v2729_v5  ;;  %v2807_v52 = vmul.f32 %v6329_v27, %v6329_v27  ;;  %v3228_v57 = vld [vmem:[%s6751_s9 + $0x178] sm:$0xff]  ;;  %v3237_v5 = vld [vmem:[%s6751_s9 + $0x1c0] sm:$0xff] }
 0x5fa   :  { %v2808_v10 = vmul.f32 %v6331_v25, %v6331_v25 }
 0x5fc   :  { %4370 = vmatprep.subr.msk.mxu1 %vm663_vm0, %v2808_v10  ;;  %v3221_v10 = vld [vmem:[%s6751_s9 + $0x140] sm:$0xff] }
 0x5fd   :  { %4371 = vmatpush1.msk.msra.mxu1 %vm663_vm0, %v2807_v52  ;;  %v3236_v52 = vld [vmem:[%s6751_s9 + $0x1b8] sm:$0xff] }
 0x5fe   :  { %4372 = vmatmul.mubr.msk.f32.vlgmr.msra.gmra.mxu1 %vm2486_vm2, %v6302_v2 }
 0x5ff   :  { %3041 = vmatprep.mubr.f32.mxu1 %v5198_v24 }
 0x635   :  { %v2798_v23 = vpop.f32.mrf.mxu0 }
 0x636   :  { %v6342_v48 = vsub.f32 %v2480_v54, %v2798_v23  ;;  %v3240_v54 = vld [vmem:[%s6751_s9 + $0x1d8] sm:$0xff] }
 0x637   :  { %v2800_v7 = vpop.f32.mrf.mxu0  ;;  %v3220_v23 = vld [vmem:[%s6751_s9 + $0x138] sm:$0xff] }
 0x638   :  { %v6344_v30 = vsub.f32 %v2482_v60, %v2800_v7  ;;  %v2809_v18 = vmul.f32 %v6342_v48, %v6342_v48  ;;  %v3225_v60 = vld [vmem:[%s6751_s9 + $0x160] sm:$0xff]  ;;  %v3235_v7 = vld [vmem:[%s6751_s9 + $0x1b0] sm:$0xff] }
 0x63a   :  { %v2810_v26 = vmul.f32 %v6344_v30, %v6344_v30 }
 0x63c   :  { %4373 = vmatprep.subr.msk.mxu0 %vm663_vm0, %v2810_v26  ;;  %v3219_v26 = vld [vmem:[%s6751_s9 + $0x130] sm:$0xff] }
 0x63d   :  { %4374 = vmatpush1.msk.msra.mxu0 %vm663_vm0, %v2809_v18  ;;  %v3234_v18 = vld [vmem:[%s6751_s9 + $0x1a8] sm:$0xff] }
 0x63e   :  { %4375 = vmatmul.mubr.msk.f32.vlgmr.msra.gmra.mxu0 %vm2486_vm2, %v6302_v2 }
 0x63f   :  { %3112 = vmatprep.mubr.f32.mxu0 %v5198_v24 }
 0x6be   :  { %v2889_v16 = vpop.f32.mrf.mxu1 }
 0x6c0   :  { %v2891_v50 = vpop.f32.mrf.mxu1 }
 0x6c1   :  { %4376 = vmatprep.subr.msk.mxu1 %vm2648_vm3, %v2891_v50  ;;  %v3233_v50 = vld [vmem:[%s6751_s9 + $0x1a0] sm:$0xff] }
 0x6c2   :  { %4377 = vmatpush1.msk.msra.mxu1 %vm2648_vm3, %v2889_v16  ;;  %v3218_v16 = vld [vmem:[%s6751_s9 + $0x128] sm:$0xff] }
 0x6c3   :  { %4378 = vmatmul.mubr.msk.f32.vlgmr.msra.gmra.mxu1 %vm2644_vm4, %v6317_v20  ;;  %4677 = vmatprep.subr.mxu1 %v3212_v44  ;;  %v3217_v44 = vld [vmem:[%s6751_s9 + $0x120] sm:$0xff] }
 0x6c4   :  { %4678 = vmatpush3.msra.mxu1 %v3196_v21  ;;  %v3232_v21 = vld [vmem:[%s6751_s9 + $0x198] sm:$0xff] }
 0x6c5   :  { %4679 = vmatprep.subr.mxu1 %v3211_v12  ;;  %v3216_v12 = vld [vmem:[%s6751_s9 + $0x118] sm:$0xff] }
 0x6c6   :  { %4680 = vmatpush3.msra.mxu1 %v3195_v15  ;;  %v3231_v15 = vld [vmem:[%s6751_s9 + $0x190] sm:$0xff] }
 0x6c7   :  { %4681 = vmatprep.subr.mxu1 %v3210_v8  ;;  %v3214_v8 = vld [vmem:[%s6751_s9 + $0x108] sm:$0xff] }
 0x6c8   :  { %4682 = vmatpush3.msra.mxu1 %v3194_v58  ;;  %v3229_v58 = vld [vmem:[%s6751_s9 + $0x180] sm:$0xff] }
 0x6c9   :  { %4683 = vmatprep.subr.mxu1 %v3209_v1  ;;  %v3213_v1 = vld [vmem:[%s6751_s9 + $0x100] sm:$0xff] }
 0x6ca   :  { %4684 = vmatpush3.msra.mxu1 %v3193_v29 }
 0x6cb   :  { %4685 = vmatprep.subr.mxu1 %v3208_v19 }
 0x6cc   :  { %4686 = vmatpush3.msra.mxu1 %v3192_v63 }
 0x6cd   :  { %4687 = vmatprep.subr.mxu1 %v3207_v31 }
 0x6ce   :  { %4688 = vmatpush3.msra.mxu1 %v3191_v6  ;;  %v3128_v6 = vlaneseq }
 0x6cf   :  { %4689 = vmatprep.subr.mxu1 %v3206_v33 }
 0x6d0   :  { %4690 = vmatpush3.msra.mxu1 %v3190_v53  ;;  %v3129_v33 = vshrl.u32 %v3128_v6, 7  ;;  %v3707_v6 = vld [vmem:[%s6754_s12 + $0x48] sm:$0xff] }
 0x6d1   :  { %4691 = vmatprep.subr.mxu1 %v3205_v42  ;;  %v2484_v42 = vld [vmem:[%s6749_s7] sm:$0xf] }
 0x6d2   :  { %4692 = vmatpush3.msra.mxu1 %v3189_v62  ;;  %v3130_v53 = vsub.s32 0, %v3129_v33  ;;  %v3134_v62 = vsub.s32 1, %v3129_v33 }
 0x6d3   :  { %4693 = vmatprep.subr.mxu1 %v3204_v32  ;;  %v2485_v32 = vld [vmem:[%s6750_s8] sm:$0xf] }
 0x6d4   :  { %4694 = vmatpush3.msra.mxu1 %v3188_v34  ;;  %v3131_v34 = vrot.slane %v2484_v42, %v3130_v53 }
 0x6d5   :  { %4695 = vmatprep.subr.mxu1 %v3203_v35 }
 0x6d6   :  { %4696 = vmatpush3.msra.mxu1 %v3187_v55  ;;  %v3135_v55 = vrot.slane %v2484_v42, %v3134_v62 }
 0x6d7   :  { %4697 = vmatprep.subr.mxu1 %v3202_v36 }
 0x6d8   :  { %4698 = vmatpush3.msra.mxu1 %v3186_v47 }
 0x6d9   :  { %4699 = vmatprep.subr.mxu1 %v3201_v37  ;;  %v3156_v37 = vrot.slane %v2485_v32, %v3130_v53  ;;  %v3705_v53 = vld [vmem:[%s6754_s12 + $0x38] sm:$0xff] }
 0x6da   :  { %4700 = vmatpush3.msra.mxu1 %v3185_v38 }
 0x6db   :  { %4701 = vmatprep.subr.mxu1 %v3200_v39  ;;  %v3160_v39 = vrot.slane %v2485_v32, %v3134_v62  ;;  %v3703_v62 = vld [vmem:[%s6754_s12 + $0x28] sm:$0xff] }
 0x6dc   :  { %4702 = vmatpush3.msra.mxu1 %v3184_v40 }
 0x6dd   :  { %4703 = vmatprep.subr.mxu1 %v3199_v14 }
 0x6de   :  { %4704 = vmatpush3.msra.mxu1 %v3183_v41 }
 0x6df   :  { %4705 = vmatprep.subr.mxu1 %v3198_v43 }
 0x6e0   :  { %4706 = vmatpush3.msra.mxu1 %v3182_v45 }
 0x6e1   :  { %4707 = vmatprep.subr.mxu1 %v3197_v49 }
 0x6e2   :  { %4708 = vmatpush3.msra.mxu1 %v3181_v28 }
 0x6e3   :  { %4991 = vmatprep.subr.mxu1 %v5198_v24 }
 0x6fe   :  { %v2960_v22 = vpop.f32.mrf.mxu0 }
 0x700   :  { %v2962_v3 = vpop.f32.mrf.mxu0 }
 0x701   :  { %4379 = vmatprep.subr.msk.mxu0 %vm2648_vm3, %v2962_v3  ;;  %v3230_v3 = vld [vmem:[%s6751_s9 + $0x188] sm:$0xff] }
 0x702   :  { %4380 = vmatpush1.msk.msra.mxu0 %vm2648_vm3, %v2960_v22  ;;  %v3215_v22 = vld [vmem:[%s6751_s9 + $0x110] sm:$0xff] }
 0x703   :  { %4381 = vmatmul.mubr.msk.f32.vlgmr.msra.gmra.mxu0 %vm2644_vm4, %v6317_v20  ;;  %4712 = vmatprep.subr.mxu0 %v3244_v51 }
 0x704   :  { %4713 = vmatpush3.msra.mxu0 %v3228_v57 }
 0x705   :  { %4714 = vmatprep.subr.mxu0 %v3243_v61 }
 0x706   :  { %4715 = vmatpush3.msra.mxu0 %v3227_v59  ;;  %v3142_v59 = vsub.s32 3, %v3129_v33 }
 0x707   :  { %4716 = vmatprep.subr.mxu0 %v3242_v4 }
 0x708   :  { %4717 = vmatpush3.msra.mxu0 %v3226_v11 }
 0x709   :  { %4718 = vmatprep.subr.mxu0 %v3241_v0  ;;  %v3143_v0 = vrot.slane %v2484_v42, %v3142_v59 }
 0x70a   :  { %4719 = vmatpush3.msra.mxu0 %v3225_v60 }
 0x70b   :  { %4720 = vmatprep.subr.mxu0 %v3240_v54 }
 0x70c   :  { %4721 = vmatpush3.msra.mxu0 %v3224_v56 }
 0x70d   :  { %4722 = vmatprep.subr.mxu0 %v3239_v17  ;;  %v3168_v17 = vrot.slane %v2485_v32, %v3142_v59 }
 0x70e   :  { %4723 = vmatpush3.msra.mxu0 %v3223_v9 }
 0x70f   :  { %4724 = vmatprep.subr.mxu0 %v3238_v46 }
 0x710   :  { %4725 = vmatpush3.msra.mxu0 %v3222_v13 }
 0x711   :  { %4726 = vmatprep.subr.mxu0 %v3237_v5 }
 0x712   :  { %4727 = vmatpush3.msra.mxu0 %v3221_v10 }
 0x713   :  { %4728 = vmatprep.subr.mxu0 %v3236_v52 }
 0x714   :  { %4729 = vmatpush3.msra.mxu0 %v3220_v23 }
 0x715   :  { %4730 = vmatprep.subr.mxu0 %v3235_v7 }
 0x716   :  { %4731 = vmatpush3.msra.mxu0 %v3219_v26 }
 0x717   :  { %4732 = vmatprep.subr.mxu0 %v3234_v18 }
 0x718   :  { %4733 = vmatpush3.msra.mxu0 %v3218_v16 }
 0x719   :  { %4734 = vmatprep.subr.mxu0 %v3233_v50 }
 0x71a   :  { %4735 = vmatpush3.msra.mxu0 %v3217_v44 }
 0x71b   :  { %4736 = vmatprep.subr.mxu0 %v3232_v21 }
 0x71c   :  { %4737 = vmatpush3.msra.mxu0 %v3216_v12 }
 0x71d   :  { %4738 = vmatprep.subr.mxu0 %v3231_v15 }
 0x71e   :  { %4739 = vmatpush3.msra.mxu0 %v3215_v22 }
 0x71f   :  { %4740 = vmatprep.subr.mxu0 %v3230_v3  ;;  %v3713_v3 = vld [vmem:[%s6754_s12 + $0x78] sm:$0xff] }
 0x720   :  { %4741 = vmatpush3.msra.mxu0 %v3214_v8  ;;  %v3712_v8 = vld [vmem:[%s6754_s12 + $0x70] sm:$0xff] }
 0x721   :  { %4742 = vmatprep.subr.mxu0 %v3229_v58  ;;  %v3711_v58 = vld [vmem:[%s6754_s12 + $0x68] sm:$0xff] }
 0x722   :  { %4743 = vmatpush3.msra.mxu0 %v3213_v1  ;;  %v3710_v1 = vld [vmem:[%s6754_s12 + $0x60] sm:$0xff] }
 0x723   :  { %4996 = vmatprep.subr.mxu0 %v5198_v24 }
 0x783   :  { %v3043_v29 = vpop.f32.mrf.mxu1 }
 0x784   :  { %v3044_v19 = vadd.f32 1e-05, %v3043_v29 }
 0x785   :  { %v3045_v63 = vpop.f32.mrf.mxu1 }
 0x786   :  { %5097 = vrsqrt.f32 %v3044_v19  ;;  %v3046_v31 = vadd.f32 1e-05, %v3045_v63  ;;  %v3709_v63 = vld [vmem:[%s6754_s12 + $0x58] sm:$0xff] }
 0x788   :  { %5099 = vrsqrt.f32 %v3046_v31  ;;  %v3708_v31 = vld [vmem:[%s6754_s12 + $0x50] sm:$0xff] }
 0x793   :  { %v5098_v35 = vpop.eup %5097 }
 0x794   :  { %v3123_v36 = vmul.f32 %v5098_v35, %v6329_v27  ;;  %v3138_v27 = vsub.s32 2, %v3129_v33  ;;  %v3706_v33 = vld [vmem:[%s6754_s12 + $0x40] sm:$0xff]  ;;  %v3700_v35 = vld [vmem:[%s6754_s12 + $0x10] sm:$0xff] }
 0x795   :  { %v5100_v47 = vpop.eup %5099 }
 0x796   :  { %v3124_v38 = vmul.f32 %v5100_v47, %v6331_v25  ;;  %v3148_v40 = vmul.f32 %v3131_v34, %v3123_v36  ;;  %v3139_v4 = vrot.slane %v2484_v42, %v3138_v27  ;;  %v3164_v54 = vrot.slane %v2485_v32, %v3138_v27  ;;  %v3704_v42 = vld [vmem:[%s6754_s12 + $0x30] sm:$0xff]  ;;  %v3702_v32 = vld [vmem:[%s6754_s12 + $0x20] sm:$0xff]  ;;  %v3701_v34 = vld [vmem:[%s6754_s12 + $0x18] sm:$0xff] }
 0x797   :  { %v3698_v36 = vld [vmem:[%s6754_s12] sm:$0xff] }
 0x798   :  { %v3149_v14 = vmul.f32 %v3135_v55, %v3124_v38  ;;  %v3173_v41 = vadd.f32 %v3156_v37, %v3148_v40  ;;  %v3699_v55 = vld [vmem:[%s6754_s12 + $0x8] sm:$0xff]  ;;  %v4390_v40 = vld [vmem:[%s6752_s10] ss:$0 sm:$0xff] }
 0x79a   :  { %v3174_v43 = vadd.f32 %v3160_v39, %v3149_v14  ;;  %v3177_v49 = vmax.f32 %v3173_v41, 0.0  ;;  %v4391_v41 = vld [vmem:[%s6753_s11] ss:$0 sm:$0xff] }
 0x79c   :  { %v3178_v45 = vmax.f32 %v3174_v43, 0.0 }
 0x79e   :  { %3309 = vmatprep.mubr.f32.mxu1 %v3178_v45 }
 0x79f   :  { %3310 = vmatmul.mubr.f32.vlgmr.msra.gmra.mxu1 %v3177_v49 }
 0x7a0   :  { %4993 = vmatprep.mubr.msk.f32.mxu1 %vm5199_vm5, %v5198_v24 }
 0x7c3   :  { %v3114_v28 = vpop.f32.mrf.mxu0 }
 0x7c4   :  { %v3115_v51 = vadd.f32 1e-05, %v3114_v28 }
 0x7c5   :  { %v3116_v57 = vpop.f32.mrf.mxu0 }
 0x7c6   :  { %5101 = vrsqrt.f32 %v3115_v51  ;;  %v3117_v61 = vadd.f32 1e-05, %v3116_v57 }
 0x7c8   :  { %5103 = vrsqrt.f32 %v3117_v61 }
 0x7d3   :  { %v5102_v11 = vpop.eup %5101 }
 0x7d4   :  { %v3125_v25 = vmul.f32 %v5102_v11, %v6342_v48 }
 0x7d5   :  { %v5104_v60 = vpop.eup %5103 }
 0x7d6   :  { %v3126_v56 = vmul.f32 %v5104_v60, %v6344_v30  ;;  %v3150_v9 = vmul.f32 %v3139_v4, %v3125_v25  ;;  %v4101_v60 = vld [vmem:[%s6757_s15 + $0x20] sm:$0xff] }
 0x7d8   :  { %v3151_v46 = vmul.f32 %v3143_v0, %v3126_v56  ;;  %v3175_v13 = vadd.f32 %v3164_v54, %v3150_v9  ;;  %v4103_v0 = vld [vmem:[%s6757_s15 + $0x30] sm:$0xff]  ;;  %v4100_v54 = vld [vmem:[%s6757_s15 + $0x18] sm:$0xff]  ;;  %v4097_v9 = vld [vmem:[%s6757_s15] sm:$0xff] }
 0x7d9   :  { %v4099_v56 = vld [vmem:[%s6757_s15 + $0x10] sm:$0xff] }
 0x7da   :  { %v3176_v5 = vadd.f32 %v3168_v17, %v3151_v46  ;;  %v3179_v52 = vmax.f32 %v3175_v13, 0.0  ;;  %v4098_v17 = vld [vmem:[%s6757_s15 + $0x8] sm:$0xff] }
 0x7dc   :  { %v3180_v10 = vmax.f32 %v3176_v5, 0.0 }
 0x7de   :  { %3379 = vmatprep.mubr.f32.mxu0 %v3180_v10 }
 0x7df   :  { %3380 = vmatmul.mubr.f32.vlgmr.msra.gmra.mxu0 %v3179_v52  ;;  %v4400_v52 = vld [vmem:[%s6755_s13] ss:$0 sm:$0xff] }
 0x7e0   :  { %4998 = vmatprep.mubr.msk.f32.mxu0 %vm5199_vm5, %v5198_v24 }
 0x85f   :  { %v4709_v48 = vpop.f32.mrf.mxu1 }
 0x861   :  { %v4710_v23 = vpop.f32.mrf.mxu1 }
 0x862   :  { %v4711_v26 = vadd.f32 %v4710_v23, %v4709_v48  ;;  %v4401_v23 = vld [vmem:[%s6756_s14] ss:$0 sm:$0xff] }
 0x89f   :  { %v4744_v7 = vpop.f32.mrf.mxu0 }
 0x8a1   :  { %v4745_v30 = vpop.f32.mrf.mxu0 }
 0x8a2   :  { %v4746_v18 = vadd.f32 %v4745_v30, %v4744_v7 }
 0x8a4   :  { %v3382_v16 = vadd.f32 %v4746_v18, %v4711_v26 }
 0x8a6   :  { %4992 = vmatpush3.msk.msra.mxu1 %vm663_vm0, %v3382_v16 }
 0x8a7   :  { %4994 = vmatmul.mubr.msk.f32.vlgmr.msra.gmra.mxu1 %vm2486_vm2, %v6302_v2  ;;  %5001 = vmatprep.subr.mxu1 %v5198_v24 }
 0x8a8   :  { %5003 = vmatprep.mubr.msk.f32.mxu1 %vm5199_vm5, %v5198_v24 }
 0x967   :  { %v3456_v50 = vpop.f32.mrf.mxu1 }
 0x968   :  { %4997 = vmatpush3.msk.msra.mxu0 %vm2648_vm3, %v3456_v50 }
 0x969   :  { %v4995_v44 = vpop.f32.mrf.mxu1  ;;  %4999 = vmatmul.mubr.msk.f32.vlgmr.msra.gmra.mxu0 %vm2644_vm4, %v6317_v20  ;;  %5006 = vmatprep.subr.mxu0 %v5198_v24 }
 0x96a   :  { %5008 = vmatprep.mubr.msk.f32.mxu0 %vm5199_vm5, %v5198_v24 }
 0xa29   :  { %v3529_v21 = vpop.f32.mrf.mxu0 }
 0xa2a   :  { %v6583_v12 = vsub.f32 %v3382_v16, %v3529_v21 }
 0xa2b   :  { %v5000_v15 = vpop.f32.mrf.mxu0 }
 0xa2c   :  { %v3534_v22 = vmul.f32 %v6583_v12, %v6583_v12 }
 0xa2e   :  { %5002 = vmatpush3.msk.msra.mxu1 %vm663_vm0, %v3534_v22 }
 0xa2f   :  { %5004 = vmatmul.mubr.msk.f32.vlgmr.msra.gmra.mxu1 %vm2486_vm2, %v6302_v2  ;;  %5011 = vmatprep.subr.mxu1 %v5198_v24 }
 0xa30   :  { %5043 = vmatprep.mubr.msk.f32.mxu1 %vm5199_vm5, %v5198_v24  ;;  %5012 = vmatpush3.msra.mxu1 %v3713_v3 }
 0xa31   :  { %5013 = vmatprep.subr.mxu1 %v5198_v24 }
 0xa32   :  { %5014 = vmatpush3.msra.mxu1 %v3712_v8 }
 0xa33   :  { %5015 = vmatprep.subr.mxu1 %v5198_v24 }
 0xa34   :  { %5016 = vmatpush3.msra.mxu1 %v3711_v58 }
 0xa35   :  { %5017 = vmatprep.subr.mxu1 %v5198_v24 }
 0xa36   :  { %5018 = vmatpush3.msra.mxu1 %v3710_v1 }
 0xa37   :  { %5019 = vmatprep.subr.mxu1 %v5198_v24 }
 0xa38   :  { %5020 = vmatpush3.msra.mxu1 %v3709_v63 }
 0xa39   :  { %5021 = vmatprep.subr.mxu1 %v5198_v24 }
 0xa3a   :  { %5022 = vmatpush3.msra.mxu1 %v3708_v31 }
 0xa3b   :  { %5023 = vmatprep.subr.mxu1 %v5198_v24 }
 0xa3c   :  { %5024 = vmatpush3.msra.mxu1 %v3707_v6 }
 0xa3d   :  { %5025 = vmatprep.subr.mxu1 %v5198_v24 }
 0xa3e   :  { %5026 = vmatpush3.msra.mxu1 %v3706_v33 }
 0xa3f   :  { %5027 = vmatprep.subr.mxu1 %v5198_v24 }
 0xa40   :  { %5028 = vmatpush3.msra.mxu1 %v3705_v53 }
 0xa41   :  { %5029 = vmatprep.subr.mxu1 %v5198_v24 }
 0xa42   :  { %5030 = vmatpush3.msra.mxu1 %v3704_v42 }
 0xa43   :  { %5031 = vmatprep.subr.mxu1 %v5198_v24 }
 0xa44   :  { %5032 = vmatpush3.msra.mxu1 %v3703_v62 }
 0xa45   :  { %5033 = vmatprep.subr.mxu1 %v5198_v24 }
 0xa46   :  { %5034 = vmatpush3.msra.mxu1 %v3702_v32 }
 0xa47   :  { %5035 = vmatprep.subr.mxu1 %v5198_v24 }
 0xa48   :  { %5036 = vmatpush3.msra.mxu1 %v3701_v34 }
 0xa49   :  { %5037 = vmatprep.subr.mxu1 %v5198_v24 }
 0xa4a   :  { %5038 = vmatpush3.msra.mxu1 %v3700_v35 }
 0xa4b   :  { %5039 = vmatprep.subr.mxu1 %v5198_v24 }
 0xa4c   :  { %5040 = vmatpush3.msra.mxu1 %v3699_v55 }
 0xa4d   :  { %5041 = vmatprep.subr.mxu1 %v5198_v24 }
 0xa4e   :  { %5042 = vmatpush3.msra.mxu1 %v3698_v36 }
 0xaef   :  { %v3604_v29 = vpop.f32.mrf.mxu1 }
 0xaf0   :  { %5007 = vmatpush3.msk.msra.mxu0 %vm2648_vm3, %v3604_v29 }
 0xaf1   :  { %v5005_v19 = vpop.f32.mrf.mxu1  ;;  %5009 = vmatmul.mubr.msk.f32.vlgmr.msra.gmra.mxu0 %vm2644_vm4, %v6317_v20  ;;  %5046 = vmatprep.subr.mxu0 %v5198_v24 }
 0xaf2   :  { %5048 = vmatprep.mubr.msk.f32.mxu0 %vm5199_vm5, %v5198_v24 }
 0xbb1   :  { %v3677_v47 = vpop.f32.mrf.mxu0 }
 0xbb2   :  { %v3678_v37 = vadd.f32 1e-05, %v3677_v47 }
 0xbb3   :  { %v5010_v38 = vpop.f32.mrf.mxu0 }
 0xbb4   :  { %5105 = vrsqrt.f32 %v3678_v37 }
 0xbc1   :  { %v5106_v39 = vpop.eup %5105 }
 0xbc2   :  { %v3682_v14 = vmul.f32 %v5106_v39, %v6583_v12 }
 0xbc4   :  { %v3689_v43 = vmul.f32 %v4390_v40, %v3682_v14 }
 0xbc6   :  { %v3696_v45 = vadd.f32 %v4391_v41, %v3689_v43 }
 0xbc8   :  { %5044 = vmatmul.mubr.f32.vlgmr.msra.gmra.mxu1 %v3696_v45  ;;  %3697 = vst [vmem:[#allocation6] sm:$0xf] %v3696_v45 }
 0xc88   :  { %v3780_v49 = vpop.f32.mrf.mxu1 }
 0xc89   :  { %5047 = vmatpush3.msk.msra.mxu0 %vm663_vm0, %v3780_v49 }
 0xc8a   :  { %v5045_v28 = vpop.f32.mrf.mxu1  ;;  %5049 = vmatmul.mubr.msk.f32.vlgmr.msra.gmra.mxu0 %vm2486_vm2, %v6302_v2  ;;  %5051 = vmatprep.subr.mxu0 %v5198_v24 }
 0xc8b   :  { %5053 = vmatprep.mubr.msk.f32.mxu0 %vm5199_vm5, %v5198_v24 }
 0xd4a   :  { %v3855_v51 = vpop.f32.mrf.mxu0 }
 0xd4b   :  { %5052 = vmatpush3.msk.msra.mxu0 %vm2648_vm3, %v3855_v51 }
 0xd4c   :  { %v5050_v57 = vpop.f32.mrf.mxu0  ;;  %5054 = vmatmul.mubr.msk.f32.vlgmr.msra.gmra.mxu0 %vm2644_vm4, %v6317_v20  ;;  %5056 = vmatprep.subr.mxu0 %v5198_v24 }
 0xd4d   :  { %5058 = vmatprep.mubr.msk.f32.mxu0 %vm5199_vm5, %v5198_v24 }
 0xe0c   :  { %v3928_v61 = vpop.f32.mrf.mxu0 }
 0xe0d   :  { %v3932_v27 = vsub.f32 %v3780_v49, %v3928_v61 }
 0xe0e   :  { %v5055_v59 = vpop.f32.mrf.mxu0 }
 0xe0f   :  { %v3933_v4 = vmul.f32 %v3932_v27, %v3932_v27 }
 0xe11   :  { %5057 = vmatpush3.msk.msra.mxu0 %vm663_vm0, %v3933_v4 }
 0xe12   :  { %5059 = vmatmul.mubr.msk.f32.vlgmr.msra.gmra.mxu0 %vm2486_vm2, %v6302_v2  ;;  %5061 = vmatprep.subr.mxu0 %v5198_v24  ;;  %v4104_v2 = vld [vmem:[%s6757_s15 + $0x38] sm:$0xff] }
 0xe13   :  { %5063 = vmatprep.mubr.msk.f32.mxu0 %vm5199_vm5, %v5198_v24 }
 0xed2   :  { %v4003_v11 = vpop.f32.mrf.mxu0 }
 0xed3   :  { %5062 = vmatpush3.msk.msra.mxu0 %vm2648_vm3, %v4003_v11 }
 0xed4   :  { %v5060_v25 = vpop.f32.mrf.mxu0  ;;  %5064 = vmatmul.mubr.msk.f32.vlgmr.msra.gmra.mxu0 %vm2644_vm4, %v6317_v20  ;;  %5066 = vmatprep.subr.mxu0 %v5198_v24  ;;  %v4102_v20 = vld [vmem:[%s6757_s15 + $0x28] sm:$0xff]  ;;  %s5200_s15 = smov [#allocation6]  }
 0xed5   :  { %5082 = vmatprep.mubr.msk.f32.mxu0 %vm5199_vm5, %v5198_v24  ;;  %5067 = vmatpush3.msra.mxu0 %v4104_v2  ;;  %s4203_s24 = sshll.u32 %s5200_s15, 4  ;;  %s4204_s24 = int_to_ptr.vmem [resolvable:$true] %s4203_s24 }
 0xed6   :  { %5068 = vmatprep.subr.mxu0 %v5198_v24  ;;  %s5129_s4 = scalar_lea.vmem %s4204_s24, 64  ;;  %p5134_p6 = scmp.lt.s32.totalorder %s4204_s24, %s4204_s24 }
 0xed7   :  { %5069 = vmatpush3.msra.mxu0 %v4103_v0  ;;  %p5130_p5 = scmp.ne.s32.totalorder %s4204_s24, %s5129_s4  ;;  %p5135_p7 = scmp.lt.s32.totalorder %s5129_s4, %s5129_s4 }
 0xed8   :  { %5070 = vmatprep.subr.mxu0 %v5198_v24 }
 0xed9   :  { %5071 = vmatpush3.msra.mxu0 %v4102_v20  ;;  %p5136_p8 = por %p5135_p7, %p5134_p6 }
 0xeda   :  { %5072 = vmatprep.subr.mxu0 %v5198_v24 }
 0xedb   :  { %5073 = vmatpush3.msra.mxu0 %v4101_v60  ;;  %p5137_p9 = pnand %p5136_p8, %p5130_p5 }
 0xedc   :  { %5074 = vmatprep.subr.mxu0 %v5198_v24 }
 0xedd   :  { %5075 = vmatpush3.msra.mxu0 %v4100_v54 }
 0xede   :  { %5076 = vmatprep.subr.mxu0 %v5198_v24 }
 0xedf   :  { %5077 = vmatpush3.msra.mxu0 %v4099_v56 }
 0xee0   :  { %5078 = vmatprep.subr.mxu0 %v5198_v24 }
 0xee1   :  { %5079 = vmatpush3.msra.mxu0 %v4098_v17 }
 0xee2   :  { %5080 = vmatprep.subr.mxu0 %v5198_v24 }
 0xee3   :  { %5081 = vmatpush3.msra.mxu0 %v4097_v9 }
 0xf94   :  { %v4076_v46 = vpop.f32.mrf.mxu0 }
 0xf95   :  { %v4077_v13 = vadd.f32 1e-05, %v4076_v46 }
 0xf96   :  { %v5065_v5 = vpop.f32.mrf.mxu0 }
 0xf97   :  { %5107 = vrsqrt.f32 %v4077_v13 }
 0xfa4   :  { %v5108_v10 = vpop.eup %5107 }
 0xfa5   :  { %v4081_v48 = vmul.f32 %v5108_v10, %v3932_v27 }
 0xfa7   :  { %v4088_v7 = vmul.f32 %v4400_v52, %v4081_v48 }
 0xfa9   :  { %v4095_v30 = vadd.f32 %v4401_v23, %v4088_v7 }
 0xfab   :  { %v4096_v26 = vmax.f32 %v4095_v30, 0.0 }
 0xfad   :  { %5083 = vmatmul.mubr.msk.f32.vlgmr.msra.gmra.mxu0 %vm4112_vm6, %v4096_v26 }
 0xfae   :  { %5140 = shalt.err (!%p5137_p9)
}
 0xfaf   :  { %4206 = dma.vmem_to_hbm [thread:$0]  %s4204_s24, 64, %s6760_s18, [#allocation7]  }
 0xfb0   :  { %s5149_s14 = scalar_lea.vmem %s4194_s25, 256  ;;  %p5154_p11 = scmp.lt.s32.totalorder %s4194_s25, %s4194_s25 }
 0xfb1   :  { %p5150_p10 = scmp.ne.s32.totalorder %s4194_s25, %s5149_s14  ;;  %p5155_p12 = scmp.lt.s32.totalorder %s5149_s14, %s5149_s14 }
 0xfb3   :  { %p5156_p13 = por %p5155_p12, %p5154_p11 }
 0xfb5   :  { %p5157_p0 = pnand %p5156_p13, %p5150_p10 }
 0xfb7   :  { %5160 = shalt.err (!%p5157_p0)
}
 0xfb8   :  { %4196 = dma.vmem_to_hbm [thread:$0]  %s4194_s25, 256, %s6759_s17, [#allocation4]   ;;  %v4402_v24 = vld [vmem:[%s6758_s16] ss:$0 sm:$0xff] }
 0xfb9   :  { %s5202_s27 = smov [#allocation8]  }
 0xfba   :  { %s4213_s2 = sshll.u32 %s5202_s27, 4  ;;  %s4214_s2 = int_to_ptr.vmem [resolvable:$true] %s4213_s2 }
 0xfbb   :  { %s5169_s18 = scalar_lea.vmem %s4214_s2, 64  ;;  %p5174_p2 = scmp.lt.s32.totalorder %s4214_s2, %s4214_s2 }
 0xfbc   :  { %p5170_p1 = scmp.ne.s32.totalorder %s4214_s2, %s5169_s18  ;;  %p5175_p3 = scmp.lt.s32.totalorder %s5169_s18, %s5169_s18 }
 0xfbe   :  { %p5176_p4 = por %p5175_p3, %p5174_p2 }
 0xfc0   :  { %p5177_p5 = pnand %p5176_p4, %p5170_p1 }
0x106d   :  { %v4182_v18 = vpop.f32.mrf.mxu0 }
0x106e   :  { %v4183_v16 = vadd.f32 %v4402_v24, %v4182_v18 }
0x106f   :  { %v5084_v50 = vpop.f32.mrf.mxu0 }
0x1070   :  { %4186 = vst [vmem:[#allocation8] sm:$0xf] %v4183_v16 }
0x1071   :  { %5180 = shalt.err (!%p5177_p5)
}
0x1072   :  { %4216 = dma.vmem_to_hbm [thread:$0]  %s4214_s2, 64, %s6761_s19, [#allocation7]  }
0x1073   :  { %5191 = dma.done.wait [#allocation4], 256  }
0x1074   :  { %5192 = vsyncadd [#allocation4], 4294967040 }
0x1075   :  { %5193 = dma.done.wait [#allocation7], 128  }
0x1076   :  { %5194 = vsyncadd [#allocation7], 4294967168 }
0x1077   :  { %4226 = vsyncpa [#allocation3], 1 }
0x1078   :  { %4227 = vsyncpa [#allocation4], 1 }
0x1079   :  { %4228 = vsyncpa [#allocation7], 1 }

</bundles_post_ra>
